<compile_context>
chip_gen: v6e
topology: v6e:2x2x1
jax: 0.10.0
libtpu: 0.0.40
codegen_flags: <defaults>
</compile_context>

<pallas_src>
import jax
import jax.numpy as jnp
import numpy as np
from jax.experimental import pallas as pl
from jax.experimental.pallas import tpu as pltpu


def _round_up(x, m):
    return ((x + m - 1) // m) * m


def _mlp2(x_bf16, wA, bA, wB, bB):
    """Two (1x1 conv + folded BN + ReLU) stages on a (C_in, TN) tile.

    Matmuls run in bf16 with f32 accumulation; bias/ReLU in f32.
    """
    h = jnp.maximum(
        jnp.dot(wA, x_bf16, preferred_element_type=jnp.float32) + bA, 0.0)
    return jnp.maximum(
        jnp.dot(wB, h.astype(jnp.bfloat16),
                preferred_element_type=jnp.float32) + bB, 0.0)


def _sd_kernel(c_ref, n_ref, e_ref,
               w1b, b1b, w2b, b2b, w3s, b3, w4, b4,
               w5f, w5n, w5e, b5, w6, b6,
               out_ref):
    bf16 = jnp.bfloat16
    c = c_ref[...]                      # (9,  TN) bf16
    nrm = n_ref[...]                    # (8,  TN) bf16 (zero-padded from 3)
    ext = e_ref[...]                    # (64, TN) bf16

    # FaceRotateConvolution: the three cyclic views are baked into the (96, 9)
    # first-layer weight and the block-diag (96, 96) second layer.
    h = _mlp2(c, w1b[...], b1b[...], w2b[...], b2b[...])        # (96, TN) f32
    fea = h[0:32, :] + h[32:64, :] + h[64:96, :]                # (32, TN) f32
    # (the 1/3 averaging is folded into w3s)

    # fusion_mlp: 32 -> 64 -> 64
    f = _mlp2(fea.astype(bf16), w3s[...], b3[...], w4[...], b4[...])  # (64, TN)

    # structural_mlp first layer, concat-free: split w5 columns over
    # [FRC-features(64), normals(3->8 padded), extra(64)].
    s = (jnp.dot(w5f[...], f.astype(bf16), preferred_element_type=jnp.float32)
         + jnp.dot(w5n[...], nrm, preferred_element_type=jnp.float32)
         + jnp.dot(w5e[...], ext, preferred_element_type=jnp.float32)
         + b5[...])
    s = jnp.maximum(s, 0.0)                                     # (131, TN)
    o = jnp.dot(w6[...], s.astype(bf16),
                preferred_element_type=jnp.float32) + b6[...]
    out_ref[...] = jnp.maximum(o, 0.0)                          # (131, TN) f32


def structural_descriptor(corners, normals, extra_norm, params, *, tn=2048):
    """corners (B,9,N), normals (B,3,N), extra_norm (B,64,N) -> (B,131,N)."""
    assert tn % 128 == 0
    B, c9, N = corners.shape
    assert c9 == 9
    bf16 = jnp.bfloat16

    # ---- trace-time weight repacking (tiny, constant per call) -------------
    w1, b1 = params["w1"], params["b1"]
    w2, b2 = params["w2"], params["b2"]
    w3, b3 = params["w3"], params["b3"]
    w4, b4 = params["w4"], params["b4"]
    w5, b5 = params["w5"], params["b5"]
    w6, b6 = params["w6"], params["b6"]

    z3 = jnp.zeros((32, 3), jnp.float32)
    w1_v1 = jnp.concatenate([w1, z3], axis=1)                    # rows 0..5
    w1_v2 = jnp.concatenate([z3, w1], axis=1)                    # rows 3..8
    w1_v3 = jnp.concatenate([w1[:, 3:6], z3, w1[:, 0:3]], axis=1)  # rows 6,7,8,0,1,2
    w1_big = jnp.concatenate([w1_v1, w1_v2, w1_v3], axis=0)      # (96, 9)
    b1_big = jnp.tile(b1, (3, 1))                                # (96, 1)
    w2_big = jax.scipy.linalg.block_diag(w2, w2, w2)             # (96, 96)
    b2_big = jnp.tile(b2, (3, 1))                                # (96, 1)
    w3_s = w3 / 3.0                                              # fold the /3

    w5_f = w5[:, 0:64]                                           # (131, 64)
    w5_n = jnp.concatenate(                                      # (131, 8)
        [w5[:, 64:67], jnp.zeros((131, 5), jnp.float32)], axis=1)
    w5_e = w5[:, 67:131]                                         # (131, 64)

    weights = [w1_big, b1_big, w2_big, b2_big, w3_s, b3, w4, b4,
               w5_f, w5_n, w5_e, b5, w6, b6]
    # matmul operands in bf16; biases stay f32 (added after f32 accumulation)
    weights = [w.astype(bf16) if w.shape[-1] != 1 else w for w in weights]

    # ---- data layout: (B, C, N) -> (C, B*N), pad positions to the tile -----
    P = B * N

    def flat(x):
        return jnp.transpose(x, (1, 0, 2)).reshape(x.shape[1], P)

    c_flat = flat(corners).astype(bf16)                          # (9,  P)
    n_flat = jnp.concatenate(                                    # (8,  P)
        [flat(normals), jnp.zeros((5, P), jnp.float32)], axis=0).astype(bf16)
    e_flat = flat(extra_norm).astype(bf16)                       # (64, P)

    tn_eff = min(tn, _round_up(P, 128))
    P_pad = _round_up(P, tn_eff)
    if P_pad != P:
        pad = ((0, 0), (0, P_pad - P))
        c_flat = jnp.pad(c_flat, pad)
        n_flat = jnp.pad(n_flat, pad)
        e_flat = jnp.pad(e_flat, pad)

    grid = (P_pad // tn_eff,)

    def data_spec(C):
        return pl.BlockSpec((C, tn_eff), lambda j: (0, j))

    def full_spec(shape):
        return pl.BlockSpec(shape, lambda j: (0,) * len(shape))

    in_specs = ([data_spec(9), data_spec(8), data_spec(64)]
                + [full_spec(w.shape) for w in weights])

    out_flat = pl.pallas_call(
        _sd_kernel,
        out_shape=jax.ShapeDtypeStruct((131, P_pad), jnp.float32),
        grid_spec=pltpu.PrefetchScalarGridSpec(
            num_scalar_prefetch=0,
            grid=grid,
            in_specs=in_specs,
            out_specs=pl.BlockSpec((131, tn_eff), lambda j: (0, j)),
        ),
        compiler_params=pltpu.CompilerParams(
            dimension_semantics=("parallel",),
            vmem_limit_bytes=48 * 1024 * 1024),
    )(c_flat, n_flat, e_flat, *weights)

    out = out_flat[:, :P].reshape(131, B, N)
    return jnp.transpose(out, (1, 0, 2))                         # (B, 131, N)


def init_params(key):
    """Deterministic synthetic Conv1d + BatchNorm1d params, BN folded into W/b."""
    def conv(k, cout, cin):
        kw, kb = jax.random.split(k)
        w = jax.random.normal(kw, (cout, cin), jnp.float32) / np.sqrt(cin)
        b = 0.1 * jax.random.normal(kb, (cout,), jnp.float32)
        return w, b

    def bn(k, c):
        kg, kb, km, kv = jax.random.split(k, 4)
        gamma = 1.0 + 0.1 * jax.random.normal(kg, (c,), jnp.float32)
        beta = 0.1 * jax.random.normal(kb, (c,), jnp.float32)
        mean = 0.1 * jax.random.normal(km, (c,), jnp.float32)
        var = 1.0 + 0.1 * jax.random.uniform(kv, (c,), jnp.float32)
        return gamma, beta, mean, var

    def fold(w, b, gamma, beta, mean, var, eps=1e-5):
        scale = gamma / jnp.sqrt(var + eps)
        return w * scale[:, None], ((b - mean) * scale + beta)[:, None]

    # rotate_mlp(6->32->32), fusion_mlp(32->64->64), structural_mlp(131->131->131)
    layer_dims = [(32, 6), (32, 32), (64, 32), (64, 64), (131, 131), (131, 131)]
    keys = jax.random.split(key, 2 * len(layer_dims))
    params = {}
    for i, (co, ci) in enumerate(layer_dims):
        w, b = conv(keys[2 * i], co, ci)
        g, be, m, v = bn(keys[2 * i + 1], co)
        wf, bf = fold(w, b, g, be, m, v)
        params[f"w{i + 1}"] = wf          # (C_out, C_in)
        params[f"b{i + 1}"] = bf          # (C_out, 1)
    return params


def ref_forward(corners, normals, extra, P):
    """Pure-JAX reference matching the PyTorch forward (eval-mode BN folded),
    with matmul operands in bf16 / f32 accumulation to mirror the kernel's
    precision choices."""
    bf16 = jnp.bfloat16

    def lin(w, x, b):
        return jnp.einsum('oi,bip->bop', w.astype(bf16), x.astype(bf16),
                          preferred_element_type=jnp.float32) + b[None]

    def mlp2(x, wA, bA, wB, bB):
        h = jnp.maximum(lin(wA, x, bA), 0.0)
        return jnp.maximum(lin(wB, h, bB), 0.0)

    c = corners
    rot = lambda x: mlp2(x, P["w1"], P["b1"], P["w2"], P["b2"])
    x3 = jnp.concatenate([c[:, 6:9], c[:, 0:3]], axis=1)
    fea = rot(c[:, 0:6]) + rot(c[:, 3:9]) + rot(x3)      # un-divided sum;
    f = mlp2(fea, P["w3"] / 3.0, P["b3"], P["w4"], P["b4"])  # /3 folded into w3
    cat = jnp.concatenate([f, normals, extra], axis=1)
    return mlp2(cat, P["w5"], P["b5"], P["w6"], P["b6"])


if __name__ == "__main__":
    key = jax.random.PRNGKey(0)
    kp, kc, kn, ke = jax.random.split(key, 4)

    B, N = 2, 256
    params = init_params(kp)
    corners = jax.random.normal(kc, (B, 9, N), jnp.float32)
    normals = jax.random.normal(kn, (B, 3, N), jnp.float32)
    extra_norm = jax.random.normal(ke, (B, 64, N), jnp.float32)

    out = structural_descriptor(corners, normals, extra_norm, params)
    out = jax.block_until_ready(out)

    ref = ref_forward(corners, normals, extra_norm, params)
    np.testing.assert_allclose(np.asarray(out), np.asarray(ref),
                               rtol=1e-2, atol=1e-2)
    print("KERNEL_OK")
</pallas_src>

<mosaic_0001>
module attributes {stable_mosaic.version = 11 : i64} {
  func.func @_sd_kernel(%arg0: i32, %arg1: memref<9x512xbf16, #tpu.memory_space<vmem>>, %arg2: memref<8x512xbf16, #tpu.memory_space<vmem>>, %arg3: memref<64x512xbf16, #tpu.memory_space<vmem>>, %arg4: memref<96x9xbf16, #tpu.memory_space<vmem>>, %arg5: memref<96x1xf32, #tpu.memory_space<vmem>>, %arg6: memref<96x96xbf16, #tpu.memory_space<vmem>>, %arg7: memref<96x1xf32, #tpu.memory_space<vmem>>, %arg8: memref<64x32xbf16, #tpu.memory_space<vmem>>, %arg9: memref<64x1xf32, #tpu.memory_space<vmem>>, %arg10: memref<64x64xbf16, #tpu.memory_space<vmem>>, %arg11: memref<64x1xf32, #tpu.memory_space<vmem>>, %arg12: memref<131x64xbf16, #tpu.memory_space<vmem>>, %arg13: memref<131x8xbf16, #tpu.memory_space<vmem>>, %arg14: memref<131x64xbf16, #tpu.memory_space<vmem>>, %arg15: memref<131x1xf32, #tpu.memory_space<vmem>>, %arg16: memref<131x131xbf16, #tpu.memory_space<vmem>>, %arg17: memref<131x1xf32, #tpu.memory_space<vmem>>, %arg18: memref<131x512xf32, #tpu.memory_space<vmem>>) attributes {dimension_semantics = [#tpu.dimension_semantics<parallel>], iteration_bounds = array<i64: 1>, scalar_prefetch = 0 : i64, scratch_operands = 0 : i64, tpu.core_type = #tpu.core_type<tc>, window_params = [{transform_indices = @transform_0, window_bounds = array<i64: 9, 512>}, {transform_indices = @transform_1, window_bounds = array<i64: 8, 512>}, {transform_indices = @transform_2, window_bounds = array<i64: 64, 512>}, {pipeline_mode = #tpu.pipeline_mode<synchronous>, transform_indices = @transform_3, window_bounds = array<i64: 96, 9>}, {pipeline_mode = #tpu.pipeline_mode<synchronous>, transform_indices = @transform_4, window_bounds = array<i64: 96, 1>}, {pipeline_mode = #tpu.pipeline_mode<synchronous>, transform_indices = @transform_5, window_bounds = array<i64: 96, 96>}, {pipeline_mode = #tpu.pipeline_mode<synchronous>, transform_indices = @transform_6, window_bounds = array<i64: 96, 1>}, {pipeline_mode = #tpu.pipeline_mode<synchronous>, transform_indices = @transform_7, window_bounds = array<i64: 64, 32>}, {pipeline_mode = #tpu.pipeline_mode<synchronous>, transform_indices = @transform_8, window_bounds = array<i64: 64, 1>}, {pipeline_mode = #tpu.pipeline_mode<synchronous>, transform_indices = @transform_9, window_bounds = array<i64: 64, 64>}, {pipeline_mode = #tpu.pipeline_mode<synchronous>, transform_indices = @transform_10, window_bounds = array<i64: 64, 1>}, {pipeline_mode = #tpu.pipeline_mode<synchronous>, transform_indices = @transform_11, window_bounds = array<i64: 131, 64>}, {pipeline_mode = #tpu.pipeline_mode<synchronous>, transform_indices = @transform_12, window_bounds = array<i64: 131, 8>}, {pipeline_mode = #tpu.pipeline_mode<synchronous>, transform_indices = @transform_13, window_bounds = array<i64: 131, 64>}, {pipeline_mode = #tpu.pipeline_mode<synchronous>, transform_indices = @transform_14, window_bounds = array<i64: 131, 1>}, {pipeline_mode = #tpu.pipeline_mode<synchronous>, transform_indices = @transform_15, window_bounds = array<i64: 131, 131>}, {pipeline_mode = #tpu.pipeline_mode<synchronous>, transform_indices = @transform_16, window_bounds = array<i64: 131, 1>}, {transform_indices = @transform_17, window_bounds = array<i64: 131, 512>}]} {
    %c0 = arith.constant 0 : index
    %c0_0 = arith.constant 0 : index
    %0 = vector.load %arg1[%c0, %c0_0] : memref<9x512xbf16, #tpu.memory_space<vmem>>, vector<9x512xbf16>
    %c0_1 = arith.constant 0 : index
    %c0_2 = arith.constant 0 : index
    %1 = vector.load %arg2[%c0_1, %c0_2] : memref<8x512xbf16, #tpu.memory_space<vmem>>, vector<8x512xbf16>
    %c0_3 = arith.constant 0 : index
    %c0_4 = arith.constant 0 : index
    %2 = vector.load %arg3[%c0_3, %c0_4] : memref<64x512xbf16, #tpu.memory_space<vmem>>, vector<64x512xbf16>
    %c0_5 = arith.constant 0 : index
    %c0_6 = arith.constant 0 : index
    %3 = vector.load %arg4[%c0_5, %c0_6] : memref<96x9xbf16, #tpu.memory_space<vmem>>, vector<96x9xbf16>
    %c0_7 = arith.constant 0 : index
    %c0_8 = arith.constant 0 : index
    %4 = vector.load %arg5[%c0_7, %c0_8] : memref<96x1xf32, #tpu.memory_space<vmem>>, vector<96x1xf32>
    %c0_9 = arith.constant 0 : index
    %c0_10 = arith.constant 0 : index
    %5 = vector.load %arg6[%c0_9, %c0_10] : memref<96x96xbf16, #tpu.memory_space<vmem>>, vector<96x96xbf16>
    %c0_11 = arith.constant 0 : index
    %c0_12 = arith.constant 0 : index
    %6 = vector.load %arg7[%c0_11, %c0_12] : memref<96x1xf32, #tpu.memory_space<vmem>>, vector<96x1xf32>
    %cst = arith.constant dense<0.000000e+00> : vector<96x512xf32>
    %7 = tpu.matmul %3, %0, %cst {dimension_numbers = #tpu.dot_dimension_numbers<[1], [0], [0], [1], [0, 0, 1, 1], [], []>} : vector<96x9xbf16>, vector<9x512xbf16>, vector<96x512xf32> -> vector<96x512xf32>
    %8 = vector.broadcast %4 : vector<96x1xf32> to vector<96x512xf32>
    %9 = arith.addf %7, %8 : vector<96x512xf32>
    %cst_13 = arith.constant 0.000000e+00 : f32
    %10 = vector.broadcast %cst_13 : f32 to vector<96x512xf32>
    %11 = arith.maximumf %9, %10 : vector<96x512xf32>
    %12 = arith.truncf %11 : vector<96x512xf32> to vector<96x512xbf16>
    %cst_14 = arith.constant dense<0.000000e+00> : vector<96x512xf32>
    %13 = tpu.matmul %5, %12, %cst_14 {dimension_numbers = #tpu.dot_dimension_numbers<[1], [0], [0], [1], [0, 0, 1, 1], [], []>} : vector<96x96xbf16>, vector<96x512xbf16>, vector<96x512xf32> -> vector<96x512xf32>
    %14 = vector.broadcast %6 : vector<96x1xf32> to vector<96x512xf32>
    %15 = arith.addf %13, %14 : vector<96x512xf32>
    %cst_15 = arith.constant 0.000000e+00 : f32
    %16 = vector.broadcast %cst_15 : f32 to vector<96x512xf32>
    %17 = arith.maximumf %15, %16 : vector<96x512xf32>
    %18 = vector.extract_strided_slice %17 {offsets = [0, 0], sizes = [32, 512], strides = [1, 1]} : vector<96x512xf32> to vector<32x512xf32>
    %19 = vector.extract_strided_slice %17 {offsets = [32, 0], sizes = [32, 512], strides = [1, 1]} : vector<96x512xf32> to vector<32x512xf32>
    %20 = arith.addf %18, %19 : vector<32x512xf32>
    %21 = vector.extract_strided_slice %17 {offsets = [64, 0], sizes = [32, 512], strides = [1, 1]} : vector<96x512xf32> to vector<32x512xf32>
    %22 = arith.addf %20, %21 : vector<32x512xf32>
    %23 = arith.truncf %22 : vector<32x512xf32> to vector<32x512xbf16>
    %c0_16 = arith.constant 0 : index
    %c0_17 = arith.constant 0 : index
    %24 = vector.load %arg8[%c0_16, %c0_17] : memref<64x32xbf16, #tpu.memory_space<vmem>>, vector<64x32xbf16>
    %c0_18 = arith.constant 0 : index
    %c0_19 = arith.constant 0 : index
    %25 = vector.load %arg9[%c0_18, %c0_19] : memref<64x1xf32, #tpu.memory_space<vmem>>, vector<64x1xf32>
    %c0_20 = arith.constant 0 : index
    %c0_21 = arith.constant 0 : index
    %26 = vector.load %arg10[%c0_20, %c0_21] : memref<64x64xbf16, #tpu.memory_space<vmem>>, vector<64x64xbf16>
    %c0_22 = arith.constant 0 : index
    %c0_23 = arith.constant 0 : index
    %27 = vector.load %arg11[%c0_22, %c0_23] : memref<64x1xf32, #tpu.memory_space<vmem>>, vector<64x1xf32>
    %cst_24 = arith.constant dense<0.000000e+00> : vector<64x512xf32>
    %28 = tpu.matmul %24, %23, %cst_24 {dimension_numbers = #tpu.dot_dimension_numbers<[1], [0], [0], [1], [0, 0, 1, 1], [], []>} : vector<64x32xbf16>, vector<32x512xbf16>, vector<64x512xf32> -> vector<64x512xf32>
    %29 = vector.broadcast %25 : vector<64x1xf32> to vector<64x512xf32>
    %30 = arith.addf %28, %29 : vector<64x512xf32>
    %cst_25 = arith.constant 0.000000e+00 : f32
    %31 = vector.broadcast %cst_25 : f32 to vector<64x512xf32>
    %32 = arith.maximumf %30, %31 : vector<64x512xf32>
    %33 = arith.truncf %32 : vector<64x512xf32> to vector<64x512xbf16>
    %cst_26 = arith.constant dense<0.000000e+00> : vector<64x512xf32>
    %34 = tpu.matmul %26, %33, %cst_26 {dimension_numbers = #tpu.dot_dimension_numbers<[1], [0], [0], [1], [0, 0, 1, 1], [], []>} : vector<64x64xbf16>, vector<64x512xbf16>, vector<64x512xf32> -> vector<64x512xf32>
    %35 = vector.broadcast %27 : vector<64x1xf32> to vector<64x512xf32>
    %36 = arith.addf %34, %35 : vector<64x512xf32>
    %cst_27 = arith.constant 0.000000e+00 : f32
    %37 = vector.broadcast %cst_27 : f32 to vector<64x512xf32>
    %38 = arith.maximumf %36, %37 : vector<64x512xf32>
    %c0_28 = arith.constant 0 : index
    %c0_29 = arith.constant 0 : index
    %39 = vector.load %arg12[%c0_28, %c0_29] : memref<131x64xbf16, #tpu.memory_space<vmem>>, vector<131x64xbf16>
    %40 = arith.truncf %38 : vector<64x512xf32> to vector<64x512xbf16>
    %cst_30 = arith.constant dense<0.000000e+00> : vector<131x512xf32>
    %41 = tpu.matmul %39, %40, %cst_30 {dimension_numbers = #tpu.dot_dimension_numbers<[1], [0], [0], [1], [0, 0, 1, 1], [], []>} : vector<131x64xbf16>, vector<64x512xbf16>, vector<131x512xf32> -> vector<131x512xf32>
    %c0_31 = arith.constant 0 : index
    %c0_32 = arith.constant 0 : index
    %42 = vector.load %arg13[%c0_31, %c0_32] : memref<131x8xbf16, #tpu.memory_space<vmem>>, vector<131x8xbf16>
    %cst_33 = arith.constant dense<0.000000e+00> : vector<131x512xf32>
    %43 = tpu.matmul %42, %1, %cst_33 {dimension_numbers = #tpu.dot_dimension_numbers<[1], [0], [0], [1], [0, 0, 1, 1], [], []>} : vector<131x8xbf16>, vector<8x512xbf16>, vector<131x512xf32> -> vector<131x512xf32>
    %44 = arith.addf %41, %43 : vector<131x512xf32>
    %c0_34 = arith.constant 0 : index
    %c0_35 = arith.constant 0 : index
    %45 = vector.load %arg14[%c0_34, %c0_35] : memref<131x64xbf16, #tpu.memory_space<vmem>>, vector<131x64xbf16>
    %cst_36 = arith.constant dense<0.000000e+00> : vector<131x512xf32>
    %46 = tpu.matmul %45, %2, %cst_36 {dimension_numbers = #tpu.dot_dimension_numbers<[1], [0], [0], [1], [0, 0, 1, 1], [], []>} : vector<131x64xbf16>, vector<64x512xbf16>, vector<131x512xf32> -> vector<131x512xf32>
    %47 = arith.addf %44, %46 : vector<131x512xf32>
    %c0_37 = arith.constant 0 : index
    %c0_38 = arith.constant 0 : index
    %48 = vector.load %arg15[%c0_37, %c0_38] : memref<131x1xf32, #tpu.memory_space<vmem>>, vector<131x1xf32>
    %49 = vector.broadcast %48 : vector<131x1xf32> to vector<131x512xf32>
    %50 = arith.addf %47, %49 : vector<131x512xf32>
    %cst_39 = arith.constant 0.000000e+00 : f32
    %51 = vector.broadcast %cst_39 : f32 to vector<131x512xf32>
    %52 = arith.maximumf %50, %51 : vector<131x512xf32>
    %c0_40 = arith.constant 0 : index
    %c0_41 = arith.constant 0 : index
    %53 = vector.load %arg16[%c0_40, %c0_41] : memref<131x131xbf16, #tpu.memory_space<vmem>>, vector<131x131xbf16>
    %54 = arith.truncf %52 : vector<131x512xf32> to vector<131x512xbf16>
    %cst_42 = arith.constant dense<0.000000e+00> : vector<131x512xf32>
    %55 = tpu.matmul %53, %54, %cst_42 {dimension_numbers = #tpu.dot_dimension_numbers<[1], [0], [0], [1], [0, 0, 1, 1], [], []>} : vector<131x131xbf16>, vector<131x512xbf16>, vector<131x512xf32> -> vector<131x512xf32>
    %c0_43 = arith.constant 0 : index
    %c0_44 = arith.constant 0 : index
    %56 = vector.load %arg17[%c0_43, %c0_44] : memref<131x1xf32, #tpu.memory_space<vmem>>, vector<131x1xf32>
    %57 = vector.broadcast %56 : vector<131x1xf32> to vector<131x512xf32>
    %58 = arith.addf %55, %57 : vector<131x512xf32>
    %cst_45 = arith.constant 0.000000e+00 : f32
    %59 = vector.broadcast %cst_45 : f32 to vector<131x512xf32>
    %60 = arith.maximumf %58, %59 : vector<131x512xf32>
    %c0_46 = arith.constant 0 : index
    %c0_47 = arith.constant 0 : index
    %61 = vector.load %arg18[%c0_46, %c0_47] : memref<131x512xf32, #tpu.memory_space<vmem>>, vector<131x512xf32>
    tpu.vector_store %arg18[%c0_46, %c0_47], %60 {strides = array<i32>} : memref<131x512xf32, #tpu.memory_space<vmem>>, vector<131x512xf32>,
    return
  }
  func.func @transform_0(%arg0: i32) -> (i32, i32) {
    %c0_i32 = arith.constant 0 : i32
    %c0_i32_0 = arith.constant 0 : i32
    return %c0_i32, %arg0 : i32, i32
  }
  func.func @transform_1(%arg0: i32) -> (i32, i32) {
    %c0_i32 = arith.constant 0 : i32
    %c0_i32_0 = arith.constant 0 : i32
    return %c0_i32, %arg0 : i32, i32
  }
  func.func @transform_2(%arg0: i32) -> (i32, i32) {
    %c0_i32 = arith.constant 0 : i32
    %c0_i32_0 = arith.constant 0 : i32
    return %c0_i32, %arg0 : i32, i32
  }
  func.func @transform_3(%arg0: i32) -> (i32, i32) {
    %c0_i32 = arith.constant 0 : i32
    %c0_i32_0 = arith.constant 0 : i32
    %c0_i32_1 = arith.constant 0 : i32
    return %c0_i32, %c0_i32_0 : i32, i32
  }
  func.func @transform_4(%arg0: i32) -> (i32, i32) {
    %c0_i32 = arith.constant 0 : i32
    %c0_i32_0 = arith.constant 0 : i32
    %c0_i32_1 = arith.constant 0 : i32
    return %c0_i32, %c0_i32_0 : i32, i32
  }
  func.func @transform_5(%arg0: i32) -> (i32, i32) {
    %c0_i32 = arith.constant 0 : i32
    %c0_i32_0 = arith.constant 0 : i32
    %c0_i32_1 = arith.constant 0 : i32
    return %c0_i32, %c0_i32_0 : i32, i32
  }
  func.func @transform_6(%arg0: i32) -> (i32, i32) {
    %c0_i32 = arith.constant 0 : i32
    %c0_i32_0 = arith.constant 0 : i32
    %c0_i32_1 = arith.constant 0 : i32
    return %c0_i32, %c0_i32_0 : i32, i32
  }
  func.func @transform_7(%arg0: i32) -> (i32, i32) {
    %c0_i32 = arith.constant 0 : i32
    %c0_i32_0 = arith.constant 0 : i32
    %c0_i32_1 = arith.constant 0 : i32
    return %c0_i32, %c0_i32_0 : i32, i32
  }
  func.func @transform_8(%arg0: i32) -> (i32, i32) {
    %c0_i32 = arith.constant 0 : i32
    %c0_i32_0 = arith.constant 0 : i32
    %c0_i32_1 = arith.constant 0 : i32
    return %c0_i32, %c0_i32_0 : i32, i32
  }
  func.func @transform_9(%arg0: i32) -> (i32, i32) {
    %c0_i32 = arith.constant 0 : i32
    %c0_i32_0 = arith.constant 0 : i32
    %c0_i32_1 = arith.constant 0 : i32
    return %c0_i32, %c0_i32_0 : i32, i32
  }
  func.func @transform_10(%arg0: i32) -> (i32, i32) {
    %c0_i32 = arith.constant 0 : i32
    %c0_i32_0 = arith.constant 0 : i32
    %c0_i32_1 = arith.constant 0 : i32
    return %c0_i32, %c0_i32_0 : i32, i32
  }
  func.func @transform_11(%arg0: i32) -> (i32, i32) {
    %c0_i32 = arith.constant 0 : i32
    %c0_i32_0 = arith.constant 0 : i32
    %c0_i32_1 = arith.constant 0 : i32
    return %c0_i32, %c0_i32_0 : i32, i32
  }
  func.func @transform_12(%arg0: i32) -> (i32, i32) {
    %c0_i32 = arith.constant 0 : i32
    %c0_i32_0 = arith.constant 0 : i32
    %c0_i32_1 = arith.constant 0 : i32
    return %c0_i32, %c0_i32_0 : i32, i32
  }
  func.func @transform_13(%arg0: i32) -> (i32, i32) {
    %c0_i32 = arith.constant 0 : i32
    %c0_i32_0 = arith.constant 0 : i32
    %c0_i32_1 = arith.constant 0 : i32
    return %c0_i32, %c0_i32_0 : i32, i32
  }
  func.func @transform_14(%arg0: i32) -> (i32, i32) {
    %c0_i32 = arith.constant 0 : i32
    %c0_i32_0 = arith.constant 0 : i32
    %c0_i32_1 = arith.constant 0 : i32
    return %c0_i32, %c0_i32_0 : i32, i32
  }
  func.func @transform_15(%arg0: i32) -> (i32, i32) {
    %c0_i32 = arith.constant 0 : i32
    %c0_i32_0 = arith.constant 0 : i32
    %c0_i32_1 = arith.constant 0 : i32
    return %c0_i32, %c0_i32_0 : i32, i32
  }
  func.func @transform_16(%arg0: i32) -> (i32, i32) {
    %c0_i32 = arith.constant 0 : i32
    %c0_i32_0 = arith.constant 0 : i32
    %c0_i32_1 = arith.constant 0 : i32
    return %c0_i32, %c0_i32_0 : i32, i32
  }
  func.func @transform_17(%arg0: i32) -> (i32, i32) {
    %c0_i32 = arith.constant 0 : i32
    %c0_i32_0 = arith.constant 0 : i32
    return %c0_i32, %arg0 : i32, i32
  }
}

</mosaic_0001>

<bundles_post_ra>
// kernel: tpu_custom_call.1
= control target key start
LH: loop header
LB: loop body
LE: loop exit
PB: predicated region body
PF: predicated region fallthrough
CT: control target
= control target key end

     0   :  { %s5805_s0 = inlined_call_operand.vmem [shape: bf16[9,512], index: 0, kind: input, shape index: {}]   ;;  %s5806_s1 = inlined_call_operand.vmem [shape: bf16[8,512], index: 1, kind: input, shape index: {}]   ;;  %s5807_s2 = inlined_call_operand.vmem [shape: bf16[64,512], index: 2, kind: input, shape index: {}]   ;;  %s5808_s3 = inlined_call_operand.vmem [shape: bf16[96,9], index: 3, kind: input, shape index: {}]   ;;  %s5809_s4 = inlined_call_operand.vmem [shape: f32[96,1], index: 4, kind: input, shape index: {}]   ;;  %s5810_s5 = inlined_call_operand.vmem [shape: bf16[96,96], index: 5, kind: input, shape index: {}]   ;;  %s5811_s6 = inlined_call_operand.vmem [shape: f32[96,1], index: 6, kind: input, shape index: {}]   ;;  %s5812_s7 = inlined_call_operand.vmem [shape: bf16[64,32], index: 7, kind: input, shape index: {}]   ;;  %s5813_s8 = inlined_call_operand.vmem [shape: f32[64,1], index: 8, kind: input, shape index: {}]   ;;  %s5814_s9 = inlined_call_operand.vmem [shape: bf16[64,64], index: 9, kind: input, shape index: {}]   ;;  %s5815_s10 = inlined_call_operand.vmem [shape: f32[64,1], index: 10, kind: input, shape index: {}]   ;;  %s5816_s11 = inlined_call_operand.vmem [shape: bf16[131,64], index: 11, kind: input, shape index: {}]   ;;  %s5817_s12 = inlined_call_operand.vmem [shape: bf16[131,8], index: 12, kind: input, shape index: {}]   ;;  %s5818_s13 = inlined_call_operand.vmem [shape: bf16[131,64], index: 13, kind: input, shape index: {}]   ;;  %s5819_s14 = inlined_call_operand.vmem [shape: f32[131,1], index: 14, kind: input, shape index: {}]   ;;  %s5820_s15 = inlined_call_operand.vmem [shape: bf16[131,131], index: 15, kind: input, shape index: {}]   ;;  %s5821_s16 = inlined_call_operand.vmem [shape: f32[131,1], index: 16, kind: input, shape index: {}]   ;;  %s5822_s17 = inlined_call_operand.hbm [shape: f32[131,512], index: 17, kind: output, shape index: {}]  }
   0x1   :  { %5840 = sst [smem:[#allocation99_spill]] %s5805_s0 }
   0x2   :  { %5841 = sst [smem:[#allocation100_spill]] %s5806_s1 }
   0x3   :  { %v102_v0 = vld [vmem:[%s5809_s4 + $0x50] sm:$0xff]  ;;  %v100_v1 = vld [vmem:[%s5809_s4 + $0x40] sm:$0xff]  ;;  %vm253_vm0 = vcmask 1043456   ;;  %vm254_vm1 = vcmask 1044480   ;;  %v5826_v2 = vmov 0   ;;  %s5842_s0 = sld [smem:[#allocation99_spill]] }
   0x4   :  { %3752 = vset.pattern.permute.xlu1 %v5826_v2  ;;  %3751 = vset.pattern.permute.xlu0 %v5826_v2  ;;  %v5825_v4 = vmov 65535   ;;  %v103_v8 = vld [vmem:[%s5809_s4 + $0x58] sm:$0xff]  ;;  %v101_v10 = vld [vmem:[%s5809_s4 + $0x48] sm:$0xff]  ;;  %v3759_v16 = vld [vmem:[%s5808_s3] sm:$0xff]   ;;  %vm234_vm2 = vcmask 72704  }
   0x5   :  { %180 = vperm.xlu0 %3751, %v102_v0   ;;  %170 = vperm.xlu1 %3752, %v100_v1   ;;  %v255_v5 = vsel %vm253_vm0, 4294967295, %v5825_v4  ;;  %v98_v17 = vld [vmem:[%s5809_s4 + $0x30] sm:$0xff]  ;;  %v99_v18 = vld [vmem:[%s5809_s4 + $0x38] sm:$0xff]  ;;  %v96_v19 = vld [vmem:[%s5809_s4 + $0x20] sm:$0xff] }
   0x6   :  { %v256_v6 = vsel %vm254_vm1, %v255_v5, 0  ;;  %301 = vmatprep.mubr.bf16.mxu0 %v5826_v2  ;;  %394 = vmatprep.mubr.bf16.mxu1 %v5826_v2  ;;  %v97_v20 = vld [vmem:[%s5809_s4 + $0x28] sm:$0xff]  ;;  %v94_v22 = vld [vmem:[%s5809_s4 + $0x10] sm:$0xff]  ;;  %v95_v23 = vld [vmem:[%s5809_s4 + $0x18] sm:$0xff] }
   0x7   :  { %v3760_v21 = vld [vmem:[%s5808_s3 + $0x8] sm:$0xff]   ;;  %v92_v24 = vld [vmem:[%s5809_s4] sm:$0xff]  ;;  %v3761_v26 = vld [vmem:[%s5808_s3 + $0x10] sm:$0xff]  }
   0x8   :  { %v93_v25 = vld [vmem:[%s5809_s4 + $0x8] sm:$0xff]  ;;  %v118_v27 = vld [vmem:[%s5811_s6 + $0x10] sm:$0xff]  ;;  %v119_v28 = vld [vmem:[%s5811_s6 + $0x18] sm:$0xff] }
   0x9   :  { %v3753_v3 = vld [vmem:[%s5842_s0 + $0x4] ss:$16 sps:$4 sm:$0x1f]   ;;  %v3755_v7 = vld [vmem:[%s5842_s0 + $0xc] ss:$16 sps:$4 sm:$0x1f]   ;;  %185 = vperm.xlu0 %3751, %v103_v8   ;;  %175 = vperm.xlu1 %3752, %v101_v10  }
   0xa   :  { %v261_v9 = vand.u32 %v3753_v3, %v256_v6  ;;  %v3757_v11 = vld [vmem:[%s5842_s0] ss:$16 sps:$4 sm:$0x1f]   ;;  %v267_v12 = vand.u32 %v3755_v7, %v256_v6  ;;  %v3758_v13 = vld [vmem:[%s5842_s0 + $0x8] ss:$16 sps:$4 sm:$0x1f]  }
   0xb   :  { %v258_v14 = vand.u32 %v3757_v11, %v256_v6  ;;  %v264_v15 = vand.u32 %v3758_v13, %v256_v6  ;;  %v122_v29 = vld [vmem:[%s5811_s6 + $0x30] sm:$0xff]  ;;  %v123_v30 = vld [vmem:[%s5811_s6 + $0x38] sm:$0xff]  ;;  %v117_v34 = vld [vmem:[%s5811_s6 + $0x8] sm:$0xff] }
   0xc   :  { %283 = vmatprep.subr.bf16.mxu0 %v261_v9  ;;  %376 = vmatprep.subr.bf16.mxu1 %v267_v12  ;;  %v3762_v31 = vld [vmem:[%s5808_s3 + $0x18] sm:$0xff]   ;;  %v126_v32 = vld [vmem:[%s5811_s6 + $0x50] sm:$0xff]  ;;  %v116_v35 = vld [vmem:[%s5811_s6] sm:$0xff] }
   0xd   :  { %284 = vmatpush1.bf16.msra.mxu0 %v258_v14  ;;  %377 = vmatpush1.bf16.msra.mxu1 %v264_v15  ;;  %v127_v33 = vld [vmem:[%s5811_s6 + $0x58] sm:$0xff]  ;;  %v3763_v36 = vld [vmem:[%s5808_s3 + $0x20] sm:$0xff]   ;;  %v121_v38 = vld [vmem:[%s5811_s6 + $0x28] sm:$0xff] }
   0xe   :  { %160 = vperm.xlu0 %3751, %v98_v17   ;;  %165 = vperm.xlu1 %3752, %v99_v18   ;;  %v120_v37 = vld [vmem:[%s5811_s6 + $0x20] sm:$0xff]  ;;  %v125_v40 = vld [vmem:[%s5811_s6 + $0x48] sm:$0xff]  ;;  %v924_v42 = vld [vmem:[%s5813_s8 + $0x30] sm:$0xff] }
   0xf   :  { %v124_v39 = vld [vmem:[%s5811_s6 + $0x40] sm:$0xff]  ;;  %v3764_v41 = vld [vmem:[%s5808_s3 + $0x28] sm:$0xff]   ;;  %v925_v43 = vld [vmem:[%s5813_s8 + $0x38] sm:$0xff] }
  0x10   :  { %3553 = vmatmul.mubr.msk.bf16.vlgmr.msra.gmra.mxu0 %vm234_vm2, %v3759_v16  ;;  %3559 = vmatmul.mubr.msk.bf16.vlgmr.msra.gmra.mxu1 %vm234_vm2, %v3759_v16  ;;  %v922_v44 = vld [vmem:[%s5813_s8 + $0x20] sm:$0xff]  ;;  %v923_v45 = vld [vmem:[%s5813_s8 + $0x28] sm:$0xff]  ;;  %v920_v46 = vld [vmem:[%s5813_s8 + $0x10] sm:$0xff] }
  0x11   :  { %311 = vmatprep.mubr.bf16.mxu0 %v5826_v2  ;;  %404 = vmatprep.mubr.bf16.mxu1 %v5826_v2  ;;  %v921_v47 = vld [vmem:[%s5813_s8 + $0x18] sm:$0xff]  ;;  %v918_v48 = vld [vmem:[%s5813_s8] sm:$0xff]  ;;  %v919_v49 = vld [vmem:[%s5813_s8 + $0x8] sm:$0xff] }
  0x12   :  { %150 = vperm.xlu0 %3751, %v96_v19   ;;  %155 = vperm.xlu1 %3752, %v97_v20   ;;  %v940_v50 = vld [vmem:[%s5815_s10 + $0x30] sm:$0xff]  ;;  %v941_v51 = vld [vmem:[%s5815_s10 + $0x38] sm:$0xff]  ;;  %v938_v52 = vld [vmem:[%s5815_s10 + $0x20] sm:$0xff] }
  0x13   :  { %v939_v53 = vld [vmem:[%s5815_s10 + $0x28] sm:$0xff]  ;;  %v936_v54 = vld [vmem:[%s5815_s10 + $0x10] sm:$0xff] }
  0x16   :  { %140 = vperm.xlu0 %3751, %v94_v22   ;;  %145 = vperm.xlu1 %3752, %v95_v23  }
  0x18   :  { %3554 = vmatmul.mubr.msk.bf16.gmra.mxu0 %vm234_vm2, %v3760_v21  ;;  %3560 = vmatmul.mubr.msk.bf16.gmra.mxu1 %vm234_vm2, %v3760_v21 }
  0x19   :  { %321 = vmatprep.mubr.bf16.mxu0 %v5826_v2  ;;  %414 = vmatprep.mubr.bf16.mxu1 %v5826_v2 }
  0x1a   :  { %130 = vperm.xlu0 %3751, %v92_v24   ;;  %135 = vperm.xlu1 %3752, %v93_v25  }
  0x1e   :  { %539 = vperm.xlu0 %3751, %v118_v27   ;;  %544 = vperm.xlu1 %3752, %v119_v28  }
  0x20   :  { %3555 = vmatmul.mubr.msk.bf16.gmra.mxu0 %vm234_vm2, %v3761_v26  ;;  %3561 = vmatmul.mubr.msk.bf16.gmra.mxu1 %vm234_vm2, %v3761_v26 }
  0x21   :  { %331 = vmatprep.mubr.bf16.mxu0 %v5826_v2  ;;  %424 = vmatprep.mubr.bf16.mxu1 %v5826_v2 }
  0x22   :  { %559 = vperm.xlu0 %3751, %v122_v29   ;;  %564 = vperm.xlu1 %3752, %v123_v30  }
  0x26   :  { %579 = vperm.xlu0 %3751, %v126_v32   ;;  %584 = vperm.xlu1 %3752, %v127_v33  }
  0x28   :  { %3556 = vmatmul.mubr.msk.bf16.gmra.mxu0 %vm234_vm2, %v3762_v31  ;;  %3562 = vmatmul.mubr.msk.bf16.gmra.mxu1 %vm234_vm2, %v3762_v31 }
  0x29   :  { %341 = vmatprep.mubr.bf16.mxu0 %v5826_v2  ;;  %434 = vmatprep.mubr.bf16.mxu1 %v5826_v2 }
  0x2a   :  { %529 = vperm.xlu0 %3751, %v116_v35   ;;  %534 = vperm.xlu1 %3752, %v117_v34  }
  0x2e   :  { %549 = vperm.xlu0 %3751, %v120_v37   ;;  %554 = vperm.xlu1 %3752, %v121_v38  }
  0x30   :  { %3557 = vmatmul.mubr.msk.bf16.gmra.mxu0 %vm234_vm2, %v3763_v36  ;;  %3563 = vmatmul.mubr.msk.bf16.gmra.mxu1 %vm234_vm2, %v3763_v36 }
  0x31   :  { %351 = vmatprep.mubr.bf16.mxu0 %v5826_v2  ;;  %444 = vmatprep.mubr.bf16.mxu1 %v5826_v2 }
  0x32   :  { %569 = vperm.xlu0 %3751, %v124_v39   ;;  %574 = vperm.xlu1 %3752, %v125_v40  }
  0x36   :  { %974 = vperm.xlu0 %3751, %v924_v42   ;;  %979 = vperm.xlu1 %3752, %v925_v43  }
  0x38   :  { %3558 = vmatmul.mubr.msk.bf16.gmra.mxu0 %vm234_vm2, %v3764_v41  ;;  %3564 = vmatmul.mubr.msk.bf16.gmra.mxu1 %vm234_vm2, %v3764_v41 }
  0x39   :  { %668 = vmatprep.mubr.bf16.mxu0 %v5826_v2  ;;  %761 = vmatprep.mubr.bf16.mxu1 %v5826_v2 }
  0x3a   :  { %964 = vperm.xlu0 %3751, %v922_v44   ;;  %969 = vperm.xlu1 %3752, %v923_v45  }
  0x3e   :  { %954 = vperm.xlu0 %3751, %v920_v46   ;;  %959 = vperm.xlu1 %3752, %v921_v47  }
  0x42   :  { %944 = vperm.xlu0 %3751, %v918_v48   ;;  %949 = vperm.xlu1 %3752, %v919_v49  }
  0x46   :  { %1241 = vperm.xlu0 %3751, %v940_v50   ;;  %1246 = vperm.xlu1 %3752, %v941_v51  }
  0x4a   :  { %1231 = vperm.xlu0 %3751, %v938_v52   ;;  %1236 = vperm.xlu1 %3752, %v939_v53  }
  0x4b   :  { %22 = vsyncpa [#allocation3], 0  ;;  %v937_v55 = vld [vmem:[%s5815_s10 + $0x18] sm:$0xff]  ;;  %v934_v56 = vld [vmem:[%s5815_s10] sm:$0xff]  ;;  %vm617_vm3 = vcmask 785408   ;;  %vm1002_vm4 = vcmask 261120  }
  0x4c   :  { %v935_v57 = vld [vmem:[%s5815_s10 + $0x8] sm:$0xff]  ;;  %v2648_v58 = vld [vmem:[%s5819_s14 + $0x70] sm:$0xff]  ;;  %v2649_v59 = vld [vmem:[%s5819_s14 + $0x78] sm:$0xff]  ;;  %s5868_s30 = sld [smem:[#allocation100_spill]]  ;;  %vm1269_vm5 = vcmask 523264   ;;  %vm1563_vm6 = vcmask 64512  }
  0x4d   :  { %v2646_v60 = vld [vmem:[%s5819_s14 + $0x60] sm:$0xff]  ;;  %v2647_v61 = vld [vmem:[%s5819_s14 + $0x68] sm:$0xff]  ;;  %v2644_v62 = vld [vmem:[%s5819_s14 + $0x50] sm:$0xff]  ;;  %vm3105_vm7 = vcmask 23552   ;;  %vm3133_vm8 = vcmask 1040384   ;;  %vm3134_vm9 = vcmask 1041408  }
  0x4e   :  { %1221 = vperm.xlu0 %3751, %v936_v54   ;;  %1226 = vperm.xlu1 %3752, %v937_v55   ;;  %v2645_v63 = vld [vmem:[%s5819_s14 + $0x58] sm:$0xff]  ;;  %v2642_v0 = vld [vmem:[%s5819_s14 + $0x40] sm:$0xff]  ;;  %v2643_v1 = vld [vmem:[%s5819_s14 + $0x48] sm:$0xff] }
  0x4f   :  { %v2640_v3 = vld [vmem:[%s5819_s14 + $0x30] sm:$0xff]  ;;  %v2641_v5 = vld [vmem:[%s5819_s14 + $0x38] sm:$0xff]  ;;  %v2638_v6 = vld [vmem:[%s5819_s14 + $0x20] sm:$0xff] }
  0x50   :  { %v2639_v7 = vld [vmem:[%s5819_s14 + $0x28] sm:$0xff]  ;;  %v2636_v8 = vld [vmem:[%s5819_s14 + $0x10] sm:$0xff]  ;;  %v2637_v9 = vld [vmem:[%s5819_s14 + $0x18] sm:$0xff] }
  0x51   :  { %v2634_v10 = vld [vmem:[%s5819_s14] sm:$0xff]  ;;  %v2635_v11 = vld [vmem:[%s5819_s14 + $0x8] sm:$0xff]  ;;  %v2927_v15 = vld [vmem:[%s5821_s16 + $0x10] sm:$0xff] }
  0x52   :  { %1211 = vperm.xlu0 %3751, %v934_v56   ;;  %1216 = vperm.xlu1 %3752, %v935_v57   ;;  %v2650_v12 = vld [vmem:[%s5819_s14 + $0x80] sm:$0x7]  ;;  %v2926_v14 = vld [vmem:[%s5821_s16 + $0x8] sm:$0xff]  ;;  %v2928_v16 = vld [vmem:[%s5821_s16 + $0x18] sm:$0xff] }
  0x53   :  { %v2925_v13 = vld [vmem:[%s5821_s16] sm:$0xff]  ;;  %v2930_v18 = vld [vmem:[%s5821_s16 + $0x28] sm:$0xff]  ;;  %v2931_v19 = vld [vmem:[%s5821_s16 + $0x30] sm:$0xff] }
  0x54   :  { %v2929_v17 = vld [vmem:[%s5821_s16 + $0x20] sm:$0xff]  ;;  %v2932_v20 = vld [vmem:[%s5821_s16 + $0x38] sm:$0xff]  ;;  %v2934_v22 = vld [vmem:[%s5821_s16 + $0x48] sm:$0xff] }
  0x55   :  { %v2933_v21 = vld [vmem:[%s5821_s16 + $0x40] sm:$0xff]  ;;  %v2935_v23 = vld [vmem:[%s5821_s16 + $0x50] sm:$0xff]  ;;  %v2936_v24 = vld [vmem:[%s5821_s16 + $0x58] sm:$0xff] }
  0x56   :  { %2723 = vperm.xlu0 %3751, %v2648_v58   ;;  %2728 = vperm.xlu1 %3752, %v2649_v59   ;;  %v2937_v25 = vld [vmem:[%s5821_s16 + $0x60] sm:$0xff]  ;;  %v2938_v26 = vld [vmem:[%s5821_s16 + $0x68] sm:$0xff]  ;;  %v2939_v27 = vld [vmem:[%s5821_s16 + $0x70] sm:$0xff] }
  0x57   :  { %v2940_v28 = vld [vmem:[%s5821_s16 + $0x78] sm:$0xff]  ;;  %v2941_v29 = vld [vmem:[%s5821_s16 + $0x80] sm:$0x7] }
  0x5a   :  { %2713 = vperm.xlu0 %3751, %v2646_v60   ;;  %2718 = vperm.xlu1 %3752, %v2647_v61  }
  0x5e   :  { %2703 = vperm.xlu0 %3751, %v2644_v62   ;;  %2708 = vperm.xlu1 %3752, %v2645_v63  }
  0x62   :  { %2693 = vperm.xlu0 %3751, %v2642_v0   ;;  %2698 = vperm.xlu1 %3752, %v2643_v1  }
  0x66   :  { %2683 = vperm.xlu0 %3751, %v2640_v3   ;;  %2688 = vperm.xlu1 %3752, %v2641_v5  }
  0x6a   :  { %2673 = vperm.xlu0 %3751, %v2638_v6   ;;  %2678 = vperm.xlu1 %3752, %v2639_v7  }
  0x6e   :  { %2663 = vperm.xlu0 %3751, %v2636_v8   ;;  %2668 = vperm.xlu1 %3752, %v2637_v9  }
  0x72   :  { %2653 = vperm.xlu0 %3751, %v2634_v10   ;;  %2658 = vperm.xlu1 %3752, %v2635_v11  }
  0x76   :  { %2733 = vperm.xlu0 %3751, %v2650_v12   ;;  %2944 = vperm.xlu1 %3752, %v2925_v13  }
  0x7a   :  { %2949 = vperm.xlu0 %3751, %v2926_v14   ;;  %2954 = vperm.xlu1 %3752, %v2927_v15  }
  0x7e   :  { %2959 = vperm.xlu0 %3751, %v2928_v16   ;;  %2964 = vperm.xlu1 %3752, %v2929_v17  }
  0x80   :  { %v4269_v39 = vpop.permute.xlu0 %180  ;;  %v4273_v41 = vpop.permute.xlu1 %170 }
  0x82   :  { %2969 = vperm.xlu0 %3751, %v2930_v18   ;;  %2974 = vperm.xlu1 %3752, %v2931_v19  }
  0x84   :  { %v4279_v47 = vpop.permute.xlu0 %185  ;;  %v4281_v49 = vpop.permute.xlu1 %175 }
  0x86   :  { %2979 = vperm.xlu0 %3751, %v2932_v20   ;;  %2984 = vperm.xlu1 %3752, %v2933_v21  }
  0x89   :  { %v4289_v55 = vpop.permute.xlu0 %160  ;;  %v166_v57 = vpop.permute.xlu1 %165 }
  0x8a   :  { %2989 = vperm.xlu0 %3751, %v2934_v22   ;;  %2994 = vperm.xlu1 %3752, %v2935_v23  }
  0x8d   :  { %v4297_v63 = vpop.permute.xlu0 %150  ;;  %v4299_v1 = vpop.permute.xlu1 %155 }
  0x8e   :  { %2999 = vperm.xlu0 %3751, %v2936_v24   ;;  %3004 = vperm.xlu1 %3752, %v2937_v25  }
  0x91   :  { %v4301_v9 = vpop.permute.xlu0 %140  ;;  %v4303_v11 = vpop.permute.xlu1 %145 }
  0x92   :  { %3009 = vperm.xlu0 %3751, %v2938_v26   ;;  %3014 = vperm.xlu1 %3752, %v2939_v27  }
  0x95   :  { %v4305_v17 = vpop.permute.xlu0 %130  ;;  %v4307_v19 = vpop.permute.xlu1 %135 }
  0x96   :  { %3019 = vperm.xlu0 %3751, %v2940_v28   ;;  %3024 = vperm.xlu1 %3752, %v2941_v29   ;;  %5848 = vst [vmem:[#allocation10_spill] sm:$0xff] %v4305_v17 }
  0xd0   :  { %v4259_v30 = vpop.f32.mrf.mxu0  ;;  %v4261_v31 = vpop.f32.mrf.mxu1 }
  0xd1   :  { %5843 = vst [vmem:[#allocation5_spill] sm:$0xff] %v4259_v30  ;;  %5844 = vst [vmem:[#allocation6_spill] sm:$0xff] %v4261_v31 }
  0xd2   :  { %v305_v32 = vpop.f32.mrf.mxu0  ;;  %v398_v33 = vpop.f32.mrf.mxu1 }
  0xd3   :  { %v4310_v20 = vadd.f32 %v305_v32, %v4305_v17  ;;  %v4313_v21 = vadd.f32 %v398_v33, %v4305_v17 }
  0xd4   :  { %v4263_v34 = vpop.f32.mrf.mxu0  ;;  %v4265_v35 = vpop.f32.mrf.mxu1 }
  0xd5   :  { %5845 = vst [vmem:[#allocation7_spill] sm:$0xff] %v4263_v34  ;;  %5846 = vst [vmem:[#allocation8_spill] sm:$0xff] %v4265_v35 }
  0xd6   :  { %v309_v36 = vpop.f32.mrf.mxu0  ;;  %v402_v37 = vpop.f32.mrf.mxu1  ;;  %5849 = vst [vmem:[#allocation11_spill] sm:$0xff] %v4310_v20  ;;  %5850 = vst [vmem:[#allocation12_spill] sm:$0xff] %v4313_v21 }
  0xd7   :  { %v4316_v23 = vadd.f32 %v309_v36, %v4307_v19  ;;  %v4319_v24 = vadd.f32 %v402_v37, %v4307_v19 }
  0xd8   :  { %v4267_v38 = vpop.f32.mrf.mxu0  ;;  %v4271_v40 = vpop.f32.mrf.mxu1 }
  0xd9   :  { %5847 = vst [vmem:[#allocation9_spill] sm:$0xff] %v4271_v40  ;;  %5851 = vst [vmem:[#allocation13_spill] sm:$0xff] %v4316_v23 }
  0xda   :  { %v315_v42 = vpop.f32.mrf.mxu0  ;;  %v408_v43 = vpop.f32.mrf.mxu1  ;;  %5852 = vst [vmem:[#allocation14_spill] sm:$0xff] %v4319_v24 }
  0xdb   :  { %v4322_v25 = vadd.f32 %v315_v42, %v4301_v9  ;;  %v4325_v26 = vadd.f32 %v408_v43, %v4301_v9 }
  0xdc   :  { %v4275_v44 = vpop.f32.mrf.mxu0  ;;  %v4277_v45 = vpop.f32.mrf.mxu1 }
  0xdd   :  { %5853 = vst [vmem:[#allocation15_spill] sm:$0xff] %v4322_v25  ;;  %5854 = vst [vmem:[#allocation16_spill] sm:$0xff] %v4325_v26 }
  0xde   :  { %v319_v46 = vpop.f32.mrf.mxu0  ;;  %v412_v48 = vpop.f32.mrf.mxu1 }
  0xdf   :  { %v4328_v28 = vadd.f32 %v319_v46, %v4303_v11  ;;  %v4331_v29 = vadd.f32 %v412_v48, %v4303_v11 }
  0xe0   :  { %v4283_v50 = vpop.f32.mrf.mxu0  ;;  %v4285_v51 = vpop.f32.mrf.mxu1 }
  0xe2   :  { %v325_v52 = vpop.f32.mrf.mxu0  ;;  %v418_v53 = vpop.f32.mrf.mxu1 }
  0xe3   :  { %v4334_v32 = vadd.f32 %v325_v52, %v4297_v63  ;;  %v4337_v33 = vadd.f32 %v418_v53, %v4297_v63 }
  0xe4   :  { %v4287_v54 = vpop.f32.mrf.mxu0  ;;  %v4291_v56 = vpop.f32.mrf.mxu1 }
  0xe6   :  { %v329_v58 = vpop.f32.mrf.mxu0  ;;  %v422_v59 = vpop.f32.mrf.mxu1 }
  0xe7   :  { %v4340_v37 = vadd.f32 %v329_v58, %v4299_v1  ;;  %v4343_v42 = vadd.f32 %v422_v59, %v4299_v1 }
  0xe8   :  { %v4293_v60 = vpop.f32.mrf.mxu0  ;;  %v4295_v61 = vpop.f32.mrf.mxu1 }
  0xea   :  { %v335_v62 = vpop.f32.mrf.mxu0  ;;  %v428_v0 = vpop.f32.mrf.mxu1 }
  0xeb   :  { %v4346_v43 = vadd.f32 %v335_v62, %v4289_v55  ;;  %v4349_v46 = vadd.f32 %v428_v0, %v4289_v55 }
  0xec   :  { %v337_v3 = vpop.f32.mrf.mxu0  ;;  %v430_v5 = vpop.f32.mrf.mxu1 }
  0xed   :  { %v4351_v4 = vadd.f32 %v337_v3, %v166_v57  ;;  %v4353_v52 = vadd.f32 %v430_v5, %v166_v57 }
  0xee   :  { %v339_v6 = vpop.f32.mrf.mxu0  ;;  %v432_v7 = vpop.f32.mrf.mxu1 }
  0xef   :  { %v4355_v53 = vadd.f32 %v339_v6, %v166_v57  ;;  %v4357_v2 = vadd.f32 %v432_v7, %v166_v57 }
  0xf0   :  { %v343_v8 = vpop.f32.mrf.mxu0  ;;  %v436_v10 = vpop.f32.mrf.mxu1 }
  0xf1   :  { %v344_v21 = vadd.f32 %v343_v8, %v4273_v41 }
  0xf2   :  { %v345_v12 = vpop.f32.mrf.mxu0  ;;  %v438_v13 = vpop.f32.mrf.mxu1 }
  0xf3   :  { %v346_v7 = vadd.f32 %v345_v12, %v4273_v41  ;;  %v439_v8 = vadd.f32 %v438_v13, %v4273_v41 }
  0xf4   :  { %v347_v14 = vpop.f32.mrf.mxu0  ;;  %v440_v15 = vpop.f32.mrf.mxu1 }
  0xf5   :  { %v490_v40 = vmax.f32 %v439_v8, 0.0  ;;  %v5857_v8 = vld [vmem:[#allocation15_spill] sm:$0xff] }
  0xf6   :  { %v349_v16 = vpop.f32.mrf.mxu0  ;;  %v442_v18 = vpop.f32.mrf.mxu1 }
  0xf7   :  { %v350_v59 = vadd.f32 %v349_v16, %v4281_v49  ;;  %v443_v31 = vadd.f32 %v442_v18, %v4281_v49  ;;  %v441_v18 = vadd.f32 %v440_v15, %v4281_v49  ;;  %v484_v15 = vmax.f32 %v4355_v53, 0.0 }
  0xf8   :  { %v353_v22 = vpop.f32.mrf.mxu0  ;;  %v446_v27 = vpop.f32.mrf.mxu1  ;;  %v468_v53 = vmax.f32 %v4328_v28, 0.0 }
  0xf9   :  { %v354_v3 = vadd.f32 %v353_v22, %v4269_v39  ;;  %v447_v16 = vadd.f32 %v446_v27, %v4269_v39  ;;  %v494_v26 = vmax.f32 %v443_v31, 0.0  ;;  %v488_v27 = vmax.f32 %v346_v7, 0.0 }
  0xfa   :  { %v355_v36 = vpop.f32.mrf.mxu0  ;;  %v448_v48 = vpop.f32.mrf.mxu1  ;;  %v334_v31 = vadd.f32 %v4293_v60, %v4289_v55  ;;  %v421_v60 = vadd.f32 %v4291_v56, %v4299_v1 }
  0xfb   :  { %v356_v62 = vadd.f32 %v355_v36, %v4269_v39  ;;  %v449_v5 = vadd.f32 %v448_v48, %v4269_v39  ;;  %v492_v48 = vmax.f32 %v350_v59, 0.0  ;;  %v495_v12 = vmax.f32 %v354_v3, 0.0 }
  0xfc   :  { %v357_v58 = vpop.f32.mrf.mxu0  ;;  %v450_v0 = vpop.f32.mrf.mxu1  ;;  %v437_v39 = vadd.f32 %v436_v10, %v4273_v41  ;;  %v486_v59 = vmax.f32 %v4357_v2, 0.0  ;;  %v522_v41 = vpack.c.bf16 %v494_v26, %v490_v40  ;;  %v328_v10 = vadd.f32 %v4287_v54, %v4299_v1 }
  0xfd   :  { %v358_v20 = vadd.f32 %v357_v58, %v4279_v47  ;;  %v451_v6 = vadd.f32 %v450_v0, %v4279_v47  ;;  %v348_v58 = vadd.f32 %v347_v14, %v4281_v49  ;;  %v496_v17 = vmax.f32 %v356_v62, 0.0 }
  0xfe   :  { %v359_v57 = vpop.f32.mrf.mxu0  ;;  %v452_v24 = vpop.f32.mrf.mxu1  ;;  %v498_v35 = vmax.f32 %v449_v5, 0.0  ;;  %v487_v62 = vmax.f32 %v344_v21, 0.0  ;;  %v482_v2 = vmax.f32 %v4349_v46, 0.0  ;;  %v483_v21 = vmax.f32 %v4351_v4, 0.0 }
  0xff   :  { %v360_v36 = vadd.f32 %v359_v57, %v4279_v47  ;;  %v499_v30 = vmax.f32 %v358_v20, 0.0  ;;  %v453_v22 = vadd.f32 %v452_v24, %v4279_v47  ;;  %v501_v0 = vmax.f32 %v451_v6, 0.0 }
 0x100   :  { %v497_v57 = vmax.f32 %v447_v16, 0.0  ;;  %v491_v14 = vmax.f32 %v348_v58, 0.0  ;;  %v493_v47 = vmax.f32 %v441_v18, 0.0  ;;  %v520_v24 = vpack.c.bf16 %v492_v48, %v488_v27  ;;  %v5860_v48 = vld [vmem:[#allocation13_spill] sm:$0xff]  ;;  %v5861_v27 = vld [vmem:[#allocation10_spill] sm:$0xff] }
 0x101   :  { %v500_v23 = vmax.f32 %v360_v36, 0.0  ;;  %v502_v13 = vmax.f32 %v453_v22, 0.0  ;;  %v523_v34 = vpack.c.bf16 %v499_v30, %v495_v12  ;;  %v427_v30 = vadd.f32 %v4295_v61, %v4289_v55  ;;  %v5858_v36 = vld [vmem:[#allocation8_spill] sm:$0xff] }
 0x102   :  { %v525_v20 = vpack.c.bf16 %v501_v0, %v497_v57  ;;  %v476_v40 = vmax.f32 %v4340_v37, 0.0  ;;  %v485_v54 = vmax.f32 %v4353_v52, 0.0  ;;  %v324_v61 = vadd.f32 %v4283_v50, %v4297_v63 }
 0x103   :  { %v524_v25 = vpack.c.bf16 %v500_v23, %v496_v17  ;;  %v526_v49 = vpack.c.bf16 %v502_v13, %v498_v35  ;;  %v480_v35 = vmax.f32 %v4346_v43, 0.0  ;;  %v489_v17 = vmax.f32 %v437_v39, 0.0 }
 0x104   :  { %v479_v26 = vmax.f32 %v334_v31, 0.0  ;;  %v518_v56 = vpack.c.bf16 %v486_v59, %v482_v2  ;;  %v318_v1 = vadd.f32 %v4275_v44, %v4303_v11  ;;  %v417_v4 = vadd.f32 %v4285_v51, %v4297_v63 }
 0x105   :  { %640 = vmatprep.subr.bf16.mxu0 %v524_v25  ;;  %733 = vmatprep.subr.bf16.mxu1 %v526_v49  ;;  %v521_v23 = vpack.c.bf16 %v493_v47, %v489_v17  ;;  %v516_v55 = vpack.c.bf16 %v484_v15, %v480_v35  ;;  %v478_v25 = vmax.f32 %v4343_v42, 0.0  ;;  %v472_v37 = vmax.f32 %v4334_v32, 0.0 }
 0x106   :  { %641 = vmatpush1.bf16.msra.mxu0 %v523_v34  ;;  %734 = vmatpush1.bf16.msra.mxu1 %v525_v20  ;;  %v519_v34 = vpack.c.bf16 %v491_v14, %v487_v62  ;;  %v481_v43 = vmax.f32 %v427_v30, 0.0  ;;  %v411_v46 = vadd.f32 %v4277_v45, %v4303_v11  ;;  %v474_v50 = vmax.f32 %v4337_v33, 0.0  ;;  %v5855_v45 = vld [vmem:[#allocation7_spill] sm:$0xff]  ;;  %v5856_v33 = vld [vmem:[#allocation9_spill] sm:$0xff]  ;;  %v5863_v14 = vld [vmem:[#allocation14_spill] sm:$0xff] }
 0x107   :  { %642 = vmatprep.subr.bf16.mxu0 %v520_v24  ;;  %735 = vmatprep.subr.bf16.mxu1 %v522_v41  ;;  %v475_v42 = vmax.f32 %v328_v10, 0.0  ;;  %v515_v52 = vpack.c.bf16 %v483_v21, %v479_v26  ;;  %v477_v3 = vmax.f32 %v421_v60, 0.0  ;;  %v512_v5 = vpack.c.bf16 %v476_v40, %v472_v37  ;;  %v5865_v24 = vld [vmem:[#allocation11_spill] sm:$0xff]  ;;  %v5866_v62 = vld [vmem:[#allocation12_spill] sm:$0xff] }
 0x108   :  { %v517_v44 = vpack.c.bf16 %v485_v54, %v481_v43  ;;  %v314_v51 = vadd.f32 %v4267_v38, %v4301_v9  ;;  %v470_v63 = vmax.f32 %v4331_v29, 0.0  ;;  %v471_v32 = vmax.f32 %v324_v61, 0.0  ;;  %v5859_v38 = vld [vmem:[#allocation16_spill] sm:$0xff]  ;;  %v3766_v61 = vld [vmem:[%s5810_s5 + $0x8] sm:$0xff]  }
 0x109   :  { %v514_v6 = vpack.c.bf16 %v478_v25, %v474_v50  ;;  %v308_v11 = vadd.f32 %v5855_v45, %v4307_v19  ;;  %v407_v7 = vadd.f32 %v5856_v33, %v4301_v9  ;;  %v464_v16 = vmax.f32 %v5857_v8, 0.0  ;;  %v5862_v9 = vld [vmem:[#allocation5_spill] sm:$0xff]  ;;  %v3767_v25 = vld [vmem:[%s5810_s5 + $0x10] sm:$0xff]   ;;  %v3768_v26 = vld [vmem:[%s5810_s5 + $0x18] sm:$0xff]  }
 0x10a   :  { %643 = vmatpush1.bf16.msra.mxu0 %v519_v34  ;;  %736 = vmatpush1.bf16.msra.mxu1 %v521_v23  ;;  %v473_v28 = vmax.f32 %v417_v4, 0.0  ;;  %v401_v58 = vadd.f32 %v5858_v36, %v4307_v19  ;;  %v466_v18 = vmax.f32 %v5859_v38, 0.0  ;;  %v467_v29 = vmax.f32 %v318_v1, 0.0  ;;  %v5864_v19 = vld [vmem:[#allocation6_spill] sm:$0xff]  ;;  %v3765_v23 = vld [vmem:[%s5810_s5] sm:$0xff]  }
 0x10b   :  { %644 = vmatprep.subr.bf16.mxu0 %v516_v55  ;;  %737 = vmatprep.subr.bf16.mxu1 %v518_v56  ;;  %v511_v22 = vpack.c.bf16 %v475_v42, %v471_v32  ;;  %v460_v0 = vmax.f32 %v5860_v48, 0.0  ;;  %v469_v12 = vmax.f32 %v411_v46, 0.0  ;;  %v508_v39 = vpack.c.bf16 %v468_v53, %v464_v16  ;;  %v3769_v56 = vld [vmem:[%s5810_s5 + $0x20] sm:$0xff]   ;;  %v3770_v1 = vld [vmem:[%s5810_s5 + $0x28] sm:$0xff]   ;;  %v540_v46 = vpop.permute.xlu0 %539 }
 0x10c   :  { %v513_v13 = vpack.c.bf16 %v477_v3, %v473_v28  ;;  %v304_v57 = vadd.f32 %v5862_v9, %v5861_v27  ;;  %v462_v49 = vmax.f32 %v5863_v14, 0.0  ;;  %v463_v15 = vmax.f32 %v314_v51, 0.0 }
 0x10d   :  { %v510_v47 = vpack.c.bf16 %v470_v63, %v466_v18  ;;  %v397_v20 = vadd.f32 %v5864_v19, %v5861_v27  ;;  %v456_v31 = vmax.f32 %v5865_v24, 0.0  ;;  %v465_v59 = vmax.f32 %v407_v7, 0.0 }
 0x10e   :  { %645 = vmatpush1.bf16.msra.mxu0 %v515_v52  ;;  %738 = vmatpush1.bf16.msra.mxu1 %v517_v44  ;;  %v458_v41 = vmax.f32 %v5866_v62, 0.0  ;;  %v459_v10 = vmax.f32 %v308_v11, 0.0  ;;  %v507_v30 = vpack.c.bf16 %v467_v29, %v463_v15  ;;  %v461_v35 = vmax.f32 %v401_v58, 0.0  ;;  %v545_v52 = vpop.permute.xlu1 %544 }
 0x10f   :  { %646 = vmatprep.subr.bf16.mxu0 %v512_v5  ;;  %739 = vmatprep.subr.bf16.mxu1 %v514_v6  ;;  %v509_v17 = vpack.c.bf16 %v469_v12, %v465_v59  ;;  %v504_v60 = vpack.c.bf16 %v460_v0, %v456_v31  ;;  %v455_v2 = vmax.f32 %v304_v57, 0.0  ;;  %v457_v34 = vmax.f32 %v397_v20, 0.0  ;;  %v4463_v51 = vpop.permute.xlu0 %559 }
 0x110   :  { %v506_v21 = vpack.c.bf16 %v462_v49, %v458_v41  ;;  %v5867_v55 = vmov 0  }
 0x111   :  { %v503_v40 = vpack.c.bf16 %v459_v10, %v455_v2  ;;  %v505_v54 = vpack.c.bf16 %v461_v35, %v457_v34 }
 0x112   :  { %647 = vmatpush1.bf16.msra.mxu0 %v511_v22  ;;  %740 = vmatpush1.bf16.msra.mxu1 %v513_v13  ;;  %v4465_v6 = vpop.permute.xlu1 %564 }
 0x113   :  { %648 = vmatprep.subr.bf16.mxu0 %v508_v39  ;;  %741 = vmatprep.subr.bf16.mxu1 %v510_v47  ;;  %v4467_v8 = vpop.permute.xlu0 %579 }
 0x116   :  { %649 = vmatpush1.bf16.msra.mxu0 %v507_v30  ;;  %742 = vmatpush1.bf16.msra.mxu1 %v509_v17  ;;  %v4469_v36 = vpop.permute.xlu1 %584 }
 0x117   :  { %650 = vmatprep.subr.bf16.mxu0 %v504_v60  ;;  %743 = vmatprep.subr.bf16.mxu1 %v506_v21  ;;  %v530_v22 = vpop.permute.xlu0 %529 }
 0x11a   :  { %651 = vmatpush1.bf16.msra.mxu0 %v503_v40  ;;  %744 = vmatpush1.bf16.msra.mxu1 %v505_v54  ;;  %v535_v13 = vpop.permute.xlu1 %534 }
 0x11d   :  { %3571 = vmatmul.mubr.msk.bf16.vlgmr.msra.gmra.mxu0 %vm617_vm3, %v3765_v23  ;;  %3577 = vmatmul.mubr.msk.bf16.vlgmr.msra.gmra.mxu1 %vm617_vm3, %v3765_v23 }
 0x11e   :  { %678 = vmatprep.mubr.bf16.mxu0 %v5867_v55  ;;  %771 = vmatprep.mubr.bf16.mxu1 %v5867_v55 }
 0x125   :  { %3572 = vmatmul.mubr.msk.bf16.gmra.mxu0 %vm617_vm3, %v3766_v61  ;;  %3578 = vmatmul.mubr.msk.bf16.gmra.mxu1 %vm617_vm3, %v3766_v61 }
 0x126   :  { %688 = vmatprep.mubr.bf16.mxu0 %v5867_v55  ;;  %781 = vmatprep.mubr.bf16.mxu1 %v5867_v55 }
 0x12d   :  { %3573 = vmatmul.mubr.msk.bf16.gmra.mxu0 %vm617_vm3, %v3767_v25  ;;  %3579 = vmatmul.mubr.msk.bf16.gmra.mxu1 %vm617_vm3, %v3767_v25 }
 0x12e   :  { %698 = vmatprep.mubr.bf16.mxu0 %v5867_v55  ;;  %791 = vmatprep.mubr.bf16.mxu1 %v5867_v55 }
 0x135   :  { %3574 = vmatmul.mubr.msk.bf16.gmra.mxu0 %vm617_vm3, %v3768_v26  ;;  %3580 = vmatmul.mubr.msk.bf16.gmra.mxu1 %vm617_vm3, %v3768_v26  ;;  %v550_v26 = vpop.permute.xlu0 %549 }
 0x136   :  { %708 = vmatprep.mubr.bf16.mxu0 %v5867_v55  ;;  %801 = vmatprep.mubr.bf16.mxu1 %v5867_v55 }
 0x13d   :  { %3575 = vmatmul.mubr.msk.bf16.gmra.mxu0 %vm617_vm3, %v3769_v56  ;;  %3581 = vmatmul.mubr.msk.bf16.gmra.mxu1 %vm617_vm3, %v3769_v56 }
 0x13e   :  { %718 = vmatprep.mubr.bf16.mxu0 %v5867_v55  ;;  %811 = vmatprep.mubr.bf16.mxu1 %v5867_v55 }
 0x145   :  { %3576 = vmatmul.mubr.msk.bf16.gmra.mxu0 %vm617_vm3, %v3770_v1  ;;  %3582 = vmatmul.mubr.msk.bf16.gmra.mxu1 %vm617_vm3, %v3770_v1 }
 0x146   :  { %1047 = vmatprep.mubr.bf16.mxu0 %v5867_v55  ;;  %1120 = vmatprep.mubr.bf16.mxu1 %v5867_v55 }
 0x1dd   :  { %v670_v4 = vpop.f32.mrf.mxu0  ;;  %v763_v37 = vpop.f32.mrf.mxu1 }
 0x1de   :  { %v4471_v0 = vadd.f32 %v670_v4, %v530_v22  ;;  %v4473_v39 = vadd.f32 %v763_v37, %v530_v22 }
 0x1df   :  { %v672_v43 = vpop.f32.mrf.mxu0  ;;  %v765_v50 = vpop.f32.mrf.mxu1 }
 0x1e0   :  { %v4475_v27 = vadd.f32 %v672_v43, %v530_v22  ;;  %v4477_v9 = vadd.f32 %v765_v50, %v530_v22  ;;  %v822_v62 = vmax.f32 %v4471_v0, 0.0  ;;  %v824_v17 = vmax.f32 %v4473_v39, 0.0  ;;  %v3771_v39 = vld [vmem:[%s5812_s7] sm:$0xff]  }
 0x1e1   :  { %v674_v42 = vpop.f32.mrf.mxu0  ;;  %v767_v53 = vpop.f32.mrf.mxu1 }
 0x1e2   :  { %v4479_v14 = vadd.f32 %v674_v42, %v535_v13  ;;  %v4481_v49 = vadd.f32 %v767_v53, %v535_v13  ;;  %v823_v60 = vmax.f32 %v4475_v27, 0.0  ;;  %v825_v2 = vmax.f32 %v4477_v9, 0.0 }
 0x1e3   :  { %v676_v3 = vpop.f32.mrf.mxu0  ;;  %v769_v44 = vpop.f32.mrf.mxu1 }
 0x1e4   :  { %v4483_v15 = vadd.f32 %v676_v3, %v535_v13  ;;  %v4485_v47 = vadd.f32 %v769_v44, %v535_v13  ;;  %v826_v40 = vmax.f32 %v4479_v14, 0.0  ;;  %v828_v54 = vmax.f32 %v4481_v49, 0.0 }
 0x1e5   :  { %v680_v5 = vpop.f32.mrf.mxu0  ;;  %v773_v63 = vpop.f32.mrf.mxu1 }
 0x1e6   :  { %v4487_v20 = vadd.f32 %v680_v5, %v540_v46  ;;  %v4489_v24 = vadd.f32 %v773_v63, %v540_v46  ;;  %v827_v23 = vmax.f32 %v4483_v15, 0.0  ;;  %v829_v61 = vmax.f32 %v4485_v47, 0.0 }
 0x1e7   :  { %v682_v32 = vpop.f32.mrf.mxu0  ;;  %v775_v45 = vpop.f32.mrf.mxu1 }
 0x1e8   :  { %v4491_v31 = vadd.f32 %v682_v32, %v540_v46  ;;  %v4494_v41 = vadd.f32 %v775_v45, %v540_v46  ;;  %v830_v56 = vmax.f32 %v4487_v20, 0.0  ;;  %v832_v1 = vmax.f32 %v4489_v24, 0.0  ;;  %v555_v46 = vpop.permute.xlu1 %554 }
 0x1e9   :  { %v684_v11 = vpop.f32.mrf.mxu0  ;;  %v777_v33 = vpop.f32.mrf.mxu1 }
 0x1ea   :  { %v4496_v10 = vadd.f32 %v684_v11, %v545_v52  ;;  %v4498_v30 = vadd.f32 %v777_v33, %v545_v52  ;;  %v831_v4 = vmax.f32 %v4491_v31, 0.0  ;;  %v833_v50 = vmax.f32 %v4494_v41, 0.0 }
 0x1eb   :  { %v686_v7 = vpop.f32.mrf.mxu0  ;;  %v779_v16 = vpop.f32.mrf.mxu1 }
 0x1ec   :  { %v4503_v21 = vadd.f32 %v686_v7, %v545_v52  ;;  %v4512_v37 = vadd.f32 %v779_v16, %v545_v52  ;;  %v834_v42 = vmax.f32 %v4496_v10, 0.0  ;;  %v836_v53 = vmax.f32 %v4498_v30, 0.0 }
 0x1ed   :  { %v690_v28 = vpop.f32.mrf.mxu0  ;;  %v783_v58 = vpop.f32.mrf.mxu1 }
 0x1ee   :  { %v691_v3 = vadd.f32 %v690_v28, %v550_v26  ;;  %v835_v5 = vmax.f32 %v4503_v21, 0.0  ;;  %v4518_v33 = vadd.f32 %v783_v58, %v550_v26  ;;  %v837_v0 = vmax.f32 %v4512_v37, 0.0 }
 0x1ef   :  { %v692_v38 = vpop.f32.mrf.mxu0  ;;  %v785_v18 = vpop.f32.mrf.mxu1 }
 0x1f0   :  { %v693_v63 = vadd.f32 %v692_v38, %v550_v26  ;;  %v786_v32 = vadd.f32 %v785_v18, %v550_v26  ;;  %v838_v14 = vmax.f32 %v691_v3, 0.0  ;;  %v840_v47 = vmax.f32 %v4518_v33, 0.0  ;;  %v570_v3 = vpop.permute.xlu0 %569  ;;  %v3773_v33 = vld [vmem:[%s5812_s7 + $0x10] sm:$0xff]  }
 0x1f1   :  { %v694_v29 = vpop.f32.mrf.mxu0  ;;  %v787_v48 = vpop.f32.mrf.mxu1 }
 0x1f2   :  { %v695_v45 = vadd.f32 %v694_v29, %v555_v46  ;;  %v788_v52 = vadd.f32 %v787_v48, %v555_v46  ;;  %v839_v48 = vmax.f32 %v693_v63, 0.0 }
 0x1f3   :  { %v696_v12 = vpop.f32.mrf.mxu0  ;;  %v789_v57 = vpop.f32.mrf.mxu1 }
 0x1f4   :  { %v697_v7 = vadd.f32 %v696_v12, %v555_v46  ;;  %v790_v16 = vadd.f32 %v789_v57, %v555_v46  ;;  %v841_v12 = vmax.f32 %v786_v32, 0.0  ;;  %v842_v57 = vmax.f32 %v695_v45, 0.0 }
 0x1f5   :  { %v700_v19 = vpop.f32.mrf.mxu0  ;;  %v793_v59 = vpop.f32.mrf.mxu1 }
 0x1f6   :  { %v701_v13 = vadd.f32 %v700_v19, %v4463_v51  ;;  %v794_v27 = vadd.f32 %v793_v59, %v4463_v51  ;;  %v844_v19 = vmax.f32 %v788_v52, 0.0  ;;  %v843_v59 = vmax.f32 %v697_v7, 0.0 }
 0x1f7   :  { %v702_v35 = vpop.f32.mrf.mxu0  ;;  %v795_v34 = vpop.f32.mrf.mxu1  ;;  %v845_v41 = vmax.f32 %v790_v16, 0.0  ;;  %v4534_v63 = vadd.f32 %v841_v12, %v825_v2  ;;  %v4536_v32 = vadd.f32 %v842_v57, %v826_v40 }
 0x1f8   :  { %v703_v28 = vadd.f32 %v702_v35, %v4463_v51  ;;  %v796_v38 = vadd.f32 %v795_v34, %v4463_v51  ;;  %v846_v30 = vmax.f32 %v701_v13, 0.0  ;;  %v848_v35 = vmax.f32 %v794_v27, 0.0  ;;  %v575_v13 = vpop.permute.xlu1 %574 }
 0x1f9   :  { %v704_v25 = vpop.f32.mrf.mxu0  ;;  %v797_v43 = vpop.f32.mrf.mxu1  ;;  %v4538_v7 = vadd.f32 %v844_v19, %v828_v54  ;;  %v875_v16 = vadd.f32 %v843_v59, %v827_v23 }
 0x1fa   :  { %v705_v18 = vadd.f32 %v704_v25, %v4465_v6  ;;  %v798_v58 = vadd.f32 %v797_v43, %v4465_v6  ;;  %v847_v51 = vmax.f32 %v703_v28, 0.0  ;;  %v4530_v25 = vadd.f32 %v838_v14, %v822_v62 }
 0x1fb   :  { %v706_v44 = vpop.f32.mrf.mxu0  ;;  %v799_v11 = vpop.f32.mrf.mxu1  ;;  %v849_v26 = vmax.f32 %v796_v38, 0.0  ;;  %v878_v27 = vadd.f32 %v846_v30, %v830_v56 }
 0x1fc   :  { %v707_v49 = vadd.f32 %v706_v44, %v4465_v6  ;;  %v800_v21 = vadd.f32 %v799_v11, %v4465_v6  ;;  %v850_v37 = vmax.f32 %v705_v18, 0.0  ;;  %v852_v43 = vmax.f32 %v798_v58, 0.0 }
 0x1fd   :  { %v710_v22 = vpop.f32.mrf.mxu0  ;;  %v803_v9 = vpop.f32.mrf.mxu1  ;;  %v4532_v44 = vadd.f32 %v839_v48, %v823_v60  ;;  %v877_v6 = vadd.f32 %v845_v41, %v829_v61  ;;  %v880_v60 = vadd.f32 %v848_v35, %v832_v1  ;;  %v879_v2 = vadd.f32 %v847_v51, %v831_v4 }
 0x1fe   :  { %v851_v45 = vmax.f32 %v707_v49, 0.0  ;;  %v4540_v11 = vadd.f32 %v710_v22, %v570_v3  ;;  %v853_v40 = vmax.f32 %v800_v21, 0.0  ;;  %v881_v14 = vadd.f32 %v849_v26, %v833_v50 }
 0x1ff   :  { %v712_v29 = vpop.f32.mrf.mxu0  ;;  %v805_v15 = vpop.f32.mrf.mxu1  ;;  %v882_v54 = vadd.f32 %v850_v37, %v834_v42  ;;  %v884_v38 = vadd.f32 %v852_v43, %v836_v53  ;;  %v804_v18 = vadd.f32 %v803_v9, %v570_v3 }
 0x200   :  { %v883_v22 = vadd.f32 %v851_v45, %v835_v5  ;;  %v854_v56 = vmax.f32 %v4540_v11, 0.0  ;;  %v713_v24 = vadd.f32 %v712_v29, %v570_v3  ;;  %v885_v12 = vadd.f32 %v853_v40, %v837_v0 }
 0x201   :  { %v714_v10 = vpop.f32.mrf.mxu0  ;;  %v807_v34 = vpop.f32.mrf.mxu1  ;;  %v806_v50 = vadd.f32 %v805_v15, %v570_v3 }
 0x202   :  { %v715_v9 = vadd.f32 %v714_v10, %v575_v13  ;;  %v808_v57 = vadd.f32 %v807_v34, %v575_v13  ;;  %v855_v26 = vmax.f32 %v713_v24, 0.0 }
 0x203   :  { %v716_v46 = vpop.f32.mrf.mxu0  ;;  %v809_v52 = vpop.f32.mrf.mxu1  ;;  %v857_v37 = vmax.f32 %v806_v50, 0.0 }
 0x204   :  { %v717_v23 = vadd.f32 %v716_v46, %v575_v13  ;;  %v810_v58 = vadd.f32 %v809_v52, %v575_v13  ;;  %v858_v34 = vmax.f32 %v715_v9, 0.0  ;;  %v860_v46 = vmax.f32 %v808_v57, 0.0 }
 0x205   :  { %v720_v62 = vpop.f32.mrf.mxu0  ;;  %v813_v28 = vpop.f32.mrf.mxu1  ;;  %v889_v24 = vadd.f32 %v4534_v63, %v857_v37 }
 0x206   :  { %v721_v1 = vadd.f32 %v720_v62, %v4467_v8  ;;  %v814_v42 = vadd.f32 %v813_v28, %v4467_v8  ;;  %v859_v49 = vmax.f32 %v717_v23, 0.0  ;;  %v861_v41 = vmax.f32 %v810_v58, 0.0 }
 0x207   :  { %v722_v61 = vpop.f32.mrf.mxu0  ;;  %v815_v20 = vpop.f32.mrf.mxu1  ;;  %v856_v58 = vmax.f32 %v804_v18, 0.0 }
 0x208   :  { %v723_v48 = vadd.f32 %v722_v61, %v4467_v8  ;;  %v816_v31 = vadd.f32 %v815_v20, %v4467_v8  ;;  %v862_v21 = vmax.f32 %v721_v1, 0.0  ;;  %v864_v43 = vmax.f32 %v814_v42, 0.0  ;;  %v980_v42 = vpop.permute.xlu1 %979 }
 0x209   :  { %v724_v4 = vpop.f32.mrf.mxu0  ;;  %v817_v5 = vpop.f32.mrf.mxu1  ;;  %v891_v52 = vadd.f32 %v875_v16, %v859_v49  ;;  %v893_v40 = vadd.f32 %v877_v6, %v861_v41  ;;  %v890_v1 = vadd.f32 %v4536_v32, %v858_v34  ;;  %v872_v16 = vadd.f32 %v840_v47, %v824_v17  ;;  %v3772_v17 = vld [vmem:[%s5812_s7 + $0x8] sm:$0xff]   ;;  %v3774_v47 = vld [vmem:[%s5812_s7 + $0x18] sm:$0xff]  }
 0x20a   :  { %v725_v53 = vadd.f32 %v724_v4, %v4469_v36  ;;  %v818_v19 = vadd.f32 %v817_v5, %v4469_v36  ;;  %v863_v29 = vmax.f32 %v723_v48, 0.0  ;;  %v865_v0 = vmax.f32 %v816_v31, 0.0 }
 0x20b   :  { %v726_v59 = vpop.f32.mrf.mxu0  ;;  %v819_v51 = vpop.f32.mrf.mxu1  ;;  %v894_v28 = vadd.f32 %v878_v27, %v862_v21  ;;  %v887_v48 = vadd.f32 %v4532_v44, %v855_v26  ;;  %v892_v6 = vadd.f32 %v4538_v7, %v860_v46  ;;  %v886_v44 = vadd.f32 %v4530_v25, %v854_v56 }
 0x20c   :  { %v866_v30 = vmax.f32 %v725_v53, 0.0  ;;  %v727_v35 = vadd.f32 %v726_v59, %v4469_v36  ;;  %v868_v15 = vmax.f32 %v818_v19, 0.0  ;;  %v820_v8 = vadd.f32 %v819_v51, %v4469_v36  ;;  %v970_v41 = vpop.permute.xlu1 %969 }
 0x20d   :  { %v895_v11 = vadd.f32 %v879_v2, %v863_v29  ;;  %v897_v23 = vadd.f32 %v881_v14, %v865_v0  ;;  %v896_v36 = vadd.f32 %v880_v60, %v864_v43  ;;  %v903_v2 = vpack.c.bf16 %v891_v52, %v887_v48 }
 0x20e   :  { %v867_v10 = vmax.f32 %v727_v35, 0.0  ;;  %v898_v3 = vadd.f32 %v882_v54, %v866_v30  ;;  %v869_v45 = vmax.f32 %v820_v8, 0.0  ;;  %v900_v62 = vadd.f32 %v884_v38, %v868_v15 }
 0x20f   :  { %v905_v60 = vpack.c.bf16 %v893_v40, %v889_v24  ;;  %v888_v63 = vadd.f32 %v872_v16, %v856_v58  ;;  %v902_v32 = vpack.c.bf16 %v890_v1, %v886_v44 }
 0x210   :  { %v899_v13 = vadd.f32 %v883_v22, %v867_v10  ;;  %v901_v61 = vadd.f32 %v885_v12, %v869_v45  ;;  %v906_v31 = vpack.c.bf16 %v898_v3, %v894_v28  ;;  %v908_v27 = vpack.c.bf16 %v900_v62, %v896_v36  ;;  %v975_v12 = vpop.permute.xlu0 %974  ;;  %v960_v8 = vpop.permute.xlu1 %959 }
 0x211   :  { %v904_v14 = vpack.c.bf16 %v892_v6, %v888_v63 }
 0x212   :  { %v907_v20 = vpack.c.bf16 %v899_v13, %v895_v11  ;;  %v909_v54 = vpack.c.bf16 %v901_v61, %v897_v23 }
 0x214   :  { %1027 = vmatprep.subr.bf16.mxu0 %v907_v20  ;;  %1100 = vmatprep.subr.bf16.mxu1 %v909_v54  ;;  %v965_v19 = vpop.permute.xlu0 %964  ;;  %v4610_v45 = vpop.permute.xlu1 %949 }
 0x215   :  { %1028 = vmatpush1.bf16.msra.mxu0 %v906_v31  ;;  %1101 = vmatpush1.bf16.msra.mxu1 %v908_v27 }
 0x216   :  { %1029 = vmatprep.subr.bf16.mxu0 %v903_v2  ;;  %1102 = vmatprep.subr.bf16.mxu1 %v905_v60 }
 0x218   :  { %v4606_v0 = vpop.permute.xlu0 %954 }
 0x219   :  { %1030 = vmatpush1.bf16.msra.mxu0 %v902_v32  ;;  %1103 = vmatpush1.bf16.msra.mxu1 %v904_v14 }
 0x21c   :  { %3587 = vmatmul.mubr.msk.bf16.vlgmr.msra.gmra.mxu0 %vm1002_vm4, %v3771_v39  ;;  %3591 = vmatmul.mubr.msk.bf16.vlgmr.msra.gmra.mxu1 %vm1002_vm4, %v3771_v39  ;;  %v4608_v46 = vpop.permute.xlu0 %944 }
 0x21d   :  { %1057 = vmatprep.mubr.bf16.mxu0 %v5867_v55  ;;  %1130 = vmatprep.mubr.bf16.mxu1 %v5867_v55 }
 0x224   :  { %3588 = vmatmul.mubr.msk.bf16.gmra.mxu0 %vm1002_vm4, %v3772_v17  ;;  %3592 = vmatmul.mubr.msk.bf16.gmra.mxu1 %vm1002_vm4, %v3772_v17 }
 0x225   :  { %1067 = vmatprep.mubr.bf16.mxu0 %v5867_v55  ;;  %1140 = vmatprep.mubr.bf16.mxu1 %v5867_v55 }
 0x22c   :  { %3589 = vmatmul.mubr.msk.bf16.gmra.mxu0 %vm1002_vm4, %v3773_v33  ;;  %3593 = vmatmul.mubr.msk.bf16.gmra.mxu1 %vm1002_vm4, %v3773_v33 }
 0x22d   :  { %1077 = vmatprep.mubr.bf16.mxu0 %v5867_v55  ;;  %1150 = vmatprep.mubr.bf16.mxu1 %v5867_v55 }
 0x234   :  { %3590 = vmatmul.mubr.msk.bf16.gmra.mxu0 %vm1002_vm4, %v3774_v47  ;;  %3594 = vmatmul.mubr.msk.bf16.gmra.mxu1 %vm1002_vm4, %v3774_v47 }
 0x235   :  { %1314 = vmatprep.mubr.bf16.mxu0 %v5867_v55  ;;  %1387 = vmatprep.mubr.bf16.mxu1 %v5867_v55 }
 0x2dc   :  { %v4594_v25 = vpop.f32.mrf.mxu0  ;;  %v4596_v7 = vpop.f32.mrf.mxu1 }
 0x2de   :  { %v1051_v38 = vpop.f32.mrf.mxu0  ;;  %v1124_v22 = vpop.f32.mrf.mxu1 }
 0x2df   :  { %v4613_v52 = vadd.f32 %v1051_v38, %v4608_v46  ;;  %v4616_v11 = vadd.f32 %v1124_v22, %v4608_v46 }
 0x2e0   :  { %v4598_v18 = vpop.f32.mrf.mxu0  ;;  %v4600_v56 = vpop.f32.mrf.mxu1 }
 0x2e2   :  { %v1055_v4 = vpop.f32.mrf.mxu0  ;;  %v1128_v50 = vpop.f32.mrf.mxu1 }
 0x2e3   :  { %v4619_v13 = vadd.f32 %v1055_v4, %v4610_v45  ;;  %v4622_v40 = vadd.f32 %v1128_v50, %v4610_v45 }
 0x2e4   :  { %v4602_v53 = vpop.f32.mrf.mxu0  ;;  %v4604_v5 = vpop.f32.mrf.mxu1 }
 0x2e6   :  { %v1061_v9 = vpop.f32.mrf.mxu0  ;;  %v1134_v57 = vpop.f32.mrf.mxu1 }
 0x2e7   :  { %v4625_v28 = vadd.f32 %v1061_v9, %v4606_v0  ;;  %v4628_v23 = vadd.f32 %v1134_v57, %v4606_v0 }
 0x2e8   :  { %v1063_v49 = vpop.f32.mrf.mxu0  ;;  %v1136_v59 = vpop.f32.mrf.mxu1 }
 0x2e9   :  { %v4630_v58 = vadd.f32 %v1063_v49, %v960_v8  ;;  %v4632_v48 = vadd.f32 %v1136_v59, %v960_v8 }
 0x2ea   :  { %v1065_v29 = vpop.f32.mrf.mxu0  ;;  %v1138_v30 = vpop.f32.mrf.mxu1 }
 0x2eb   :  { %v4634_v36 = vadd.f32 %v1065_v29, %v960_v8  ;;  %v4636_v20 = vadd.f32 %v1138_v30, %v960_v8 }
 0x2ec   :  { %v1069_v35 = vpop.f32.mrf.mxu0  ;;  %v1142_v51 = vpop.f32.mrf.mxu1 }
 0x2ed   :  { %v1070_v1 = vadd.f32 %v1069_v35, %v965_v19  ;;  %v1143_v8 = vadd.f32 %v1142_v51, %v965_v19  ;;  %v1054_v51 = vadd.f32 %v4598_v18, %v4610_v45  ;;  %v1175_v18 = vmax.f32 %v4632_v48, 0.0 }
 0x2ee   :  { %v1071_v21 = vpop.f32.mrf.mxu0  ;;  %v1144_v15 = vpop.f32.mrf.mxu1 }
 0x2ef   :  { %v1072_v32 = vadd.f32 %v1071_v21, %v965_v19  ;;  %v1145_v14 = vadd.f32 %v1144_v15, %v965_v19  ;;  %v1165_v48 = vmax.f32 %v1054_v51, 0.0 }
 0x2f0   :  { %v1073_v26 = vpop.f32.mrf.mxu0  ;;  %v1146_v37 = vpop.f32.mrf.mxu1 }
 0x2f1   :  { %v1074_v47 = vadd.f32 %v1073_v26, %v970_v41  ;;  %v1147_v38 = vadd.f32 %v1146_v37, %v970_v41  ;;  %v1180_v15 = vmax.f32 %v1145_v14, 0.0 }
 0x2f2   :  { %v1075_v43 = vpop.f32.mrf.mxu0  ;;  %v1148_v10 = vpop.f32.mrf.mxu1 }
 0x2f3   :  { %v1076_v31 = vadd.f32 %v1075_v43, %v970_v41  ;;  %v1149_v27 = vadd.f32 %v1148_v10, %v970_v41  ;;  %v1178_v43 = vmax.f32 %v1072_v32, 0.0  ;;  %v1174_v41 = vmax.f32 %v4634_v36, 0.0 }
 0x2f4   :  { %v1079_v34 = vpop.f32.mrf.mxu0  ;;  %v1152_v3 = vpop.f32.mrf.mxu1  ;;  %v1183_v26 = vmax.f32 %v1147_v38, 0.0  ;;  %v1170_v36 = vmax.f32 %v4625_v28, 0.0  ;;  %v1168_v28 = vmax.f32 %v4622_v40, 0.0 }
 0x2f5   :  { %v1080_v2 = vadd.f32 %v1079_v34, %v975_v12  ;;  %v1153_v39 = vadd.f32 %v1152_v3, %v975_v12  ;;  %v1182_v50 = vmax.f32 %v1076_v31, 0.0  ;;  %v1184_v59 = vmax.f32 %v1149_v27, 0.0 }
 0x2f6   :  { %v1081_v62 = vpop.f32.mrf.mxu0  ;;  %v1154_v61 = vpop.f32.mrf.mxu1  ;;  %v1133_v31 = vadd.f32 %v4604_v5, %v4606_v0  ;;  %v1198_v5 = vpack.c.bf16 %v1174_v41, %v1170_v36 }
 0x2f7   :  { %v1082_v54 = vadd.f32 %v1081_v62, %v975_v12  ;;  %v1155_v44 = vadd.f32 %v1154_v61, %v975_v12  ;;  %v1185_v29 = vmax.f32 %v1080_v2, 0.0  ;;  %v1187_v10 = vmax.f32 %v1153_v39, 0.0 }
 0x2f8   :  { %v1083_v24 = vpop.f32.mrf.mxu0  ;;  %v1156_v6 = vpop.f32.mrf.mxu1  ;;  %v1181_v12 = vmax.f32 %v1074_v47, 0.0  ;;  %v1202_v37 = vpack.c.bf16 %v1182_v50, %v1178_v43  ;;  %v1060_v62 = vadd.f32 %v4602_v53, %v4606_v0  ;;  %v1176_v61 = vmax.f32 %v4636_v20, 0.0  ;;  %v3775_v47 = vld [vmem:[%s5814_s9] sm:$0xff]   ;;  %v3776_v50 = vld [vmem:[%s5814_s9 + $0x8] sm:$0xff]   ;;  %v3789_v43 = vld [vmem:[%s5817_s12 + $0x30] sm:$0xff]  }
 0x2f9   :  { %v1084_v16 = vadd.f32 %v1083_v24, %v980_v42  ;;  %v1157_v60 = vadd.f32 %v1156_v6, %v980_v42  ;;  %v1186_v9 = vmax.f32 %v1082_v54, 0.0  ;;  %v1188_v30 = vmax.f32 %v1155_v44, 0.0 }
 0x2fa   :  { %v1085_v63 = vpop.f32.mrf.mxu0  ;;  %v1158_v33 = vpop.f32.mrf.mxu1  ;;  %v1177_v24 = vmax.f32 %v1070_v1, 0.0  ;;  %v1204_v19 = vpack.c.bf16 %v1184_v59, %v1180_v15  ;;  %v1179_v54 = vmax.f32 %v1143_v8, 0.0  ;;  %v1127_v53 = vadd.f32 %v4600_v56, %v4610_v45  ;;  %v3784_v59 = vld [vmem:[%s5817_s12 + $0x8] sm:$0xff]  }
 0x2fb   :  { %v1086_v17 = vadd.f32 %v1085_v63, %v980_v42  ;;  %v1189_v22 = vmax.f32 %v1084_v16, 0.0  ;;  %v1159_v4 = vadd.f32 %v1158_v33, %v980_v42  ;;  %v1191_v57 = vmax.f32 %v1157_v60, 0.0  ;;  %v3788_v8 = vld [vmem:[%s5817_s12 + $0x28] sm:$0xff]  }
 0x2fc   :  { %v1172_v20 = vmax.f32 %v4628_v23, 0.0  ;;  %v1173_v1 = vmax.f32 %v4630_v58, 0.0  ;;  %v1201_v16 = vpack.c.bf16 %v1181_v12, %v1177_v24  ;;  %v1166_v6 = vmax.f32 %v4619_v13, 0.0 }
 0x2fd   :  { %v1190_v49 = vmax.f32 %v1086_v17, 0.0  ;;  %v1192_v35 = vmax.f32 %v1159_v4, 0.0  ;;  %v1205_v34 = vpack.c.bf16 %v1189_v22, %v1185_v29  ;;  %v1207_v42 = vpack.c.bf16 %v1191_v57, %v1187_v10  ;;  %v3778_v57 = vld [vmem:[%s5814_s9 + $0x18] sm:$0xff]   ;;  %v3785_v29 = vld [vmem:[%s5817_s12 + $0x10] sm:$0xff]  }
 0x2fe   :  { %v1203_v27 = vpack.c.bf16 %v1183_v26, %v1179_v54  ;;  %v1050_v0 = vadd.f32 %v4594_v25, %v4608_v46  ;;  %v1169_v2 = vmax.f32 %v1060_v62, 0.0  ;;  %v1200_v56 = vpack.c.bf16 %v1176_v61, %v1172_v20  ;;  %v62_v25 = vld [vmem:[%s5868_s30] sm:$0xff]  ;;  %v3790_v10 = vld [vmem:[%s5817_s12 + $0x38] sm:$0xff]   ;;  %v1247_v61 = vpop.permute.xlu1 %1246 }
 0x2ff   :  { %v1206_v21 = vpack.c.bf16 %v1190_v49, %v1186_v9  ;;  %v1208_v3 = vpack.c.bf16 %v1192_v35, %v1188_v30  ;;  %v1123_v45 = vadd.f32 %v4596_v7, %v4608_v46  ;;  %v1162_v23 = vmax.f32 %v4613_v52, 0.0  ;;  %v63_v7 = vld [vmem:[%s5868_s30 + $0x8] sm:$0xff]  ;;  %v3777_v9 = vld [vmem:[%s5814_s9 + $0x10] sm:$0xff]   ;;  %v3783_v49 = vld [vmem:[%s5817_s12] sm:$0xff]  }
 0x300   :  { %v1171_v58 = vmax.f32 %v1133_v31, 0.0  ;;  %v1164_v13 = vmax.f32 %v4616_v11, 0.0  ;;  %v1197_v44 = vpack.c.bf16 %v1173_v1, %v1169_v2  ;;  %v1167_v40 = vmax.f32 %v1127_v53, 0.0  ;;  %v3786_v30 = vld [vmem:[%s5817_s12 + $0x18] sm:$0xff]   ;;  %v3787_v35 = vld [vmem:[%s5817_s12 + $0x20] sm:$0xff]  }
 0x301   :  { %1290 = vmatprep.subr.bf16.mxu0 %v1206_v21  ;;  %1363 = vmatprep.subr.bf16.mxu1 %v1208_v3  ;;  %v1194_v63 = vpack.c.bf16 %v1166_v6, %v1162_v23  ;;  %v1161_v46 = vmax.f32 %v1050_v0, 0.0  ;;  %v1163_v32 = vmax.f32 %v1123_v45, 0.0  ;;  %v3617_v11 = vcombine.high %v62_v25, %v62_v25  ;;  %v3791_v21 = vld [vmem:[%s5817_s12 + $0x40] ss:$0 sps:$4 sm:$0x33]  }
 0x302   :  { %1291 = vmatpush1.bf16.msra.mxu0 %v1205_v34  ;;  %1364 = vmatpush1.bf16.msra.mxu1 %v1207_v42  ;;  %v1199_v60 = vpack.c.bf16 %v1175_v18, %v1171_v58  ;;  %v1196_v52 = vpack.c.bf16 %v1168_v28, %v1164_v13  ;;  %v3619_v39 = vcombine.high %v63_v7, %v63_v7  ;;  %v1237_v20 = vpop.permute.xlu1 %1236 }
 0x303   :  { %1292 = vmatprep.subr.bf16.mxu0 %v1202_v37  ;;  %1365 = vmatprep.subr.bf16.mxu1 %v1204_v19  ;;  %v1193_v14 = vpack.c.bf16 %v1165_v48, %v1161_v46  ;;  %v3616_v17 = vcombine.low %v62_v25, %v62_v25  ;;  %v1195_v33 = vpack.c.bf16 %v1167_v40, %v1163_v32  ;;  %v1242_v37 = vpop.permute.xlu0 %1241 }
 0x304   :  { %v3618_v38 = vcombine.low %v63_v7, %v63_v7 }
 0x305   :  { %v1592_v22 = vsel %vm253_vm0, %v3616_v17, 0 }
 0x306   :  { %1293 = vmatpush1.bf16.msra.mxu0 %v1201_v16  ;;  %1366 = vmatpush1.bf16.msra.mxu1 %v1203_v27  ;;  %v1598_v4 = vsel %vm253_vm0, %v3618_v38, 0  ;;  %v1227_v28 = vpop.permute.xlu1 %1226 }
 0x307   :  { %1294 = vmatprep.subr.bf16.mxu0 %v1198_v5  ;;  %1367 = vmatprep.subr.bf16.mxu1 %v1200_v56  ;;  %v1232_v54 = vpop.permute.xlu0 %1231 }
 0x30a   :  { %1295 = vmatpush1.bf16.msra.mxu0 %v1197_v44  ;;  %1368 = vmatpush1.bf16.msra.mxu1 %v1199_v60  ;;  %v4777_v44 = vpop.permute.xlu1 %1216 }
 0x30b   :  { %1296 = vmatprep.subr.bf16.mxu0 %v1194_v63  ;;  %1369 = vmatprep.subr.bf16.mxu1 %v1196_v52  ;;  %v4773_v5 = vpop.permute.xlu0 %1221 }
 0x30e   :  { %1297 = vmatpush1.bf16.msra.mxu0 %v1193_v14  ;;  %1370 = vmatpush1.bf16.msra.mxu1 %v1195_v33 }
 0x30f   :  { %3620 = vmatprep.subr.msk.bf16.mxu0 %vm253_vm0, %v3617_v11  ;;  %3630 = vmatprep.subr.msk.bf16.mxu1 %vm253_vm0, %v3619_v39  ;;  %v4775_v13 = vpop.permute.xlu0 %1211 }
 0x311   :  { %3599 = vmatmul.mubr.msk.bf16.vlgmr.msra.gmra.mxu0 %vm1269_vm5, %v3775_v47  ;;  %3603 = vmatmul.mubr.msk.bf16.vlgmr.msra.gmra.mxu1 %vm1269_vm5, %v3775_v47 }
 0x312   :  { %1324 = vmatprep.mubr.bf16.mxu0 %v5867_v55  ;;  %1397 = vmatprep.mubr.bf16.mxu1 %v5867_v55 }
 0x313   :  { %1618 = vmatpush1.bf16.msra.mxu0 %v1592_v22  ;;  %1739 = vmatpush1.bf16.msra.mxu1 %v1598_v4 }
 0x319   :  { %3600 = vmatmul.mubr.msk.bf16.gmra.mxu0 %vm1269_vm5, %v3776_v50  ;;  %3604 = vmatmul.mubr.msk.bf16.gmra.mxu1 %vm1269_vm5, %v3776_v50 }
 0x31a   :  { %1334 = vmatprep.mubr.bf16.mxu0 %v5867_v55  ;;  %1407 = vmatprep.mubr.bf16.mxu1 %v5867_v55 }
 0x321   :  { %3601 = vmatmul.mubr.msk.bf16.gmra.mxu0 %vm1269_vm5, %v3777_v9  ;;  %3605 = vmatmul.mubr.msk.bf16.gmra.mxu1 %vm1269_vm5, %v3777_v9 }
 0x322   :  { %1344 = vmatprep.mubr.bf16.mxu0 %v5867_v55  ;;  %1417 = vmatprep.mubr.bf16.mxu1 %v5867_v55 }
 0x329   :  { %3602 = vmatmul.mubr.msk.bf16.gmra.mxu0 %vm1269_vm5, %v3778_v57  ;;  %3606 = vmatmul.mubr.msk.bf16.gmra.mxu1 %vm1269_vm5, %v3778_v57 }
 0x32a   :  { %1635 = vmatprep.mubr.bf16.mxu0 %v5867_v55  ;;  %1756 = vmatprep.mubr.bf16.mxu1 %v5867_v55 }
 0x331   :  { %3621 = vmatmul.mubr.msk.bf16.vlgmr.msra.gmra.mxu0 %vm1563_vm6, %v3783_v49  ;;  %3631 = vmatmul.mubr.msk.bf16.vlgmr.msra.gmra.mxu1 %vm1563_vm6, %v3783_v49 }
 0x332   :  { %1645 = vmatprep.mubr.bf16.mxu0 %v5867_v55  ;;  %1766 = vmatprep.mubr.bf16.mxu1 %v5867_v55 }
 0x339   :  { %3622 = vmatmul.mubr.msk.bf16.gmra.mxu0 %vm1563_vm6, %v3784_v59  ;;  %3632 = vmatmul.mubr.msk.bf16.gmra.mxu1 %vm1563_vm6, %v3784_v59 }
 0x33a   :  { %1655 = vmatprep.mubr.bf16.mxu0 %v5867_v55  ;;  %1776 = vmatprep.mubr.bf16.mxu1 %v5867_v55 }
 0x341   :  { %3623 = vmatmul.mubr.msk.bf16.gmra.mxu0 %vm1563_vm6, %v3785_v29  ;;  %3633 = vmatmul.mubr.msk.bf16.gmra.mxu1 %vm1563_vm6, %v3785_v29 }
 0x342   :  { %1665 = vmatprep.mubr.bf16.mxu0 %v5867_v55  ;;  %1786 = vmatprep.mubr.bf16.mxu1 %v5867_v55 }
 0x349   :  { %3624 = vmatmul.mubr.msk.bf16.gmra.mxu0 %vm1563_vm6, %v3786_v30  ;;  %3634 = vmatmul.mubr.msk.bf16.gmra.mxu1 %vm1563_vm6, %v3786_v30 }
 0x34a   :  { %1675 = vmatprep.mubr.bf16.mxu0 %v5867_v55  ;;  %1796 = vmatprep.mubr.bf16.mxu1 %v5867_v55 }
 0x351   :  { %3625 = vmatmul.mubr.msk.bf16.gmra.mxu0 %vm1563_vm6, %v3787_v35  ;;  %3635 = vmatmul.mubr.msk.bf16.gmra.mxu1 %vm1563_vm6, %v3787_v35 }
 0x352   :  { %1685 = vmatprep.mubr.bf16.mxu0 %v5867_v55  ;;  %1806 = vmatprep.mubr.bf16.mxu1 %v5867_v55 }
 0x359   :  { %3626 = vmatmul.mubr.msk.bf16.gmra.mxu0 %vm1563_vm6, %v3788_v8  ;;  %3636 = vmatmul.mubr.msk.bf16.gmra.mxu1 %vm1563_vm6, %v3788_v8 }
 0x35a   :  { %1695 = vmatprep.mubr.bf16.mxu0 %v5867_v55  ;;  %1816 = vmatprep.mubr.bf16.mxu1 %v5867_v55 }
 0x361   :  { %3627 = vmatmul.mubr.msk.bf16.gmra.mxu0 %vm1563_vm6, %v3789_v43  ;;  %3637 = vmatmul.mubr.msk.bf16.gmra.mxu1 %vm1563_vm6, %v3789_v43 }
 0x362   :  { %1705 = vmatprep.mubr.bf16.mxu0 %v5867_v55  ;;  %1826 = vmatprep.mubr.bf16.mxu1 %v5867_v55 }
 0x369   :  { %3628 = vmatmul.mubr.msk.bf16.gmra.mxu0 %vm1563_vm6, %v3790_v10  ;;  %3638 = vmatmul.mubr.msk.bf16.gmra.mxu1 %vm1563_vm6, %v3790_v10 }
 0x36a   :  { %1715 = vmatprep.mubr.bf16.mxu0 %v5867_v55  ;;  %1836 = vmatprep.mubr.bf16.mxu1 %v5867_v55 }
 0x371   :  { %3629 = vmatmul.mubr.msk.bf16.gmra.mxu0 %vm1563_vm6, %v3791_v21  ;;  %3639 = vmatmul.mubr.msk.bf16.gmra.mxu1 %vm1563_vm6, %v3791_v21 }
 0x372   :  { %1947 = vmatprep.mubr.bf16.mxu0 %v5867_v55  ;;  %2068 = vmatprep.mubr.bf16.mxu1 %v5867_v55 }
 0x3d1   :  { %v4761_v15 = vpop.f32.mrf.mxu0  ;;  %v4763_v12 = vpop.f32.mrf.mxu1 }
 0x3d3   :  { %v1318_v34 = vpop.f32.mrf.mxu0  ;;  %v1391_v3 = vpop.f32.mrf.mxu1 }
 0x3d4   :  { %v4780_v25 = vadd.f32 %v1318_v34, %v4775_v13  ;;  %v4783_v40 = vadd.f32 %v1391_v3, %v4775_v13 }
 0x3d5   :  { %v4765_v41 = vpop.f32.mrf.mxu0  ;;  %v4767_v26 = vpop.f32.mrf.mxu1 }
 0x3d7   :  { %v1322_v42 = vpop.f32.mrf.mxu0  ;;  %v1395_v62 = vpop.f32.mrf.mxu1 }
 0x3d8   :  { %v4786_v63 = vadd.f32 %v1322_v42, %v4777_v44  ;;  %v4789_v7 = vadd.f32 %v1395_v62, %v4777_v44 }
 0x3d9   :  { %v4769_v24 = vpop.f32.mrf.mxu0  ;;  %v4771_v19 = vpop.f32.mrf.mxu1 }
 0x3db   :  { %v1328_v51 = vpop.f32.mrf.mxu0  ;;  %v1401_v31 = vpop.f32.mrf.mxu1 }
 0x3dc   :  { %v4792_v46 = vadd.f32 %v1328_v51, %v4773_v5  ;;  %v4795_v52 = vadd.f32 %v1401_v31, %v4773_v5 }
 0x3dd   :  { %v1330_v36 = vpop.f32.mrf.mxu0  ;;  %v1403_v53 = vpop.f32.mrf.mxu1 }
 0x3de   :  { %v4797_v11 = vadd.f32 %v1330_v36, %v1227_v28  ;;  %v4799_v14 = vadd.f32 %v1403_v53, %v1227_v28 }
 0x3df   :  { %v1332_v1 = vpop.f32.mrf.mxu0  ;;  %v1405_v16 = vpop.f32.mrf.mxu1 }
 0x3e0   :  { %v4801_v39 = vadd.f32 %v1332_v1, %v1227_v28  ;;  %v4803_v17 = vadd.f32 %v1405_v16, %v1227_v28 }
 0x3e1   :  { %v1336_v6 = vpop.f32.mrf.mxu0  ;;  %v1409_v18 = vpop.f32.mrf.mxu1 }
 0x3e2   :  { %v1337_v47 = vadd.f32 %v1336_v6, %v1232_v54  ;;  %v1410_v28 = vadd.f32 %v1409_v18, %v1232_v54  ;;  %v1321_v18 = vadd.f32 %v4765_v41, %v4777_v44 }
 0x3e3   :  { %v1338_v27 = vpop.f32.mrf.mxu0  ;;  %v1411_v0 = vpop.f32.mrf.mxu1 }
 0x3e4   :  { %v1339_v30 = vadd.f32 %v1338_v27, %v1232_v54  ;;  %v1412_v35 = vadd.f32 %v1411_v0, %v1232_v54 }
 0x3e5   :  { %v1340_v2 = vpop.f32.mrf.mxu0  ;;  %v1413_v56 = vpop.f32.mrf.mxu1 }
 0x3e6   :  { %v1341_v21 = vadd.f32 %v1340_v2, %v1237_v20  ;;  %v1414_v34 = vadd.f32 %v1413_v56, %v1237_v20  ;;  %v1447_v0 = vmax.f32 %v1412_v35, 0.0 }
 0x3e7   :  { %v1342_v45 = vpop.f32.mrf.mxu0  ;;  %v1415_v23 = vpop.f32.mrf.mxu1 }
 0x3e8   :  { %v1343_v38 = vadd.f32 %v1342_v45, %v1237_v20  ;;  %v1416_v9 = vadd.f32 %v1415_v23, %v1237_v20  ;;  %v1445_v45 = vmax.f32 %v1339_v30, 0.0  ;;  %v1441_v20 = vmax.f32 %v4801_v39, 0.0 }
 0x3e9   :  { %v1346_v58 = vpop.f32.mrf.mxu0  ;;  %v1419_v48 = vpop.f32.mrf.mxu1  ;;  %v1450_v2 = vmax.f32 %v1414_v34, 0.0  ;;  %v1437_v39 = vmax.f32 %v4792_v46, 0.0 }
 0x3ea   :  { %v1347_v57 = vadd.f32 %v1346_v58, %v1242_v37  ;;  %v1420_v8 = vadd.f32 %v1419_v48, %v1242_v37  ;;  %v1449_v62 = vmax.f32 %v1343_v38, 0.0  ;;  %v1451_v53 = vmax.f32 %v1416_v9, 0.0 }
 0x3eb   :  { %v1348_v60 = vpop.f32.mrf.mxu0  ;;  %v1421_v32 = vpop.f32.mrf.mxu1  ;;  %v1400_v38 = vadd.f32 %v4771_v19, %v4773_v5  ;;  %v1433_v19 = vmax.f32 %v4786_v63, 0.0  ;;  %v1482_v9 = vpack.c.bf16 %v1441_v20, %v1437_v39  ;;  %v1429_v63 = vmax.f32 %v4780_v25, 0.0  ;;  %v3815_v20 = vld [vmem:[%s5807_s2 + $0x24] ss:$16 sps:$4 sm:$0xff]  }
 0x3ec   :  { %v1349_v22 = vadd.f32 %v1348_v60, %v1242_v37  ;;  %v1422_v49 = vadd.f32 %v1421_v32, %v1242_v37  ;;  %v1452_v1 = vmax.f32 %v1347_v57, 0.0  ;;  %v1454_v23 = vmax.f32 %v1420_v8, 0.0 }
 0x3ed   :  { %v1350_v33 = vpop.f32.mrf.mxu0  ;;  %v1423_v50 = vpop.f32.mrf.mxu1  ;;  %v1448_v37 = vmax.f32 %v1341_v21, 0.0  ;;  %v1486_v56 = vpack.c.bf16 %v1449_v62, %v1445_v45  ;;  %v1327_v60 = vadd.f32 %v4769_v24, %v4773_v5  ;;  %v1443_v32 = vmax.f32 %v4803_v17, 0.0 }
 0x3ee   :  { %v1351_v4 = vadd.f32 %v1350_v33, %v1247_v61  ;;  %v1424_v59 = vadd.f32 %v1423_v50, %v1247_v61  ;;  %v1453_v51 = vmax.f32 %v1349_v22, 0.0  ;;  %v1455_v16 = vmax.f32 %v1422_v49, 0.0 }
 0x3ef   :  { %v1352_v29 = vpop.f32.mrf.mxu0  ;;  %v1425_v10 = vpop.f32.mrf.mxu1  ;;  %v1444_v33 = vmax.f32 %v1337_v47, 0.0  ;;  %v1488_v54 = vpack.c.bf16 %v1451_v53, %v1447_v0  ;;  %v1446_v22 = vmax.f32 %v1410_v28, 0.0  ;;  %v1394_v17 = vadd.f32 %v4767_v26, %v4777_v44  ;;  %v3808_v28 = vld [vmem:[%s5807_s2 + $0x44] ss:$16 sps:$4 sm:$0xff]  }
 0x3f0   :  { %v1353_v43 = vadd.f32 %v1352_v29, %v1247_v61  ;;  %v1456_v3 = vmax.f32 %v1351_v4, 0.0  ;;  %v1426_v42 = vadd.f32 %v1425_v10, %v1247_v61  ;;  %v1458_v31 = vmax.f32 %v1424_v59, 0.0 }
 0x3f1   :  { %v4814_v4 = vpop.f32.mrf.mxu0  ;;  %v4816_v24 = vpop.f32.mrf.mxu1  ;;  %v1439_v47 = vmax.f32 %v4795_v52, 0.0  ;;  %v1440_v50 = vmax.f32 %v4797_v11, 0.0  ;;  %v1485_v41 = vpack.c.bf16 %v1448_v37, %v1444_v33  ;;  %v1442_v5 = vmax.f32 %v4799_v14, 0.0 }
 0x3f2   :  { %v1457_v36 = vmax.f32 %v1353_v43, 0.0  ;;  %v1459_v6 = vmax.f32 %v1426_v42, 0.0  ;;  %v1489_v58 = vpack.c.bf16 %v1456_v3, %v1452_v1  ;;  %v1491_v61 = vpack.c.bf16 %v1458_v31, %v1454_v23  ;;  %v3805_v42 = vld [vmem:[%s5807_s2 + $0x6c] ss:$16 sps:$4 sm:$0xff]  }
 0x3f3   :  { %v1487_v46 = vpack.c.bf16 %v1450_v2, %v1446_v22  ;;  %v1317_v57 = vadd.f32 %v4761_v15, %v4775_v13  ;;  %v1435_v49 = vmax.f32 %v4789_v7, 0.0  ;;  %v1436_v59 = vmax.f32 %v1327_v60, 0.0  ;;  %v4827_v44 = vpop.f32.mrf.mxu0  ;;  %v4829_v52 = vpop.f32.mrf.mxu1  ;;  %v3818_v60 = vld [vmem:[%s5807_s2 + $0x2c] ss:$16 sps:$4 sm:$0xff]  }
 0x3f4   :  { %v1490_v27 = vpack.c.bf16 %v1457_v36, %v1453_v51  ;;  %v1492_v48 = vpack.c.bf16 %v1459_v6, %v1455_v16  ;;  %v1484_v26 = vpack.c.bf16 %v1443_v32, %v1439_v47  ;;  %v1390_v11 = vadd.f32 %v4763_v12, %v4775_v13  ;;  %v3792_v36 = vld [vmem:[%s5816_s11] sm:$0xff]   ;;  %v3803_v6 = vld [vmem:[%s5807_s2 + $0x68] ss:$16 sps:$4 sm:$0xff]  }
 0x3f5   :  { %v1438_v14 = vmax.f32 %v1400_v38, 0.0  ;;  %v1431_v29 = vmax.f32 %v4783_v40, 0.0  ;;  %v1432_v15 = vmax.f32 %v1321_v18, 0.0  ;;  %v1481_v30 = vpack.c.bf16 %v1440_v50, %v1436_v59  ;;  %v4835_v7 = vpop.f32.mrf.mxu0  ;;  %v4837_v35 = vpop.f32.mrf.mxu1  ;;  %v3802_v40 = vld [vmem:[%s5807_s2 + $0x64] ss:$16 sps:$4 sm:$0xff]  }
 0x3f6   :  { %1923 = vmatprep.subr.bf16.mxu0 %v1490_v27  ;;  %2044 = vmatprep.subr.bf16.mxu1 %v1492_v48  ;;  %v1434_v8 = vmax.f32 %v1394_v17, 0.0  ;;  %v1478_v10 = vpack.c.bf16 %v1433_v19, %v1429_v63  ;;  %v1428_v21 = vmax.f32 %v1317_v57, 0.0  ;;  %v1430_v34 = vmax.f32 %v1390_v11, 0.0  ;;  %v3800_v16 = vld [vmem:[%s5807_s2 + $0x60] ss:$16 sps:$4 sm:$0xff]  }
 0x3f7   :  { %1924 = vmatpush1.bf16.msra.mxu0 %v1489_v58  ;;  %2045 = vmatpush1.bf16.msra.mxu1 %v1491_v61  ;;  %v1483_v43 = vpack.c.bf16 %v1442_v5, %v1438_v14  ;;  %v1480_v12 = vpack.c.bf16 %v1435_v49, %v1431_v29  ;;  %v4839_v13 = vpop.f32.mrf.mxu0  ;;  %v4841_v25 = vpop.f32.mrf.mxu1  ;;  %v3811_v27 = vld [vmem:[%s5807_s2 + $0x4c] ss:$16 sps:$4 sm:$0xff]   ;;  %v3806_v58 = vld [vmem:[%s5807_s2 + $0x40] ss:$16 sps:$4 sm:$0xff]   ;;  %v3809_v48 = vld [vmem:[%s5807_s2 + $0x48] ss:$16 sps:$4 sm:$0xff]  }
 0x3f8   :  { %1925 = vmatprep.subr.bf16.mxu0 %v1486_v56  ;;  %2046 = vmatprep.subr.bf16.mxu1 %v1488_v54  ;;  %v1477_v3 = vpack.c.bf16 %v1432_v15, %v1428_v21  ;;  %v1479_v31 = vpack.c.bf16 %v1434_v8, %v1430_v34  ;;  %v3793_v56 = vld [vmem:[%s5816_s11 + $0x8] sm:$0xff]   ;;  %v3813_v54 = vld [vmem:[%s5807_s2 + $0x20] ss:$16 sps:$4 sm:$0xff]   ;;  %v3821_v38 = vld [vmem:[%s5807_s2 + $0x4] ss:$16 sps:$4 sm:$0xff]  }
 0x3f9   :  { %v4849_v62 = vpop.f32.mrf.mxu0  ;;  %v4851_v51 = vpop.f32.mrf.mxu1  ;;  %v3816_v18 = vld [vmem:[%s5807_s2 + $0x28] ss:$16 sps:$4 sm:$0xff]   ;;  %v3824_v17 = vld [vmem:[%s5807_s2 + $0xc] ss:$16 sps:$4 sm:$0xff]  }
 0x3fa   :  { %v3822_v19 = vld [vmem:[%s5807_s2 + $0x8] ss:$16 sps:$4 sm:$0xff]  }
 0x3fb   :  { %1926 = vmatpush1.bf16.msra.mxu0 %v1485_v41  ;;  %2047 = vmatpush1.bf16.msra.mxu1 %v1487_v46  ;;  %v4856_v53 = vpop.f32.mrf.mxu0  ;;  %v4858_v1 = vpop.f32.mrf.mxu1  ;;  %v3819_v41 = vld [vmem:[%s5807_s2] ss:$16 sps:$4 sm:$0xff]   ;;  %v3795_v15 = vld [vmem:[%s5816_s11 + $0x18] sm:$0xff]  }
 0x3fc   :  { %1927 = vmatprep.subr.bf16.mxu0 %v1482_v9  ;;  %2048 = vmatprep.subr.bf16.mxu1 %v1484_v26  ;;  %v3794_v9 = vld [vmem:[%s5816_s11 + $0x10] sm:$0xff]  }
 0x3fd   :  { %v4869_v45 = vpop.f32.mrf.mxu0  ;;  %v4871_v23 = vpop.f32.mrf.mxu1 }
 0x3ff   :  { %1928 = vmatpush1.bf16.msra.mxu0 %v1481_v30  ;;  %2049 = vmatpush1.bf16.msra.mxu1 %v1483_v43  ;;  %v4879_v0 = vpop.f32.mrf.mxu0  ;;  %v4881_v37 = vpop.f32.mrf.mxu1 }
 0x400   :  { %1929 = vmatprep.subr.bf16.mxu0 %v1478_v10  ;;  %2050 = vmatprep.subr.bf16.mxu1 %v1480_v12 }
 0x401   :  { %v4893_v2 = vpop.f32.mrf.mxu0  ;;  %v4895_v61 = vpop.f32.mrf.mxu1 }
 0x403   :  { %1930 = vmatpush1.bf16.msra.mxu0 %v1477_v3  ;;  %2051 = vmatpush1.bf16.msra.mxu1 %v1479_v31  ;;  %v4903_v32 = vpop.f32.mrf.mxu0  ;;  %v4905_v33 = vpop.f32.mrf.mxu1  ;;  %v3796_v3 = vld [vmem:[%s5816_s11 + $0x20] sm:$0xff]  }
 0x404   :  { %2332 = vmatprep.subr.bf16.mxu0 %v3802_v40  ;;  %2453 = vmatprep.subr.bf16.mxu1 %v3805_v42 }
 0x405   :  { %v4916_v39 = vpop.f32.mrf.mxu0  ;;  %v4918_v22 = vpop.f32.mrf.mxu1 }
 0x406   :  { %3649 = vmatmul.mubr.msk.bf16.vlgmr.msra.gmra.mxu0 %vm1269_vm5, %v3792_v36  ;;  %3658 = vmatmul.mubr.msk.bf16.vlgmr.msra.gmra.mxu1 %vm1269_vm5, %v3792_v36 }
 0x407   :  { %1957 = vmatprep.mubr.bf16.mxu0 %v5867_v55  ;;  %2078 = vmatprep.mubr.bf16.mxu1 %v5867_v55  ;;  %v4926_v47 = vpop.f32.mrf.mxu0  ;;  %v4928_v50 = vpop.f32.mrf.mxu1 }
 0x408   :  { %2333 = vmatpush1.bf16.msra.mxu0 %v3800_v16  ;;  %2454 = vmatpush1.bf16.msra.mxu1 %v3803_v6 }
 0x409   :  { %2334 = vmatprep.subr.bf16.mxu0 %v3808_v28  ;;  %2455 = vmatprep.subr.bf16.mxu1 %v3811_v27  ;;  %v4937_v5 = vpop.f32.mrf.mxu0  ;;  %v4939_v46 = vpop.f32.mrf.mxu1 }
 0x40b   :  { %v4944_v57 = vpop.f32.mrf.mxu0  ;;  %v4946_v49 = vpop.f32.mrf.mxu1 }
 0x40c   :  { %2335 = vmatpush1.bf16.msra.mxu0 %v3806_v58  ;;  %2456 = vmatpush1.bf16.msra.mxu1 %v3809_v48  ;;  %5869 = vst [vmem:[#allocation7_spill] sm:$0xff] %v4946_v49  ;;  %v3797_v48 = vld [vmem:[%s5816_s11 + $0x28] sm:$0xff]  }
 0x40d   :  { %2336 = vmatprep.subr.bf16.mxu0 %v3815_v20  ;;  %2457 = vmatprep.subr.bf16.mxu1 %v3818_v60  ;;  %v4948_v59 = vpop.f32.mrf.mxu0  ;;  %v4950_v26 = vpop.f32.mrf.mxu1 }
 0x40e   :  { %3650 = vmatmul.mubr.msk.bf16.gmra.mxu0 %vm1269_vm5, %v3793_v56  ;;  %3659 = vmatmul.mubr.msk.bf16.gmra.mxu1 %vm1269_vm5, %v3793_v56  ;;  %5870 = vst [vmem:[#allocation9_spill] sm:$0xff] %v4948_v59  ;;  %5871 = vst [vmem:[#allocation15_spill] sm:$0xff] %v4950_v26 }
 0x40f   :  { %1967 = vmatprep.mubr.bf16.mxu0 %v5867_v55  ;;  %2088 = vmatprep.mubr.bf16.mxu1 %v5867_v55  ;;  %v4955_v11 = vpop.f32.mrf.mxu0  ;;  %v4957_v63 = vpop.f32.mrf.mxu1 }
 0x410   :  { %2337 = vmatpush1.bf16.msra.mxu0 %v3813_v54  ;;  %2458 = vmatpush1.bf16.msra.mxu1 %v3816_v18  ;;  %5872 = vst [vmem:[#allocation8_spill] sm:$0xff] %v4955_v11  ;;  %5873 = vst [vmem:[#allocation16_spill] sm:$0xff] %v4957_v63  ;;  %v5201_v11 = vpop.permute.xlu0 %2723 }
 0x411   :  { %2338 = vmatprep.subr.bf16.mxu0 %v3821_v38  ;;  %2459 = vmatprep.subr.bf16.mxu1 %v3824_v17  ;;  %v4960_v14 = vpop.f32.mrf.mxu0  ;;  %v4962_v29 = vpop.f32.mrf.mxu1  ;;  %5917 = vst [vmem:[#allocation53_spill] sm:$0xff] %v5201_v11 }
 0x412   :  { %5874 = vst [vmem:[#allocation13_spill] sm:$0xff] %v4960_v14  ;;  %5875 = vst [vmem:[#allocation10_spill] sm:$0xff] %v4962_v29 }
 0x413   :  { %v4967_v30 = vpop.f32.mrf.mxu0  ;;  %v4969_v8 = vpop.f32.mrf.mxu1 }
 0x414   :  { %2339 = vmatpush1.bf16.msra.mxu0 %v3819_v41  ;;  %2460 = vmatpush1.bf16.msra.mxu1 %v3822_v19  ;;  %5876 = vst [vmem:[#allocation5_spill] sm:$0xff] %v4967_v30  ;;  %5877 = vst [vmem:[#allocation14_spill] sm:$0xff] %v4969_v8  ;;  %v3798_v19 = vld [vmem:[%s5816_s11 + $0x30] sm:$0xff]  }
 0x415   :  { %v4971_v43 = vpop.f32.mrf.mxu0  ;;  %v4973_v10 = vpop.f32.mrf.mxu1 }
 0x416   :  { %3651 = vmatmul.mubr.msk.bf16.gmra.mxu0 %vm1269_vm5, %v3794_v9  ;;  %3660 = vmatmul.mubr.msk.bf16.gmra.mxu1 %vm1269_vm5, %v3794_v9  ;;  %5878 = vst [vmem:[#allocation6_spill] sm:$0xff] %v4971_v43  ;;  %5879 = vst [vmem:[#allocation11_spill] sm:$0xff] %v4973_v10 }
 0x417   :  { %1977 = vmatprep.mubr.bf16.mxu0 %v5867_v55  ;;  %2098 = vmatprep.mubr.bf16.mxu1 %v5867_v55  ;;  %v4978_v21 = vpop.f32.mrf.mxu0  ;;  %v4980_v12 = vpop.f32.mrf.mxu1 }
 0x418   :  { %5880 = vst [vmem:[#allocation12_spill] sm:$0xff] %v4978_v21  ;;  %5881 = vst [vmem:[#allocation17_spill] sm:$0xff] %v4980_v12 }
 0x419   :  { %v4983_v34 = vpop.f32.mrf.mxu0  ;;  %v4985_v40 = vpop.f32.mrf.mxu1 }
 0x41a   :  { %5882 = vst [vmem:[#allocation18_spill] sm:$0xff] %v4983_v34  ;;  %5883 = vst [vmem:[#allocation19_spill] sm:$0xff] %v4985_v40 }
 0x41b   :  { %v4990_v42 = vpop.f32.mrf.mxu0  ;;  %v4992_v31 = vpop.f32.mrf.mxu1 }
 0x41c   :  { %5884 = vst [vmem:[#allocation20_spill] sm:$0xff] %v4990_v42  ;;  %5885 = vst [vmem:[#allocation21_spill] sm:$0xff] %v4992_v31 }
 0x41d   :  { %v4994_v36 = vpop.f32.mrf.mxu0  ;;  %v4996_v16 = vpop.f32.mrf.mxu1 }
 0x41e   :  { %3652 = vmatmul.mubr.msk.bf16.gmra.mxu0 %vm1269_vm5, %v3795_v15  ;;  %3661 = vmatmul.mubr.msk.bf16.gmra.mxu1 %vm1269_vm5, %v3795_v15  ;;  %5886 = vst [vmem:[#allocation22_spill] sm:$0xff] %v4994_v36  ;;  %5887 = vst [vmem:[#allocation23_spill] sm:$0xff] %v4996_v16 }
 0x41f   :  { %1987 = vmatprep.mubr.bf16.mxu0 %v5867_v55  ;;  %2108 = vmatprep.mubr.bf16.mxu1 %v5867_v55  ;;  %v5001_v6 = vpop.f32.mrf.mxu0  ;;  %v5003_v28 = vpop.f32.mrf.mxu1 }
 0x420   :  { %5888 = vst [vmem:[#allocation24_spill] sm:$0xff] %v5001_v6  ;;  %5889 = vst [vmem:[#allocation25_spill] sm:$0xff] %v5003_v28 }
 0x421   :  { %v5006_v27 = vpop.f32.mrf.mxu0  ;;  %v5008_v58 = vpop.f32.mrf.mxu1 }
 0x422   :  { %5890 = vst [vmem:[#allocation26_spill] sm:$0xff] %v5006_v27  ;;  %5891 = vst [vmem:[#allocation27_spill] sm:$0xff] %v5008_v58 }
 0x423   :  { %v5013_v20 = vpop.f32.mrf.mxu0  ;;  %v5015_v56 = vpop.f32.mrf.mxu1 }
 0x424   :  { %5892 = vst [vmem:[#allocation28_spill] sm:$0xff] %v5013_v20  ;;  %5893 = vst [vmem:[#allocation29_spill] sm:$0xff] %v5015_v56 }
 0x425   :  { %v5017_v60 = vpop.f32.mrf.mxu0  ;;  %v5019_v54 = vpop.f32.mrf.mxu1 }
 0x426   :  { %3653 = vmatmul.mubr.msk.bf16.gmra.mxu0 %vm1269_vm5, %v3796_v3  ;;  %3662 = vmatmul.mubr.msk.bf16.gmra.mxu1 %vm1269_vm5, %v3796_v3  ;;  %5894 = vst [vmem:[#allocation30_spill] sm:$0xff] %v5017_v60  ;;  %5895 = vst [vmem:[#allocation31_spill] sm:$0xff] %v5019_v54 }
 0x427   :  { %1997 = vmatprep.mubr.bf16.mxu0 %v5867_v55  ;;  %2118 = vmatprep.mubr.bf16.mxu1 %v5867_v55  ;;  %v5024_v18 = vpop.f32.mrf.mxu0  ;;  %v5026_v38 = vpop.f32.mrf.mxu1 }
 0x428   :  { %5896 = vst [vmem:[#allocation32_spill] sm:$0xff] %v5024_v18  ;;  %5897 = vst [vmem:[#allocation33_spill] sm:$0xff] %v5026_v38 }
 0x429   :  { %v5029_v17 = vpop.f32.mrf.mxu0  ;;  %v5031_v41 = vpop.f32.mrf.mxu1 }
 0x42a   :  { %5898 = vst [vmem:[#allocation34_spill] sm:$0xff] %v5029_v17  ;;  %5899 = vst [vmem:[#allocation35_spill] sm:$0xff] %v5031_v41 }
 0x42b   :  { %v5036_v9 = vpop.f32.mrf.mxu0  ;;  %v5038_v15 = vpop.f32.mrf.mxu1 }
 0x42c   :  { %5900 = vst [vmem:[#allocation36_spill] sm:$0xff] %v5036_v9  ;;  %5901 = vst [vmem:[#allocation37_spill] sm:$0xff] %v5038_v15 }
 0x42d   :  { %v5040_v3 = vpop.f32.mrf.mxu0 }
 0x42e   :  { %3654 = vmatmul.mubr.msk.bf16.gmra.mxu0 %vm1269_vm5, %v3797_v48  ;;  %3663 = vmatmul.mubr.msk.bf16.gmra.mxu1 %vm1269_vm5, %v3797_v48  ;;  %5902 = vst [vmem:[#allocation38_spill] sm:$0xff] %v5040_v3  ;;  %v5042_v48 = vpop.f32.mrf.mxu1 }
 0x42f   :  { %2007 = vmatprep.mubr.bf16.mxu0 %v5867_v55  ;;  %2128 = vmatprep.mubr.bf16.mxu1 %v5867_v55  ;;  %5903 = vst [vmem:[#allocation39_spill] sm:$0xff] %v5042_v48  ;;  %v5047_v17 = vpop.f32.mrf.mxu0  ;;  %v3799_v48 = vld [vmem:[%s5816_s11 + $0x38] sm:$0xff]  }
 0x430   :  { %5904 = vst [vmem:[#allocation40_spill] sm:$0xff] %v5047_v17  ;;  %v5049_v41 = vpop.f32.mrf.mxu1 }
 0x431   :  { %5905 = vst [vmem:[#allocation41_spill] sm:$0xff] %v5049_v41  ;;  %v5052_v38 = vpop.f32.mrf.mxu0 }
 0x432   :  { %5906 = vst [vmem:[#allocation42_spill] sm:$0xff] %v5052_v38  ;;  %v5054_v9 = vpop.f32.mrf.mxu1 }
 0x433   :  { %5907 = vst [vmem:[#allocation43_spill] sm:$0xff] %v5054_v9  ;;  %v5059_v3 = vpop.f32.mrf.mxu0  ;;  %v3812_v9 = vld [vmem:[%s5816_s11 + $0x40] ss:$0 sps:$4 sm:$0x33]  }
 0x434   :  { %5908 = vst [vmem:[#allocation44_spill] sm:$0xff] %v5059_v3  ;;  %v5061_v15 = vpop.f32.mrf.mxu1 }
 0x435   :  { %5909 = vst [vmem:[#allocation45_spill] sm:$0xff] %v5061_v15 }
 0x436   :  { %3655 = vmatmul.mubr.msk.bf16.gmra.mxu0 %vm1269_vm5, %v3798_v19  ;;  %3664 = vmatmul.mubr.msk.bf16.gmra.mxu1 %vm1269_vm5, %v3798_v19  ;;  %v1721_v19 = vpop.f32.mrf.mxu0  ;;  %v1842_v18 = vpop.f32.mrf.mxu1 }
 0x437   :  { %2017 = vmatprep.mubr.bf16.mxu0 %v5867_v55  ;;  %2138 = vmatprep.mubr.bf16.mxu1 %v5867_v55  ;;  %v3825_v18 = vld [vmem:[%s5818_s13] sm:$0xff]   ;;  %v3830_v19 = vld [vmem:[%s5818_s13 + $0x28] sm:$0xff]  }
 0x438   :  { %v1722_v41 = vpop.f32.mrf.mxu0  ;;  %v1843_v38 = vpop.f32.mrf.mxu1 }
 0x439   :  { %v3826_v38 = vld [vmem:[%s5818_s13 + $0x8] sm:$0xff]   ;;  %v3827_v41 = vld [vmem:[%s5818_s13 + $0x10] sm:$0xff]  }
 0x43e   :  { %3656 = vmatmul.mubr.msk.bf16.gmra.mxu0 %vm1269_vm5, %v3799_v48  ;;  %3665 = vmatmul.mubr.msk.bf16.gmra.mxu1 %vm1269_vm5, %v3799_v48  ;;  %v3829_v48 = vld [vmem:[%s5818_s13 + $0x20] sm:$0xff]  }
 0x43f   :  { %2027 = vmatprep.mubr.bf16.mxu0 %v5867_v55  ;;  %2148 = vmatprep.mubr.bf16.mxu1 %v5867_v55 }
 0x446   :  { %3657 = vmatmul.mubr.msk.bf16.gmra.mxu0 %vm1269_vm5, %v3812_v9  ;;  %3666 = vmatmul.mubr.msk.bf16.gmra.mxu1 %vm1269_vm5, %v3812_v9  ;;  %v3828_v9 = vld [vmem:[%s5818_s13 + $0x18] sm:$0xff]  }
 0x447   :  { %2356 = vmatprep.mubr.bf16.mxu0 %v5867_v55  ;;  %2477 = vmatprep.mubr.bf16.mxu1 %v5867_v55 }
 0x44e   :  { %3692 = vmatmul.mubr.msk.bf16.vlgmr.msra.gmra.mxu0 %vm1269_vm5, %v3825_v18  ;;  %3701 = vmatmul.mubr.msk.bf16.vlgmr.msra.gmra.mxu1 %vm1269_vm5, %v3825_v18  ;;  %v3831_v18 = vld [vmem:[%s5818_s13 + $0x30] sm:$0xff]  }
 0x44f   :  { %2366 = vmatprep.mubr.bf16.mxu0 %v5867_v55  ;;  %2487 = vmatprep.mubr.bf16.mxu1 %v5867_v55 }
 0x456   :  { %3693 = vmatmul.mubr.msk.bf16.gmra.mxu0 %vm1269_vm5, %v3826_v38  ;;  %3702 = vmatmul.mubr.msk.bf16.gmra.mxu1 %vm1269_vm5, %v3826_v38  ;;  %v3832_v38 = vld [vmem:[%s5818_s13 + $0x38] sm:$0xff]  }
 0x457   :  { %2376 = vmatprep.mubr.bf16.mxu0 %v5867_v55  ;;  %2497 = vmatprep.mubr.bf16.mxu1 %v5867_v55 }
 0x45e   :  { %3694 = vmatmul.mubr.msk.bf16.gmra.mxu0 %vm1269_vm5, %v3827_v41  ;;  %3703 = vmatmul.mubr.msk.bf16.gmra.mxu1 %vm1269_vm5, %v3827_v41  ;;  %v3833_v41 = vld [vmem:[%s5818_s13 + $0x40] ss:$0 sps:$4 sm:$0x33]  }
 0x45f   :  { %2386 = vmatprep.mubr.bf16.mxu0 %v5867_v55  ;;  %2507 = vmatprep.mubr.bf16.mxu1 %v5867_v55 }
 0x466   :  { %3695 = vmatmul.mubr.msk.bf16.gmra.mxu0 %vm1269_vm5, %v3828_v9  ;;  %3704 = vmatmul.mubr.msk.bf16.gmra.mxu1 %vm1269_vm5, %v3828_v9 }
 0x467   :  { %2396 = vmatprep.mubr.bf16.mxu0 %v5867_v55  ;;  %2517 = vmatprep.mubr.bf16.mxu1 %v5867_v55 }
 0x46e   :  { %3696 = vmatmul.mubr.msk.bf16.gmra.mxu0 %vm1269_vm5, %v3829_v48  ;;  %3705 = vmatmul.mubr.msk.bf16.gmra.mxu1 %vm1269_vm5, %v3829_v48 }
 0x46f   :  { %2406 = vmatprep.mubr.bf16.mxu0 %v5867_v55  ;;  %2527 = vmatprep.mubr.bf16.mxu1 %v5867_v55 }
 0x476   :  { %3697 = vmatmul.mubr.msk.bf16.gmra.mxu0 %vm1269_vm5, %v3830_v19  ;;  %3706 = vmatmul.mubr.msk.bf16.gmra.mxu1 %vm1269_vm5, %v3830_v19 }
 0x477   :  { %2416 = vmatprep.mubr.bf16.mxu0 %v5867_v55  ;;  %2537 = vmatprep.mubr.bf16.mxu1 %v5867_v55 }
 0x47e   :  { %3698 = vmatmul.mubr.msk.bf16.gmra.mxu0 %vm1269_vm5, %v3831_v18  ;;  %3707 = vmatmul.mubr.msk.bf16.gmra.mxu1 %vm1269_vm5, %v3831_v18 }
 0x47f   :  { %2426 = vmatprep.mubr.bf16.mxu0 %v5867_v55  ;;  %2547 = vmatprep.mubr.bf16.mxu1 %v5867_v55 }
 0x486   :  { %3699 = vmatmul.mubr.msk.bf16.gmra.mxu0 %vm1269_vm5, %v3832_v38  ;;  %3708 = vmatmul.mubr.msk.bf16.gmra.mxu1 %vm1269_vm5, %v3832_v38 }
 0x487   :  { %2436 = vmatprep.mubr.bf16.mxu0 %v5867_v55  ;;  %2557 = vmatprep.mubr.bf16.mxu1 %v5867_v55 }
 0x48e   :  { %3700 = vmatmul.mubr.msk.bf16.gmra.mxu0 %vm1269_vm5, %v3833_v41  ;;  %3709 = vmatmul.mubr.msk.bf16.gmra.mxu1 %vm1269_vm5, %v3833_v41 }
 0x4c6   :  { %v5135_v9 = vpop.f32.mrf.mxu0  ;;  %v5137_v48 = vpop.f32.mrf.mxu1 }
 0x4c8   :  { %v5139_v19 = vpop.f32.mrf.mxu0  ;;  %v5141_v18 = vpop.f32.mrf.mxu1 }
 0x4ca   :  { %v5143_v38 = vpop.f32.mrf.mxu0  ;;  %v5145_v15 = vpop.f32.mrf.mxu1 }
 0x4cc   :  { %v5147_v55 = vpop.f32.mrf.mxu0  ;;  %v5149_v3 = vpop.f32.mrf.mxu1 }
 0x4ce   :  { %v5151_v17 = vpop.f32.mrf.mxu0  ;;  %v5153_v54 = vpop.f32.mrf.mxu1 }
 0x4d0   :  { %v5155_v41 = vpop.f32.mrf.mxu0  ;;  %v5157_v60 = vpop.f32.mrf.mxu1 }
 0x4d2   :  { %v5159_v56 = vpop.f32.mrf.mxu0  ;;  %v5161_v20 = vpop.f32.mrf.mxu1 }
 0x4d4   :  { %v5163_v58 = vpop.f32.mrf.mxu0  ;;  %v5165_v27 = vpop.f32.mrf.mxu1 }
 0x4d6   :  { %v5167_v28 = vpop.f32.mrf.mxu0  ;;  %v5169_v6 = vpop.f32.mrf.mxu1 }
 0x4d8   :  { %v5171_v16 = vpop.f32.mrf.mxu0  ;;  %v5173_v36 = vpop.f32.mrf.mxu1 }
 0x4da   :  { %v5175_v31 = vpop.f32.mrf.mxu0  ;;  %v5177_v42 = vpop.f32.mrf.mxu1 }
 0x4dc   :  { %v5179_v40 = vpop.f32.mrf.mxu0  ;;  %v5181_v34 = vpop.f32.mrf.mxu1 }
 0x4de   :  { %v5183_v12 = vpop.f32.mrf.mxu0  ;;  %v5185_v21 = vpop.f32.mrf.mxu1 }
 0x4e0   :  { %v5187_v10 = vpop.f32.mrf.mxu0  ;;  %v5189_v43 = vpop.f32.mrf.mxu1 }
 0x4e1   :  { %5910 = vst [vmem:[#allocation46_spill] sm:$0xff] %v5187_v10  ;;  %5911 = vst [vmem:[#allocation47_spill] sm:$0xff] %v5189_v43  ;;  %v5209_v10 = vpop.permute.xlu1 %2728 }
 0x4e2   :  { %v5191_v8 = vpop.f32.mrf.mxu0  ;;  %v5193_v30 = vpop.f32.mrf.mxu1  ;;  %5921 = vst [vmem:[#allocation57_spill] sm:$0xff] %v5209_v10 }
 0x4e3   :  { %5912 = vst [vmem:[#allocation48_spill] sm:$0xff] %v5191_v8  ;;  %5913 = vst [vmem:[#allocation49_spill] sm:$0xff] %v5193_v30 }
 0x4e4   :  { %v5195_v29 = vpop.f32.mrf.mxu0  ;;  %v5197_v14 = vpop.f32.mrf.mxu1 }
 0x4e5   :  { %5914 = vst [vmem:[#allocation50_spill] sm:$0xff] %v5195_v29  ;;  %5915 = vst [vmem:[#allocation51_spill] sm:$0xff] %v5197_v14  ;;  %v5217_v29 = vpop.permute.xlu0 %2713 }
 0x4e6   :  { %v5199_v63 = vpop.f32.mrf.mxu0  ;;  %v5203_v26 = vpop.f32.mrf.mxu1  ;;  %5925 = vst [vmem:[#allocation61_spill] sm:$0xff] %v5217_v29 }
 0x4e7   :  { %5916 = vst [vmem:[#allocation52_spill] sm:$0xff] %v5199_v63  ;;  %5918 = vst [vmem:[#allocation54_spill] sm:$0xff] %v5203_v26  ;;  %v5225_v26 = vpop.permute.xlu1 %2718 }
 0x4e8   :  { %v5205_v59 = vpop.f32.mrf.mxu0  ;;  %v5207_v49 = vpop.f32.mrf.mxu1  ;;  %5929 = vst [vmem:[#allocation65_spill] sm:$0xff] %v5225_v26  ;;  %v3836_v26 = vld [vmem:[%s5820_s15 + $0x4] ss:$8 sps:$4 sm:$0xff]  }
 0x4e9   :  { %5919 = vst [vmem:[#allocation55_spill] sm:$0xff] %v5205_v59  ;;  %5920 = vst [vmem:[#allocation56_spill] sm:$0xff] %v5207_v49  ;;  %3728 = vmatprep.mubr.msk.bf16.mxu0 %vm3105_vm7, %v3836_v26  ;;  %3737 = vmatprep.mubr.msk.bf16.mxu1 %vm3105_vm7, %v3836_v26 }
 0x4ea   :  { %v5211_v43 = vpop.f32.mrf.mxu0  ;;  %v5213_v8 = vpop.f32.mrf.mxu1 }
 0x4eb   :  { %5922 = vst [vmem:[#allocation58_spill] sm:$0xff] %v5211_v43  ;;  %5923 = vst [vmem:[#allocation59_spill] sm:$0xff] %v5213_v8  ;;  %v5233_v43 = vpop.permute.xlu0 %2703 }
 0x4ec   :  { %v5215_v30 = vpop.f32.mrf.mxu0  ;;  %v5219_v14 = vpop.f32.mrf.mxu1  ;;  %5933 = vst [vmem:[#allocation69_spill] sm:$0xff] %v5233_v43 }
 0x4ed   :  { %5924 = vst [vmem:[#allocation60_spill] sm:$0xff] %v5215_v30  ;;  %5926 = vst [vmem:[#allocation62_spill] sm:$0xff] %v5219_v14  ;;  %v5241_v14 = vpop.permute.xlu1 %2708 }
 0x4ee   :  { %v5221_v63 = vpop.f32.mrf.mxu0  ;;  %v5223_v11 = vpop.f32.mrf.mxu1  ;;  %5937 = vst [vmem:[#allocation73_spill] sm:$0xff] %v5241_v14 }
 0x4ef   :  { %5927 = vst [vmem:[#allocation63_spill] sm:$0xff] %v5221_v63  ;;  %5928 = vst [vmem:[#allocation64_spill] sm:$0xff] %v5223_v11  ;;  %v5252_v43 = vpop.permute.xlu0 %2693 }
 0x4f0   :  { %v5227_v59 = vpop.f32.mrf.mxu0  ;;  %v5229_v49 = vpop.f32.mrf.mxu1  ;;  %5941 = vst [vmem:[#allocation77_spill] sm:$0xff] %v5252_v43 }
 0x4f1   :  { %5930 = vst [vmem:[#allocation66_spill] sm:$0xff] %v5227_v59  ;;  %5931 = vst [vmem:[#allocation67_spill] sm:$0xff] %v5229_v49 }
 0x4f2   :  { %v5231_v10 = vpop.f32.mrf.mxu0  ;;  %v5235_v8 = vpop.f32.mrf.mxu1 }
 0x4f3   :  { %5932 = vst [vmem:[#allocation68_spill] sm:$0xff] %v5231_v10  ;;  %5934 = vst [vmem:[#allocation70_spill] sm:$0xff] %v5235_v8 }
 0x4f4   :  { %v5237_v30 = vpop.f32.mrf.mxu0  ;;  %v5239_v29 = vpop.f32.mrf.mxu1 }
 0x4f5   :  { %5935 = vst [vmem:[#allocation71_spill] sm:$0xff] %v5237_v30  ;;  %5936 = vst [vmem:[#allocation72_spill] sm:$0xff] %v5239_v29 }
 0x4f6   :  { %v5243_v63 = vpop.f32.mrf.mxu0  ;;  %v5245_v11 = vpop.f32.mrf.mxu1 }
 0x4f7   :  { %5938 = vst [vmem:[#allocation74_spill] sm:$0xff] %v5243_v63  ;;  %5939 = vst [vmem:[#allocation75_spill] sm:$0xff] %v5245_v11  ;;  %v5262_v11 = vpop.permute.xlu1 %2698 }
 0x4f8   :  { %v5250_v10 = vpop.f32.mrf.mxu0  ;;  %v5254_v8 = vpop.f32.mrf.mxu1  ;;  %5945 = vst [vmem:[#allocation81_spill] sm:$0xff] %v5262_v11 }
 0x4f9   :  { %5940 = vst [vmem:[#allocation76_spill] sm:$0xff] %v5250_v10  ;;  %5942 = vst [vmem:[#allocation78_spill] sm:$0xff] %v5254_v8  ;;  %v5270_v10 = vpop.permute.xlu0 %2683 }
 0x4fa   :  { %v5258_v14 = vpop.f32.mrf.mxu0  ;;  %v5260_v63 = vpop.f32.mrf.mxu1  ;;  %5949 = vst [vmem:[#allocation85_spill] sm:$0xff] %v5270_v10 }
 0x4fb   :  { %5943 = vst [vmem:[#allocation79_spill] sm:$0xff] %v5258_v14  ;;  %5944 = vst [vmem:[#allocation80_spill] sm:$0xff] %v5260_v63  ;;  %v5278_v26 = vpop.permute.xlu1 %2688 }
 0x4fc   :  { %v5264_v29 = vpop.f32.mrf.mxu0  ;;  %v5266_v30 = vpop.f32.mrf.mxu1  ;;  %5953 = vst [vmem:[#allocation89_spill] sm:$0xff] %v5278_v26 }
 0x4fd   :  { %5946 = vst [vmem:[#allocation82_spill] sm:$0xff] %v5264_v29  ;;  %5947 = vst [vmem:[#allocation83_spill] sm:$0xff] %v5266_v30  ;;  %v5286_v30 = vpop.permute.xlu0 %2673 }
 0x4fe   :  { %v5268_v49 = vpop.f32.mrf.mxu0  ;;  %v5272_v43 = vpop.f32.mrf.mxu1 }
 0x4ff   :  { %5948 = vst [vmem:[#allocation84_spill] sm:$0xff] %v5268_v49  ;;  %5950 = vst [vmem:[#allocation86_spill] sm:$0xff] %v5272_v43 }
 0x500   :  { %v5274_v8 = vpop.f32.mrf.mxu0  ;;  %v5276_v59 = vpop.f32.mrf.mxu1 }
 0x501   :  { %5951 = vst [vmem:[#allocation87_spill] sm:$0xff] %v5274_v8  ;;  %5952 = vst [vmem:[#allocation88_spill] sm:$0xff] %v5276_v59  ;;  %v5960_v8 = vmov 65535   ;;  %v5297_v59 = vpop.permute.xlu1 %2678 }
 0x502   :  { %v5280_v14 = vpop.f32.mrf.mxu0  ;;  %v5282_v63 = vpop.f32.mrf.mxu1  ;;  %v5295_v10 = vsel %vm3133_vm8, 4294967295, %v5960_v8  ;;  %v1954_v8 = vadd.f32 %v5143_v38, %v4835_v7  ;;  %v5329_v7 = vadd.f32 %v5153_v54, %v4851_v51  ;;  %v5349_v51 = vadd.f32 %v5163_v58, %v4879_v0 }
 0x503   :  { %5954 = vst [vmem:[#allocation90_spill] sm:$0xff] %v5280_v14  ;;  %5955 = vst [vmem:[#allocation91_spill] sm:$0xff] %v5282_v63  ;;  %v1950_v63 = vadd.f32 %v5135_v9, %v4814_v4  ;;  %v1956_v4 = vadd.f32 %v5147_v55, %v4839_v13  ;;  %v5337_v13 = vadd.f32 %v5157_v60, %v4858_v1  ;;  %v5971_v60 = vld [vmem:[#allocation8_spill] sm:$0xff] }
 0x504   :  { %v5284_v11 = vpop.f32.mrf.mxu0  ;;  %v5288_v49 = vpop.f32.mrf.mxu1  ;;  %5961 = vst [vmem:[#allocation96_spill] sm:$0xff] %v5295_v10  ;;  %v2075_v10 = vadd.f32 %v5145_v15, %v4837_v35  ;;  %v5333_v35 = vadd.f32 %v5155_v41, %v4856_v53  ;;  %v5341_v15 = vadd.f32 %v5159_v56, %v4869_v45  ;;  %v5353_v53 = vadd.f32 %v5165_v27, %v4881_v37 }
 0x505   :  { %5956 = vst [vmem:[#allocation92_spill] sm:$0xff] %v5284_v11  ;;  %5957 = vst [vmem:[#allocation93_spill] sm:$0xff] %v5288_v49  ;;  %v2071_v11 = vadd.f32 %v5137_v48, %v4816_v24  ;;  %v1952_v49 = vadd.f32 %v5139_v19, %v4827_v44  ;;  %v5319_v24 = vadd.f32 %v5149_v3, %v4841_v25  ;;  %v5321_v44 = vpop.permute.xlu0 %2663  ;;  %v5371_v37 = vpop.permute.xlu1 %2668  ;;  %v5974_v3 = vld [vmem:[#allocation51_spill] sm:$0xff]  ;;  %v5975_v19 = vld [vmem:[#allocation13_spill] sm:$0xff] }
 0x506   :  { %v5290_v29 = vpop.f32.mrf.mxu0  ;;  %v5292_v43 = vpop.f32.mrf.mxu1  ;;  %v5357_v1 = vadd.f32 %v5167_v28, %v4893_v2  ;;  %v5361_v45 = vadd.f32 %v5169_v6, %v4895_v61  ;;  %v5369_v0 = vadd.f32 %v5173_v36, %v4905_v33  ;;  %v5375_v27 = vadd.f32 %v5175_v31, %v4916_v39 }
 0x507   :  { %5958 = vst [vmem:[#allocation94_spill] sm:$0xff] %v5290_v29  ;;  %5959 = vst [vmem:[#allocation95_spill] sm:$0xff] %v5292_v43  ;;  %v2073_v29 = vadd.f32 %v5141_v18, %v4829_v52  ;;  %v5325_v52 = vadd.f32 %v5151_v17, %v4849_v62  ;;  %v5345_v62 = vadd.f32 %v5161_v20, %v4871_v23  ;;  %v5976_v18 = vld [vmem:[#allocation52_spill] sm:$0xff] }
 0x508   :  { %v5299_v26 = vpop.f32.mrf.mxu0  ;;  %v5309_v43 = vpop.f32.mrf.mxu1  ;;  %v5365_v23 = vadd.f32 %v5171_v16, %v4903_v32  ;;  %v5379_v2 = vadd.f32 %v5177_v42, %v4918_v22  ;;  %v5383_v61 = vadd.f32 %v5179_v40, %v4926_v47  ;;  %v5387_v32 = vadd.f32 %v5181_v34, %v4928_v50  ;;  %v5964_v22 = vld [vmem:[#allocation46_spill] sm:$0xff]  ;;  %v5965_v40 = vld [vmem:[#allocation7_spill] sm:$0xff]  ;;  %v5967_v50 = vld [vmem:[#allocation9_spill] sm:$0xff] }
 0x509   :  { %5962 = vst [vmem:[#allocation97_spill] sm:$0xff] %v5299_v26  ;;  %5963 = vst [vmem:[#allocation98_spill] sm:$0xff] %v5309_v43  ;;  %v5391_v36 = vadd.f32 %v5183_v12, %v4937_v5  ;;  %v5395_v39 = vadd.f32 %v5185_v21, %v4939_v46  ;;  %v5399_v42 = vadd.f32 %v5964_v22, %v4944_v57  ;;  %v5966_v16 = vld [vmem:[#allocation47_spill] sm:$0xff]  ;;  %v5968_v34 = vld [vmem:[#allocation48_spill] sm:$0xff]  ;;  %v2654_v56 = vpop.permute.xlu0 %2653 }
 0x50a   :  { %v2033_v9 = vpop.f32.mrf.mxu0  ;;  %v2154_v25 = vpop.f32.mrf.mxu1  ;;  %v5403_v6 = vadd.f32 %v5966_v16, %v5965_v40  ;;  %v5407_v28 = vadd.f32 %v5968_v34, %v5967_v50  ;;  %v5969_v5 = vld [vmem:[#allocation15_spill] sm:$0xff]  ;;  %v5970_v12 = vld [vmem:[#allocation49_spill] sm:$0xff]  ;;  %v5972_v57 = vld [vmem:[#allocation50_spill] sm:$0xff]  ;;  %v5423_v38 = vadd.f32 %v5976_v18, %v5975_v19 }
 0x50b   :  { %v5411_v20 = vadd.f32 %v5970_v12, %v5969_v5  ;;  %v5415_v17 = vadd.f32 %v5972_v57, %v5971_v60  ;;  %v5977_v9 = vld [vmem:[#allocation10_spill] sm:$0xff]  ;;  %v5980_v40 = vld [vmem:[#allocation55_spill] sm:$0xff]  ;;  %v5982_v34 = vld [vmem:[#allocation56_spill] sm:$0xff] }
 0x50c   :  { %v2034_v54 = vpop.f32.mrf.mxu0  ;;  %v2155_v58 = vpop.f32.mrf.mxu1  ;;  %v5978_v25 = vld [vmem:[#allocation54_spill] sm:$0xff] }
 0x50d   :  { %v5427_v54 = vadd.f32 %v5978_v25, %v5977_v9  ;;  %v5981_v50 = vld [vmem:[#allocation14_spill] sm:$0xff]  ;;  %v5987_v9 = vld [vmem:[#allocation12_spill] sm:$0xff] }
 0x50e   :  { %v2358_v33 = vpop.f32.mrf.mxu0  ;;  %v2479_v47 = vpop.f32.mrf.mxu1  ;;  %v5435_v5 = vadd.f32 %v5982_v34, %v5981_v50  ;;  %v5983_v57 = vld [vmem:[#allocation6_spill] sm:$0xff]  ;;  %v5988_v25 = vld [vmem:[#allocation60_spill] sm:$0xff] }
 0x50f   :  { %v2566_v31 = vadd.f32 %v2358_v33, %v1950_v63  ;;  %v2568_v46 = vadd.f32 %v2479_v47, %v2071_v11  ;;  %v5973_v63 = vld [vmem:[#allocation16_spill] sm:$0xff]  ;;  %v5979_v47 = vld [vmem:[#allocation5_spill] sm:$0xff] }
 0x510   :  { %v2360_v21 = vpop.f32.mrf.mxu0  ;;  %v5419_v48 = vadd.f32 %v5974_v3, %v5973_v63  ;;  %v2481_v41 = vpop.f32.mrf.mxu1  ;;  %v5431_v16 = vadd.f32 %v5980_v40, %v5979_v47  ;;  %v5984_v63 = vld [vmem:[#allocation58_spill] sm:$0xff]  ;;  %v5447_v47 = vadd.f32 %v5988_v25, %v5987_v9  ;;  %v5989_v40 = vld [vmem:[#allocation17_spill] sm:$0xff] }
 0x511   :  { %v2567_v55 = vadd.f32 %v2360_v21, %v1952_v49  ;;  %v2736_v11 = vadd.f32 %v2654_v56, %v2566_v31  ;;  %v2738_v58 = vadd.f32 %v2654_v56, %v2568_v46  ;;  %v2569_v33 = vadd.f32 %v2481_v41, %v2073_v29  ;;  %v2659_v21 = vpop.permute.xlu1 %2658  ;;  %v5985_v31 = vld [vmem:[#allocation11_spill] sm:$0xff] }
 0x512   :  { %v2362_v22 = vpop.f32.mrf.mxu0  ;;  %v2483_v49 = vpop.f32.mrf.mxu1  ;;  %v5439_v3 = vadd.f32 %v5984_v63, %v5983_v57  ;;  %v5986_v46 = vld [vmem:[#allocation59_spill] sm:$0xff] }
 0x513   :  { %v2737_v12 = vadd.f32 %v2654_v56, %v2567_v55  ;;  %v2570_v60 = vadd.f32 %v2362_v22, %v1954_v8  ;;  %v5443_v29 = vadd.f32 %v5986_v46, %v5985_v31  ;;  %v2739_v19 = vadd.f32 %v2654_v56, %v2569_v33  ;;  %v5990_v55 = vld [vmem:[#allocation62_spill] sm:$0xff] }
 0x514   :  { %v2572_v18 = vadd.f32 %v2483_v49, %v2075_v10  ;;  %v2364_v41 = vpop.f32.mrf.mxu0  ;;  %v5451_v8 = vadd.f32 %v5990_v55, %v5989_v40  ;;  %v2485_v34 = vpop.f32.mrf.mxu1  ;;  %v2804_v57 = vmax.f32 %v2736_v11, 0.0  ;;  %v2806_v63 = vmax.f32 %v2738_v58, 0.0  ;;  %v5992_v55 = vld [vmem:[#allocation63_spill] sm:$0xff] }
 0x515   :  { %v2740_v22 = vadd.f32 %v2659_v21, %v2570_v60  ;;  %v2571_v50 = vadd.f32 %v2364_v41, %v1956_v4  ;;  %v2573_v31 = vadd.f32 %v2485_v34, %v5319_v24  ;;  %v2805_v56 = vmax.f32 %v2737_v12, 0.0 }
 0x516   :  { %v2742_v43 = vadd.f32 %v2659_v21, %v2572_v18  ;;  %v2368_v46 = vpop.f32.mrf.mxu0  ;;  %v2489_v9 = vpop.f32.mrf.mxu1  ;;  %v2807_v25 = vmax.f32 %v2739_v19, 0.0 }
 0x517   :  { %v2808_v10 = vmax.f32 %v2740_v22, 0.0  ;;  %v2741_v33 = vadd.f32 %v2659_v21, %v2571_v50  ;;  %v2574_v49 = vadd.f32 %v2368_v46, %v5325_v52  ;;  %v2743_v14 = vadd.f32 %v2659_v21, %v2573_v31  ;;  %v5991_v21 = vld [vmem:[#allocation18_spill] sm:$0xff] }
 0x518   :  { %v2810_v26 = vmax.f32 %v2742_v43, 0.0  ;;  %v2576_v40 = vadd.f32 %v2489_v9, %v5329_v7  ;;  %v2370_v60 = vpop.f32.mrf.mxu0  ;;  %v2491_v18 = vpop.f32.mrf.mxu1  ;;  %v5466_v7 = vadd.f32 %v5992_v55, %v5991_v21  ;;  %v5997_v9 = vld [vmem:[#allocation21_spill] sm:$0xff] }
 0x519   :  { %v5456_v4 = vpack.c.bf16 %v2808_v10, %v2804_v57  ;;  %v2809_v11 = vmax.f32 %v2741_v33, 0.0  ;;  %v2744_v58 = vadd.f32 %v5321_v44, %v2574_v49  ;;  %v2575_v24 = vadd.f32 %v2370_v60, %v5333_v35  ;;  %v5993_v35 = vld [vmem:[#allocation19_spill] sm:$0xff]  ;;  %v5995_v10 = vld [vmem:[#allocation20_spill] sm:$0xff]  ;;  %v5996_v33 = vld [vmem:[#allocation66_spill] sm:$0xff] }
 0x51a   :  { %v5460_v12 = vpack.c.bf16 %v2810_v26, %v2806_v63  ;;  %v2811_v41 = vmax.f32 %v2743_v14, 0.0  ;;  %v2746_v52 = vadd.f32 %v5321_v44, %v2576_v40  ;;  %v2577_v19 = vadd.f32 %v2491_v18, %v5337_v13  ;;  %v2372_v43 = vpop.f32.mrf.mxu0  ;;  %v2493_v34 = vpop.f32.mrf.mxu1  ;;  %v5994_v26 = vld [vmem:[#allocation64_spill] sm:$0xff] }
 0x51b   :  { %v2745_v22 = vadd.f32 %v5321_v44, %v2575_v24  ;;  %v2578_v50 = vadd.f32 %v2372_v43, %v5341_v15  ;;  %v5470_v57 = vpack.c.bf16 %v2809_v11, %v2805_v56  ;;  %v5474_v63 = vadd.f32 %v5994_v26, %v5993_v35  ;;  %v5998_v15 = vld [vmem:[#allocation67_spill] sm:$0xff] }
 0x51c   :  { %v2747_v14 = vadd.f32 %v5321_v44, %v2577_v19  ;;  %v2580_v13 = vadd.f32 %v2493_v34, %v5345_v62  ;;  %v2374_v31 = vpop.f32.mrf.mxu0  ;;  %v5478_v46 = vpack.c.bf16 %v2811_v41, %v2807_v25  ;;  %v5482_v49 = vadd.f32 %v5996_v33, %v5995_v10  ;;  %v2495_v11 = vpop.f32.mrf.mxu1 }
 0x51d   :  { %v5486_v40 = vadd.f32 %v5998_v15, %v5997_v9  ;;  %v2748_v56 = vadd.f32 %v5371_v37, %v2578_v50  ;;  %v2579_v60 = vadd.f32 %v2374_v31, %v5349_v51  ;;  %v2812_v24 = vmax.f32 %v2744_v58, 0.0  ;;  %v6000_v9 = vld [vmem:[#allocation68_spill] sm:$0xff] }
 0x51e   :  { %v2814_v44 = vmax.f32 %v2746_v52, 0.0  ;;  %v2750_v62 = vadd.f32 %v5371_v37, %v2580_v13  ;;  %v2581_v25 = vadd.f32 %v2495_v11, %v5353_v53  ;;  %v2378_v18 = vpop.f32.mrf.mxu0  ;;  %v2813_v41 = vmax.f32 %v2745_v22, 0.0  ;;  %v2499_v55 = vpop.f32.mrf.mxu1 }
 0x51f   :  { %v2816_v19 = vmax.f32 %v2748_v56, 0.0  ;;  %v2749_v43 = vadd.f32 %v5371_v37, %v2579_v60  ;;  %v2582_v21 = vadd.f32 %v2378_v18, %v5357_v1  ;;  %v2815_v34 = vmax.f32 %v2747_v14, 0.0 }
 0x520   :  { %v2818_v35 = vmax.f32 %v2750_v62, 0.0  ;;  %v2751_v50 = vadd.f32 %v5371_v37, %v2581_v25  ;;  %v2584_v51 = vadd.f32 %v2499_v55, %v5361_v45  ;;  %v2380_v58 = vpop.f32.mrf.mxu0  ;;  %v2501_v13 = vpop.f32.mrf.mxu1  ;;  %v5999_v37 = vld [vmem:[#allocation22_spill] sm:$0xff]  ;;  %v6005_v55 = vld [vmem:[#allocation25_spill] sm:$0xff] }
 0x521   :  { %v5496_v52 = vpack.c.bf16 %v2816_v19, %v2812_v24  ;;  %v2817_v26 = vmax.f32 %v2749_v43, 0.0  ;;  %v2752_v53 = vadd.f32 %v5286_v30, %v2582_v21  ;;  %v2583_v22 = vadd.f32 %v2380_v58, %v5365_v23  ;;  %v6001_v23 = vld [vmem:[#allocation23_spill] sm:$0xff]  ;;  %v6002_v24 = vld [vmem:[#allocation70_spill] sm:$0xff]  ;;  %v6003_v19 = vld [vmem:[#allocation24_spill] sm:$0xff] }
 0x522   :  { %v5500_v31 = vpack.c.bf16 %v2818_v35, %v2814_v44  ;;  %v2819_v10 = vmax.f32 %v2751_v50, 0.0  ;;  %v2754_v1 = vadd.f32 %v5286_v30, %v2584_v51  ;;  %v2585_v14 = vadd.f32 %v2501_v13, %v5369_v0  ;;  %v2382_v33 = vpop.f32.mrf.mxu0  ;;  %v2503_v60 = vpop.f32.mrf.mxu1  ;;  %v6004_v43 = vld [vmem:[#allocation71_spill] sm:$0xff] }
 0x523   :  { %v5506_v45 = vadd.f32 %v6000_v9, %v5999_v37  ;;  %v2753_v15 = vadd.f32 %v5286_v30, %v2583_v22  ;;  %v2586_v56 = vadd.f32 %v2382_v33, %v5375_v27  ;;  %v5510_v11 = vpack.c.bf16 %v2817_v26, %v2813_v41  ;;  %v6006_v27 = vld [vmem:[#allocation72_spill] sm:$0xff] }
 0x524   :  { %v5514_v44 = vadd.f32 %v6002_v24, %v6001_v23  ;;  %v2755_v62 = vadd.f32 %v5286_v30, %v2585_v14  ;;  %v2588_v0 = vadd.f32 %v2503_v60, %v5379_v2  ;;  %v2384_v25 = vpop.f32.mrf.mxu0  ;;  %v5518_v18 = vpack.c.bf16 %v2819_v10, %v2815_v34  ;;  %v2505_v51 = vpop.f32.mrf.mxu1  ;;  %v6007_v23 = vld [vmem:[#allocation85_spill] sm:$0xff] }
 0x525   :  { %v5522_v21 = vadd.f32 %v6004_v43, %v6003_v19  ;;  %v5526_v35 = vadd.f32 %v6006_v27, %v6005_v55  ;;  %v2756_v41 = vadd.f32 %v5297_v59, %v2586_v56  ;;  %v2587_v50 = vadd.f32 %v2384_v25, %v5383_v61  ;;  %v6009_v43 = vld [vmem:[#allocation74_spill] sm:$0xff] }
 0x526   :  { %v2820_v58 = vmax.f32 %v2752_v53, 0.0  ;;  %v2822_v30 = vmax.f32 %v2754_v1, 0.0  ;;  %v2758_v2 = vadd.f32 %v5297_v59, %v2588_v0  ;;  %v2589_v34 = vadd.f32 %v2505_v51, %v5387_v32  ;;  %v2388_v26 = vpop.f32.mrf.mxu0  ;;  %v2509_v33 = vpop.f32.mrf.mxu1  ;;  %v6011_v51 = vld [vmem:[#allocation75_spill] sm:$0xff] }
 0x527   :  { %v2821_v22 = vmax.f32 %v2753_v15, 0.0  ;;  %v2824_v13 = vmax.f32 %v2756_v41, 0.0  ;;  %v2757_v10 = vadd.f32 %v5297_v59, %v2587_v50  ;;  %v2590_v14 = vadd.f32 %v2388_v26, %v5391_v36  ;;  %v6012_v26 = vld [vmem:[#allocation28_spill] sm:$0xff] }
 0x528   :  { %v2823_v37 = vmax.f32 %v2755_v62, 0.0  ;;  %v2826_v9 = vmax.f32 %v2758_v2, 0.0  ;;  %v2759_v56 = vadd.f32 %v5297_v59, %v2589_v34  ;;  %v2592_v61 = vadd.f32 %v2509_v33, %v5395_v39  ;;  %v2390_v53 = vpop.f32.mrf.mxu0  ;;  %v2511_v24 = vpop.f32.mrf.mxu1  ;;  %v6008_v59 = vld [vmem:[#allocation26_spill] sm:$0xff] }
 0x529   :  { %v5536_v1 = vpack.c.bf16 %v2824_v13, %v2820_v58  ;;  %v2825_v60 = vmax.f32 %v2757_v10, 0.0  ;;  %v2760_v32 = vadd.f32 %v6007_v23, %v2590_v14  ;;  %v2591_v15 = vadd.f32 %v2390_v53, %v5399_v42  ;;  %v6010_v42 = vld [vmem:[#allocation27_spill] sm:$0xff]  ;;  %v6013_v13 = vld [vmem:[#allocation76_spill] sm:$0xff]  ;;  %v6014_v14 = vld [vmem:[#allocation29_spill] sm:$0xff] }
 0x52a   :  { %v5540_v0 = vpack.c.bf16 %v2826_v9, %v2822_v30  ;;  %v2827_v25 = vmax.f32 %v2759_v56, 0.0  ;;  %v2762_v36 = vadd.f32 %v6007_v23, %v2592_v61  ;;  %v2593_v62 = vadd.f32 %v2511_v24, %v5403_v6  ;;  %v2392_v19 = vpop.f32.mrf.mxu0  ;;  %v2513_v41 = vpop.f32.mrf.mxu1 }
 0x52b   :  { %v5546_v39 = vadd.f32 %v6009_v43, %v6008_v59  ;;  %v2761_v55 = vadd.f32 %v6007_v23, %v2591_v15  ;;  %v2594_v27 = vadd.f32 %v2392_v19, %v5407_v28  ;;  %v5550_v50 = vpack.c.bf16 %v2825_v60, %v2821_v22  ;;  %v6015_v28 = vld [vmem:[#allocation78_spill] sm:$0xff]  ;;  %v6016_v22 = vld [vmem:[#allocation89_spill] sm:$0xff] }
 0x52c   :  { %v5554_v58 = vadd.f32 %v6011_v51, %v6010_v42  ;;  %v2763_v30 = vadd.f32 %v6007_v23, %v2593_v62  ;;  %v2596_v6 = vadd.f32 %v2513_v41, %v5411_v20  ;;  %v2394_v2 = vpop.f32.mrf.mxu0  ;;  %v5558_v34 = vpack.c.bf16 %v2827_v25, %v2823_v37  ;;  %v2515_v61 = vpop.f32.mrf.mxu1  ;;  %v6017_v42 = vld [vmem:[#allocation77_spill] sm:$0xff] }
 0x52d   :  { %v5562_v10 = vadd.f32 %v6013_v13, %v6012_v26  ;;  %v5566_v33 = vadd.f32 %v6015_v28, %v6014_v14  ;;  %v2764_v9 = vadd.f32 %v6016_v22, %v2594_v27  ;;  %v2595_v56 = vadd.f32 %v2394_v2, %v5415_v17  ;;  %v6018_v13 = vld [vmem:[#allocation30_spill] sm:$0xff]  ;;  %v6019_v14 = vld [vmem:[#allocation79_spill] sm:$0xff] }
 0x52e   :  { %v2828_v53 = vmax.f32 %v2760_v32, 0.0  ;;  %v2830_v60 = vmax.f32 %v2762_v36, 0.0  ;;  %v2766_v20 = vadd.f32 %v6016_v22, %v2596_v6  ;;  %v2597_v37 = vadd.f32 %v2515_v61, %v5419_v48  ;;  %v2398_v23 = vpop.f32.mrf.mxu0  ;;  %v2519_v19 = vpop.f32.mrf.mxu1  ;;  %v6021_v61 = vld [vmem:[#allocation80_spill] sm:$0xff] }
 0x52f   :  { %v2829_v15 = vmax.f32 %v2761_v55, 0.0  ;;  %v2832_v24 = vmax.f32 %v2764_v9, 0.0  ;;  %v2765_v25 = vadd.f32 %v6016_v22, %v2595_v56  ;;  %v2598_v62 = vadd.f32 %v2398_v23, %v5423_v38  ;;  %v6022_v23 = vld [vmem:[#allocation32_spill] sm:$0xff] }
 0x530   :  { %v2831_v59 = vmax.f32 %v2763_v30, 0.0  ;;  %v2834_v43 = vmax.f32 %v2766_v20, 0.0  ;;  %v2767_v27 = vadd.f32 %v6016_v22, %v2597_v37  ;;  %v2600_v17 = vadd.f32 %v2519_v19, %v5427_v54  ;;  %v2400_v32 = vpop.f32.mrf.mxu0  ;;  %v2521_v51 = vpop.f32.mrf.mxu1 }
 0x531   :  { %v5576_v36 = vpack.c.bf16 %v2832_v24, %v2828_v53  ;;  %v2833_v41 = vmax.f32 %v2765_v25, 0.0  ;;  %v2768_v48 = vadd.f32 %v6017_v42, %v2598_v62  ;;  %v2599_v55 = vadd.f32 %v2400_v32, %v5431_v16  ;;  %v6020_v16 = vld [vmem:[#allocation31_spill] sm:$0xff]  ;;  %v6023_v24 = vld [vmem:[#allocation82_spill] sm:$0xff]  ;;  %v6024_v62 = vld [vmem:[#allocation33_spill] sm:$0xff] }
 0x532   :  { %v5580_v6 = vpack.c.bf16 %v2834_v43, %v2830_v60  ;;  %v2835_v2 = vmax.f32 %v2767_v27, 0.0  ;;  %v2770_v38 = vadd.f32 %v6017_v42, %v2600_v17  ;;  %v2601_v30 = vadd.f32 %v2521_v51, %v5435_v5  ;;  %v2402_v26 = vpop.f32.mrf.mxu0  ;;  %v2523_v9 = vpop.f32.mrf.mxu1 }
 0x533   :  { %v5586_v54 = vadd.f32 %v6019_v14, %v6018_v13  ;;  %v2769_v28 = vadd.f32 %v6017_v42, %v2599_v55  ;;  %v2602_v22 = vadd.f32 %v2402_v26, %v5439_v3  ;;  %v5590_v56 = vpack.c.bf16 %v2833_v41, %v2829_v15  ;;  %v6025_v3 = vld [vmem:[#allocation83_spill] sm:$0xff]  ;;  %v6026_v15 = vld [vmem:[#allocation81_spill] sm:$0xff] }
 0x534   :  { %v5594_v53 = vadd.f32 %v6021_v61, %v6020_v16  ;;  %v2771_v60 = vadd.f32 %v6017_v42, %v2601_v30  ;;  %v2604_v5 = vadd.f32 %v2523_v9, %v5443_v29  ;;  %v2404_v20 = vpop.f32.mrf.mxu0  ;;  %v5598_v37 = vpack.c.bf16 %v2835_v2, %v2831_v59  ;;  %v2525_v17 = vpop.f32.mrf.mxu1  ;;  %v6027_v16 = vld [vmem:[#allocation69_spill] sm:$0xff] }
 0x535   :  { %v5602_v25 = vadd.f32 %v6023_v24, %v6022_v23  ;;  %v5606_v19 = vadd.f32 %v6025_v3, %v6024_v62  ;;  %v2772_v43 = vadd.f32 %v6026_v15, %v2602_v22  ;;  %v2603_v27 = vadd.f32 %v2404_v20, %v5447_v47  ;;  %v6028_v24 = vld [vmem:[#allocation34_spill] sm:$0xff]  ;;  %v6029_v62 = vld [vmem:[#allocation84_spill] sm:$0xff] }
 0x536   :  { %v2836_v32 = vmax.f32 %v2768_v48, 0.0  ;;  %v2838_v41 = vmax.f32 %v2770_v38, 0.0  ;;  %v2774_v29 = vadd.f32 %v6026_v15, %v2604_v5  ;;  %v2605_v59 = vadd.f32 %v2525_v17, %v5451_v8  ;;  %v2408_v42 = vpop.f32.mrf.mxu0  ;;  %v2529_v26 = vpop.f32.mrf.mxu1  ;;  %v6031_v17 = vld [vmem:[#allocation86_spill] sm:$0xff] }
 0x537   :  { %v2837_v55 = vmax.f32 %v2769_v28, 0.0  ;;  %v2840_v51 = vmax.f32 %v2772_v43, 0.0  ;;  %v2773_v2 = vadd.f32 %v6026_v15, %v2603_v27  ;;  %v2606_v30 = vadd.f32 %v2408_v42, %v5466_v7  ;;  %v6032_v42 = vld [vmem:[#allocation36_spill] sm:$0xff] }
 0x538   :  { %v2839_v13 = vmax.f32 %v2771_v60, 0.0  ;;  %v2842_v14 = vmax.f32 %v2774_v29, 0.0  ;;  %v2775_v22 = vadd.f32 %v6026_v15, %v2605_v59  ;;  %v2608_v47 = vadd.f32 %v2529_v26, %v5474_v63  ;;  %v2410_v48 = vpop.f32.mrf.mxu0  ;;  %v2531_v61 = vpop.f32.mrf.mxu1 }
 0x539   :  { %v5616_v38 = vpack.c.bf16 %v2840_v51, %v2836_v32  ;;  %v2841_v9 = vmax.f32 %v2773_v2, 0.0  ;;  %v2776_v8 = vadd.f32 %v6027_v16, %v2606_v30  ;;  %v2607_v28 = vadd.f32 %v2410_v48, %v5482_v49  ;;  %v6030_v49 = vld [vmem:[#allocation35_spill] sm:$0xff]  ;;  %v6034_v30 = vld [vmem:[#allocation37_spill] sm:$0xff] }
 0x53a   :  { %v5620_v5 = vpack.c.bf16 %v2842_v14, %v2838_v41  ;;  %v2843_v20 = vmax.f32 %v2775_v22, 0.0  ;;  %v2778_v7 = vadd.f32 %v6027_v16, %v2608_v47  ;;  %v2609_v60 = vadd.f32 %v2531_v61, %v5486_v40  ;;  %v2412_v23 = vpop.f32.mrf.mxu0  ;;  %v2533_v43 = vpop.f32.mrf.mxu1  ;;  %v6033_v51 = vld [vmem:[#allocation87_spill] sm:$0xff] }
 0x53b   :  { %v5626_v63 = vadd.f32 %v6029_v62, %v6028_v24  ;;  %v2777_v3 = vadd.f32 %v6027_v16, %v2607_v28  ;;  %v2610_v15 = vadd.f32 %v2412_v23, %v5506_v45  ;;  %v5630_v27 = vpack.c.bf16 %v2841_v9, %v2837_v55  ;;  %v6035_v45 = vld [vmem:[#allocation88_spill] sm:$0xff]  ;;  %v6036_v55 = vld [vmem:[#allocation73_spill] sm:$0xff] }
 0x53c   :  { %v5634_v32 = vadd.f32 %v6031_v17, %v6030_v49  ;;  %v2779_v41 = vadd.f32 %v6027_v16, %v2609_v60  ;;  %v2612_v40 = vadd.f32 %v2533_v43, %v5514_v44  ;;  %v2414_v29 = vpop.f32.mrf.mxu0  ;;  %v5638_v59 = vpack.c.bf16 %v2843_v20, %v2839_v13  ;;  %v2535_v47 = vpop.f32.mrf.mxu1  ;;  %v6037_v49 = vld [vmem:[#allocation61_spill] sm:$0xff] }
 0x53d   :  { %v5642_v2 = vadd.f32 %v6033_v51, %v6032_v42  ;;  %v5646_v26 = vadd.f32 %v6035_v45, %v6034_v30  ;;  %v2780_v14 = vadd.f32 %v6036_v55, %v2610_v15  ;;  %v2611_v22 = vadd.f32 %v2414_v29, %v5522_v21  ;;  %v6038_v51 = vld [vmem:[#allocation38_spill] sm:$0xff] }
 0x53e   :  { %v2844_v48 = vmax.f32 %v2776_v8, 0.0  ;;  %v2846_v9 = vmax.f32 %v2778_v7, 0.0  ;;  %v2782_v44 = vadd.f32 %v6036_v55, %v2612_v40  ;;  %v2613_v13 = vadd.f32 %v2535_v47, %v5526_v35  ;;  %v2418_v16 = vpop.f32.mrf.mxu0  ;;  %v2539_v23 = vpop.f32.mrf.mxu1  ;;  %v6039_v30 = vld [vmem:[#allocation90_spill] sm:$0xff]  ;;  %v6041_v47 = vld [vmem:[#allocation91_spill] sm:$0xff] }
 0x53f   :  { %v2845_v28 = vmax.f32 %v2777_v3, 0.0  ;;  %v2848_v61 = vmax.f32 %v2780_v14, 0.0  ;;  %v2781_v20 = vadd.f32 %v6036_v55, %v2611_v22  ;;  %v2614_v60 = vadd.f32 %v2418_v16, %v5546_v39  ;;  %v6042_v16 = vld [vmem:[#allocation40_spill] sm:$0xff] }
 0x540   :  { %v2847_v24 = vmax.f32 %v2779_v41, 0.0  ;;  %v2850_v62 = vmax.f32 %v2782_v44, 0.0  ;;  %v2783_v15 = vadd.f32 %v6036_v55, %v2613_v13  ;;  %v2616_v21 = vadd.f32 %v2539_v23, %v5554_v58  ;;  %v2420_v8 = vpop.f32.mrf.mxu0  ;;  %v2541_v17 = vpop.f32.mrf.mxu1  ;;  %v6045_v23 = vld [vmem:[#allocation93_spill] sm:$0xff] }
 0x541   :  { %v5656_v7 = vpack.c.bf16 %v2848_v61, %v2844_v48  ;;  %v2849_v43 = vmax.f32 %v2781_v20, 0.0  ;;  %v2784_v35 = vadd.f32 %v6037_v49, %v2614_v60  ;;  %v2615_v3 = vadd.f32 %v2420_v8, %v5562_v10  ;;  %v6040_v10 = vld [vmem:[#allocation39_spill] sm:$0xff]  ;;  %v6043_v61 = vld [vmem:[#allocation92_spill] sm:$0xff]  ;;  %v6044_v60 = vld [vmem:[#allocation41_spill] sm:$0xff] }
 0x542   :  { %v5660_v40 = vpack.c.bf16 %v2850_v62, %v2846_v9  ;;  %v2851_v29 = vmax.f32 %v2783_v15, 0.0  ;;  %v2786_v39 = vadd.f32 %v6037_v49, %v2616_v21  ;;  %v2617_v41 = vadd.f32 %v2541_v17, %v5566_v33  ;;  %v2422_v42 = vpop.f32.mrf.mxu0  ;;  %v2543_v14 = vpop.f32.mrf.mxu1 }
 0x543   :  { %v2024_v58 = vadd.f32 %v6039_v30, %v6038_v51  ;;  %v2785_v45 = vadd.f32 %v6037_v49, %v2615_v3  ;;  %v2618_v55 = vadd.f32 %v2422_v42, %v5586_v54  ;;  %v5668_v22 = vpack.c.bf16 %v2849_v43, %v2845_v28  ;;  %v6046_v54 = vld [vmem:[#allocation65_spill] sm:$0xff] }
 0x544   :  { %v2145_v48 = vadd.f32 %v6041_v47, %v6040_v10  ;;  %v2787_v9 = vadd.f32 %v6037_v49, %v2617_v41  ;;  %v2620_v44 = vadd.f32 %v2543_v14, %v5594_v53  ;;  %v2424_v13 = vpop.f32.mrf.mxu0  ;;  %v5674_v33 = vpack.c.bf16 %v2851_v29, %v2847_v24  ;;  %v2545_v21 = vpop.f32.mrf.mxu1 }
 0x545   :  { %v2026_v20 = vadd.f32 %v6043_v61, %v6042_v16  ;;  %v2147_v62 = vadd.f32 %v6045_v23, %v6044_v60  ;;  %v2788_v15 = vadd.f32 %v6046_v54, %v2618_v55  ;;  %v2619_v28 = vadd.f32 %v2424_v13, %v5602_v25  ;;  %v6048_v61 = vld [vmem:[#allocation42_spill] sm:$0xff] }
 0x546   :  { %v2852_v8 = vmax.f32 %v2784_v35, 0.0  ;;  %v2854_v43 = vmax.f32 %v2786_v39, 0.0  ;;  %v2790_v49 = vadd.f32 %v6046_v54, %v2620_v44  ;;  %v2621_v53 = vadd.f32 %v2545_v21, %v5606_v19  ;;  %v2428_v3 = vpop.f32.mrf.mxu0  ;;  %v2549_v42 = vpop.f32.mrf.mxu1  ;;  %v6047_v19 = vld [vmem:[#allocation53_spill] sm:$0xff]  ;;  %v6050_v21 = vld [vmem:[#allocation43_spill] sm:$0xff] }
 0x547   :  { %v2853_v24 = vmax.f32 %v2785_v45, 0.0  ;;  %v2856_v17 = vmax.f32 %v2788_v15, 0.0  ;;  %v2789_v29 = vadd.f32 %v6046_v54, %v2619_v28  ;;  %v2622_v41 = vadd.f32 %v2428_v3, %v5626_v63 }
 0x548   :  { %v2855_v51 = vmax.f32 %v2787_v9, 0.0  ;;  %v2858_v30 = vmax.f32 %v2790_v49, 0.0  ;;  %v2791_v55 = vadd.f32 %v6046_v54, %v2621_v53  ;;  %v2624_v25 = vadd.f32 %v2549_v42, %v5634_v32  ;;  %v2430_v35 = vpop.f32.mrf.mxu0  ;;  %v2551_v47 = vpop.f32.mrf.mxu1  ;;  %v6049_v32 = vld [vmem:[#allocation94_spill] sm:$0xff] }
 0x549   :  { %v5688_v39 = vpack.c.bf16 %v2856_v17, %v2852_v8  ;;  %v2857_v14 = vmax.f32 %v2789_v29, 0.0  ;;  %v2792_v10 = vadd.f32 %v6047_v19, %v2622_v41  ;;  %v2623_v45 = vadd.f32 %v2430_v35, %v5642_v2  ;;  %v6051_v8 = vld [vmem:[#allocation95_spill] sm:$0xff]  ;;  %v6052_v17 = vld [vmem:[#allocation44_spill] sm:$0xff]  ;;  %v6053_v29 = vld [vmem:[#allocation97_spill] sm:$0xff] }
 0x54a   :  { %v5692_v44 = vpack.c.bf16 %v2858_v30, %v2854_v43  ;;  %v2859_v63 = vmax.f32 %v2791_v55, 0.0  ;;  %v2794_v9 = vadd.f32 %v6047_v19, %v2624_v25  ;;  %v2625_v13 = vadd.f32 %v2551_v47, %v5646_v26  ;;  %v2432_v16 = vpop.f32.mrf.mxu0  ;;  %v2553_v15 = vpop.f32.mrf.mxu1  ;;  %v6054_v41 = vld [vmem:[#allocation45_spill] sm:$0xff]  ;;  %v6055_v42 = vld [vmem:[#allocation98_spill] sm:$0xff] }
 0x54b   :  { %v2030_v60 = vadd.f32 %v6049_v32, %v6048_v61  ;;  %v2793_v23 = vadd.f32 %v6047_v19, %v2623_v45  ;;  %v2626_v54 = vadd.f32 %v2432_v16, %v2024_v58  ;;  %v2914_v28 = vpack.c.bf16 %v2857_v14, %v2853_v24  ;;  %v6056_v55 = vld [vmem:[#allocation57_spill] sm:$0xff]  ;;  %v2734_v61 = vpop.permute.xlu0 %2733 }
 0x54c   :  { %v2151_v2 = vadd.f32 %v6051_v8, %v6050_v21  ;;  %v2795_v43 = vadd.f32 %v6047_v19, %v2625_v13  ;;  %v2628_v49 = vadd.f32 %v2553_v15, %v2145_v48  ;;  %v2434_v53 = vpop.f32.mrf.mxu0  ;;  %v2916_v3 = vpack.c.bf16 %v2859_v63, %v2855_v51  ;;  %v2555_v58 = vpop.f32.mrf.mxu1 }
 0x54d   :  { %v2032_v26 = vadd.f32 %v6053_v29, %v6052_v17  ;;  %v2153_v30 = vadd.f32 %v6055_v42, %v6054_v41  ;;  %v2796_v25 = vadd.f32 %v6056_v55, %v2626_v54  ;;  %v2627_v35 = vadd.f32 %v2434_v53, %v2026_v20 }
 0x54e   :  { %v2860_v45 = vmax.f32 %v2792_v10, 0.0  ;;  %v2862_v24 = vmax.f32 %v2794_v9, 0.0  ;;  %v2798_v14 = vadd.f32 %v6056_v55, %v2628_v49  ;;  %v2629_v47 = vadd.f32 %v2555_v58, %v2147_v62  ;;  %v2438_v16 = vpop.f32.mrf.mxu0  ;;  %v2559_v13 = vpop.f32.mrf.mxu1 }
 0x54f   :  { %v2861_v19 = vmax.f32 %v2793_v23, 0.0  ;;  %v2864_v48 = vmax.f32 %v2796_v25, 0.0  ;;  %v2797_v51 = vadd.f32 %v6056_v55, %v2627_v35  ;;  %v2630_v63 = vadd.f32 %v2438_v16, %v2030_v60 }
 0x550   :  { %v2863_v32 = vmax.f32 %v2795_v43, 0.0  ;;  %v2866_v15 = vmax.f32 %v2798_v14, 0.0  ;;  %v2799_v21 = vadd.f32 %v6056_v55, %v2629_v47  ;;  %v2632_v54 = vadd.f32 %v2559_v13, %v2151_v2  ;;  %v2440_v20 = vpop.f32.mrf.mxu0  ;;  %v2561_v49 = vpop.f32.mrf.mxu1  ;;  %v6057_v43 = vld [vmem:[#allocation96_spill] sm:$0xff] }
 0x551   :  { %v2917_v8 = vpack.c.bf16 %v2864_v48, %v2860_v45  ;;  %v2865_v10 = vmax.f32 %v2797_v51, 0.0  ;;  %v2800_v9 = vadd.f32 %v2734_v61, %v2630_v63  ;;  %v2631_v53 = vadd.f32 %v2440_v20, %v2032_v26 }
 0x552   :  { %v2919_v62 = vpack.c.bf16 %v2866_v15, %v2862_v24  ;;  %v2867_v17 = vmax.f32 %v2799_v21, 0.0  ;;  %v2802_v23 = vadd.f32 %v2734_v61, %v2632_v54  ;;  %v2633_v29 = vadd.f32 %v2561_v49, %v2153_v30  ;;  %v2442_v41 = vpop.f32.mrf.mxu0  ;;  %v2563_v35 = vpop.f32.mrf.mxu1 }
 0x553   :  { %v2868_v42 = vmax.f32 %v2800_v9, 0.0  ;;  %v2801_v60 = vadd.f32 %v2734_v61, %v2631_v53  ;;  %v2918_v25 = vpack.c.bf16 %v2865_v10, %v2861_v19  ;;  %v3136_v58 = vsel %vm3134_vm9, %v6057_v43, 0 }
 0x554   :  { %v2870_v55 = vmax.f32 %v2802_v23, 0.0  ;;  %v2803_v2 = vadd.f32 %v2734_v61, %v2633_v29  ;;  %v2920_v14 = vpack.c.bf16 %v2867_v17, %v2863_v32  ;;  %v2443_v45 = vpop.f32.mrf.mxu0  ;;  %v2564_v26 = vpop.f32.mrf.mxu1 }
 0x555   :  { %v2921_v47 = vpack.c.bf16 %v2868_v42, %v2868_v42  ;;  %v2869_v16 = vmax.f32 %v2801_v60, 0.0  ;;  %3149 = vmatprep.subr.bf16.mxu0 %v2918_v25 }
 0x556   :  { %v2923_v24 = vpack.c.bf16 %v2870_v55, %v2870_v55  ;;  %v2871_v48 = vmax.f32 %v2803_v2, 0.0  ;;  %3270 = vmatprep.subr.bf16.mxu1 %v2920_v14  ;;  %3150 = vmatpush1.bf16.msra.mxu0 %v2917_v8 }
 0x557   :  { %v3138_v30 = vand.u32 %v3136_v58, %v2921_v47  ;;  %v2922_v51 = vpack.c.bf16 %v2869_v16, %v2869_v16  ;;  %3271 = vmatpush1.bf16.msra.mxu1 %v2919_v62  ;;  %3151 = vmatprep.subr.bf16.mxu0 %v2914_v28 }
 0x558   :  { %v3144_v19 = vand.u32 %v3136_v58, %v2923_v24  ;;  %v2924_v63 = vpack.c.bf16 %v2871_v48, %v2871_v48  ;;  %3272 = vmatprep.subr.bf16.mxu1 %v2916_v3  ;;  %v2950_v3 = vpop.permute.xlu0 %2949 }
 0x559   :  { %v3141_v13 = vand.u32 %v3136_v58, %v2922_v51 }
 0x55a   :  { %3152 = vmatpush1.bf16.msra.mxu0 %v5688_v39  ;;  %v3147_v61 = vand.u32 %v3136_v58, %v2924_v63 }
 0x55b   :  { %3273 = vmatpush1.bf16.msra.mxu1 %v5692_v44  ;;  %3153 = vmatprep.subr.bf16.mxu0 %v5668_v22 }
 0x55c   :  { %3274 = vmatprep.subr.bf16.mxu1 %v5674_v33  ;;  %v2960_v47 = vpop.permute.xlu0 %2959 }
 0x55e   :  { %3154 = vmatpush1.bf16.msra.mxu0 %v5656_v7 }
 0x55f   :  { %3275 = vmatpush1.bf16.msra.mxu1 %v5660_v40  ;;  %3155 = vmatprep.subr.bf16.mxu0 %v5630_v27  ;;  %v2945_v27 = vpop.permute.xlu1 %2944 }
 0x560   :  { %3276 = vmatprep.subr.bf16.mxu1 %v5638_v59 }
 0x562   :  { %3156 = vmatpush1.bf16.msra.mxu0 %v5616_v38 }
 0x563   :  { %3277 = vmatpush1.bf16.msra.mxu1 %v5620_v5  ;;  %3157 = vmatprep.subr.bf16.mxu0 %v5590_v56  ;;  %v2888_v56 = vld [vmem:[%s5820_s15 + $0x80] sm:$0x33]  ;;  %v2955_v23 = vpop.permute.xlu1 %2954 }
 0x564   :  { %3278 = vmatprep.subr.bf16.mxu1 %v5598_v37  ;;  %v3857_v37 = vld [vmem:[%s5820_s15 + $0x70] ss:$8 sps:$4 sm:$0xff]   ;;  %v3727_v38 = vcombine.high %v2888_v56, %v2888_v56  ;;  %v3726_v5 = vcombine.low %v2888_v56, %v2888_v56 }
 0x566   :  { %3158 = vmatpush1.bf16.msra.mxu0 %v5576_v36  ;;  %v3854_v36 = vld [vmem:[%s5820_s15 + $0x60] ss:$8 sps:$4 sm:$0xff]  }
 0x567   :  { %3279 = vmatpush1.bf16.msra.mxu1 %v5580_v6  ;;  %3159 = vmatprep.subr.bf16.mxu0 %v5550_v50  ;;  %v3851_v50 = vld [vmem:[%s5820_s15 + $0x50] ss:$8 sps:$4 sm:$0xff]   ;;  %v3855_v6 = vld [vmem:[%s5820_s15 + $0x74] ss:$8 sps:$4 sm:$0xff]  }
 0x568   :  { %3280 = vmatprep.subr.bf16.mxu1 %v5558_v34  ;;  %v3852_v34 = vld [vmem:[%s5820_s15 + $0x64] ss:$8 sps:$4 sm:$0xff]  }
 0x56a   :  { %3160 = vmatpush1.bf16.msra.mxu0 %v5536_v1  ;;  %v3848_v1 = vld [vmem:[%s5820_s15 + $0x40] ss:$8 sps:$4 sm:$0xff]  }
 0x56b   :  { %3281 = vmatpush1.bf16.msra.mxu1 %v5540_v0  ;;  %3161 = vmatprep.subr.bf16.mxu0 %v5510_v11  ;;  %v3834_v11 = vld [vmem:[%s5820_s15] ss:$8 sps:$4 sm:$0xff]   ;;  %v3849_v0 = vld [vmem:[%s5820_s15 + $0x54] ss:$8 sps:$4 sm:$0xff]  }
 0x56c   :  { %3282 = vmatprep.subr.bf16.mxu1 %v5518_v18  ;;  %v3846_v18 = vld [vmem:[%s5820_s15 + $0x44] ss:$8 sps:$4 sm:$0xff]  }
 0x56e   :  { %3162 = vmatpush1.bf16.msra.mxu0 %v5496_v52  ;;  %v3837_v52 = vld [vmem:[%s5820_s15 + $0x14] ss:$8 sps:$4 sm:$0xff]  }
 0x56f   :  { %3283 = vmatpush1.bf16.msra.mxu1 %v5500_v31  ;;  %3163 = vmatprep.subr.bf16.mxu0 %v5470_v57  ;;  %v3842_v57 = vld [vmem:[%s5820_s15 + $0x20] ss:$8 sps:$4 sm:$0xff]   ;;  %v3845_v31 = vld [vmem:[%s5820_s15 + $0x30] ss:$8 sps:$4 sm:$0xff]  }
 0x570   :  { %3284 = vmatprep.subr.bf16.mxu1 %v5478_v46  ;;  %v3843_v46 = vld [vmem:[%s5820_s15 + $0x34] ss:$8 sps:$4 sm:$0xff]  }
 0x572   :  { %3164 = vmatpush1.bf16.msra.mxu0 %v5456_v4  ;;  %v3839_v4 = vld [vmem:[%s5820_s15 + $0x10] ss:$8 sps:$4 sm:$0xff]  }
 0x573   :  { %3285 = vmatpush1.bf16.msra.mxu1 %v5460_v12  ;;  %3179 = vmatprep.subr.bf16.mxu0 %v3141_v13  ;;  %v3840_v12 = vld [vmem:[%s5820_s15 + $0x24] ss:$8 sps:$4 sm:$0xff]   ;;  %s3884_s15 = smov [#allocation2]  }
 0x574   :  { %3300 = vmatprep.subr.bf16.mxu1 %v3147_v61  ;;  %s3532_s27 = sshll.u32 %s3884_s15, 4  ;;  %s3533_s27 = int_to_ptr.vmem [resolvable:$true] %s3532_s27 }
 0x575   :  { %s3860_s14 = scalar_lea.vmem %s3533_s27, 8704  ;;  %p3865_p1 = scmp.lt.s32.totalorder %s3533_s27, %s3533_s27 }
 0x576   :  { %3180 = vmatpush2.bf16.msra.mxu0 %v3138_v30  ;;  %p3861_p0 = scmp.ne.s32.totalorder %s3533_s27, %s3860_s14  ;;  %p3866_p2 = scmp.lt.s32.totalorder %s3860_s14, %s3860_s14 }
 0x577   :  { %3301 = vmatpush2.bf16.msra.mxu1 %v3144_v19 }
 0x578   :  { %p3867_p3 = por %p3866_p2, %p3865_p1 }
 0x579   :  { %3182 = vmatmul.mubr.bf16.vlgmr.msra.gmra.mxu0 %v3834_v11 }
 0x57a   :  { %3303 = vmatmul.mubr.bf16.vlgmr.msra.gmra.mxu1 %v3834_v11  ;;  %3729 = vmatprep.mubr.msk.bf16.mxu0 %vm3105_vm7, %v3837_v52  ;;  %p3868_p4 = pnand %p3867_p3, %p3861_p0 }
 0x57b   :  { %3738 = vmatprep.mubr.msk.bf16.mxu1 %vm3105_vm7, %v3837_v52 }
 0x581   :  { %3192 = vmatmul.mubr.bf16.gmra.mxu0 %v3839_v4 }
 0x582   :  { %3313 = vmatmul.mubr.bf16.gmra.mxu1 %v3839_v4  ;;  %3730 = vmatprep.mubr.msk.bf16.mxu0 %vm3105_vm7, %v3840_v12  ;;  %v2965_v4 = vpop.permute.xlu1 %2964 }
 0x583   :  { %3739 = vmatprep.mubr.msk.bf16.mxu1 %vm3105_vm7, %v3840_v12 }
 0x589   :  { %3202 = vmatmul.mubr.bf16.gmra.mxu0 %v3842_v57 }
 0x58a   :  { %3323 = vmatmul.mubr.bf16.gmra.mxu1 %v3842_v57  ;;  %3731 = vmatprep.mubr.msk.bf16.mxu0 %vm3105_vm7, %v3843_v46 }
 0x58b   :  { %3740 = vmatprep.mubr.msk.bf16.mxu1 %vm3105_vm7, %v3843_v46 }
 0x591   :  { %3212 = vmatmul.mubr.bf16.gmra.mxu0 %v3845_v31 }
 0x592   :  { %3333 = vmatmul.mubr.bf16.gmra.mxu1 %v3845_v31  ;;  %3732 = vmatprep.mubr.msk.bf16.mxu0 %vm3105_vm7, %v3846_v18 }
 0x593   :  { %3741 = vmatprep.mubr.msk.bf16.mxu1 %vm3105_vm7, %v3846_v18 }
 0x599   :  { %3222 = vmatmul.mubr.bf16.gmra.mxu0 %v3848_v1 }
 0x59a   :  { %3343 = vmatmul.mubr.bf16.gmra.mxu1 %v3848_v1  ;;  %3733 = vmatprep.mubr.msk.bf16.mxu0 %vm3105_vm7, %v3849_v0 }
 0x59b   :  { %3742 = vmatprep.mubr.msk.bf16.mxu1 %vm3105_vm7, %v3849_v0 }
 0x5a1   :  { %3232 = vmatmul.mubr.bf16.gmra.mxu0 %v3851_v50 }
 0x5a2   :  { %3353 = vmatmul.mubr.bf16.gmra.mxu1 %v3851_v50  ;;  %3734 = vmatprep.mubr.msk.bf16.mxu0 %vm3105_vm7, %v3852_v34 }
 0x5a3   :  { %3743 = vmatprep.mubr.msk.bf16.mxu1 %vm3105_vm7, %v3852_v34 }
 0x5a9   :  { %3242 = vmatmul.mubr.bf16.gmra.mxu0 %v3854_v36 }
 0x5aa   :  { %3363 = vmatmul.mubr.bf16.gmra.mxu1 %v3854_v36  ;;  %3735 = vmatprep.mubr.msk.bf16.mxu0 %vm3105_vm7, %v3855_v6 }
 0x5ab   :  { %3744 = vmatprep.mubr.msk.bf16.mxu1 %vm3105_vm7, %v3855_v6 }
 0x5b1   :  { %3252 = vmatmul.mubr.bf16.gmra.mxu0 %v3857_v37 }
 0x5b2   :  { %3373 = vmatmul.mubr.bf16.gmra.mxu1 %v3857_v37  ;;  %3736 = vmatprep.mubr.msk.bf16.mxu0 %vm3105_vm7, %v3727_v38  ;;  %v2970_v37 = vpop.permute.xlu0 %2969 }
 0x5b3   :  { %3745 = vmatprep.mubr.msk.bf16.mxu1 %vm3105_vm7, %v3727_v38 }
 0x5b9   :  { %3262 = vmatmul.mubr.bf16.gmra.mxu0 %v3726_v5 }
 0x5ba   :  { %3383 = vmatmul.mubr.bf16.gmra.mxu1 %v3726_v5 }
 0x639   :  { %v3183_v59 = vpop.f32.mrf.mxu0 }
 0x63a   :  { %v3184_v7 = vadd.f32 %v3183_v59, %v2945_v27  ;;  %v3304_v40 = vpop.f32.mrf.mxu1 }
 0x63b   :  { %v3305_v22 = vadd.f32 %v3304_v40, %v2945_v27  ;;  %v3185_v33 = vpop.f32.mrf.mxu0 }
 0x63c   :  { %v3391_v39 = vmax.f32 %v3184_v7, 0.0  ;;  %v3186_v44 = vadd.f32 %v3185_v33, %v2945_v27  ;;  %v3306_v28 = vpop.f32.mrf.mxu1 }
 0x63d   :  { %v3393_v32 = vmax.f32 %v3305_v22, 0.0  ;;  %v3307_v15 = vadd.f32 %v3306_v28, %v2945_v27  ;;  %v3187_v21 = vpop.f32.mrf.mxu0 }
 0x63e   :  { %3459 = vst [vmem:[#allocation2] sm:$0xff] %v3391_v39  ;;  %v3392_v54 = vmax.f32 %v3186_v44, 0.0  ;;  %v3188_v20 = vadd.f32 %v3187_v21, %v2950_v3  ;;  %v3308_v8 = vpop.f32.mrf.mxu1 }
 0x63f   :  { %3461 = vst [vmem:[#allocation2 + $0x10] sm:$0xff] %v3393_v32  ;;  %v3394_v10 = vmax.f32 %v3307_v15, 0.0  ;;  %v3309_v9 = vadd.f32 %v3308_v8, %v2950_v3  ;;  %v3189_v53 = vpop.f32.mrf.mxu0  ;;  %v2975_v32 = vpop.permute.xlu1 %2974 }
 0x640   :  { %3460 = vst [vmem:[#allocation2 + $0x8] sm:$0xff] %v3392_v54  ;;  %v3395_v49 = vmax.f32 %v3188_v20, 0.0  ;;  %v3190_v62 = vadd.f32 %v3189_v53, %v2950_v3  ;;  %v3310_v17 = vpop.f32.mrf.mxu1 }
 0x641   :  { %3462 = vst [vmem:[#allocation2 + $0x18] sm:$0xff] %v3394_v10  ;;  %v3397_v29 = vmax.f32 %v3309_v9, 0.0  ;;  %v3311_v41 = vadd.f32 %v3310_v17, %v2950_v3  ;;  %v3193_v42 = vpop.f32.mrf.mxu0 }
 0x642   :  { %3463 = vst [vmem:[#allocation2 + $0x20] sm:$0xff] %v3395_v49  ;;  %v3396_v60 = vmax.f32 %v3190_v62, 0.0  ;;  %v3194_v25 = vadd.f32 %v3193_v42, %v2955_v23  ;;  %v3314_v35 = vpop.f32.mrf.mxu1 }
 0x643   :  { %3465 = vst [vmem:[#allocation2 + $0x30] sm:$0xff] %v3397_v29  ;;  %v3398_v43 = vmax.f32 %v3311_v41, 0.0  ;;  %v3315_v58 = vadd.f32 %v3314_v35, %v2955_v23  ;;  %v3195_v55 = vpop.f32.mrf.mxu0  ;;  %v2980_v29 = vpop.permute.xlu0 %2979 }
 0x644   :  { %3464 = vst [vmem:[#allocation2 + $0x28] sm:$0xff] %v3396_v60  ;;  %v3399_v2 = vmax.f32 %v3194_v25, 0.0  ;;  %v3196_v14 = vadd.f32 %v3195_v55, %v2955_v23  ;;  %v3316_v45 = vpop.f32.mrf.mxu1 }
 0x645   :  { %3466 = vst [vmem:[#allocation2 + $0x38] sm:$0xff] %v3398_v43  ;;  %v3401_v16 = vmax.f32 %v3315_v58, 0.0  ;;  %v3317_v26 = vadd.f32 %v3316_v45, %v2955_v23  ;;  %v3197_v24 = vpop.f32.mrf.mxu0 }
 0x646   :  { %3467 = vst [vmem:[#allocation2 + $0x40] sm:$0xff] %v3399_v2  ;;  %v3400_v48 = vmax.f32 %v3196_v14, 0.0  ;;  %v3198_v30 = vadd.f32 %v3197_v24, %v2960_v47  ;;  %v3318_v51 = vpop.f32.mrf.mxu1 }
 0x647   :  { %3469 = vst [vmem:[#allocation2 + $0x50] sm:$0xff] %v3401_v16  ;;  %v3402_v19 = vmax.f32 %v3317_v26, 0.0  ;;  %v3319_v63 = vadd.f32 %v3318_v51, %v2960_v47  ;;  %v3199_v13 = vpop.f32.mrf.mxu0  ;;  %v2985_v16 = vpop.permute.xlu1 %2984 }
 0x648   :  { %3468 = vst [vmem:[#allocation2 + $0x48] sm:$0xff] %v3400_v48  ;;  %v3403_v61 = vmax.f32 %v3198_v30, 0.0  ;;  %v3200_v11 = vadd.f32 %v3199_v13, %v2960_v47  ;;  %v3320_v52 = vpop.f32.mrf.mxu1 }
 0x649   :  { %3470 = vst [vmem:[#allocation2 + $0x58] sm:$0xff] %v3402_v19  ;;  %v3405_v12 = vmax.f32 %v3319_v63, 0.0  ;;  %v3321_v57 = vadd.f32 %v3320_v52, %v2960_v47  ;;  %v3203_v46 = vpop.f32.mrf.mxu0 }
 0x64a   :  { %3471 = vst [vmem:[#allocation2 + $0x60] sm:$0xff] %v3403_v61  ;;  %v3404_v31 = vmax.f32 %v3200_v11, 0.0  ;;  %v3204_v18 = vadd.f32 %v3203_v46, %v2965_v4  ;;  %v3324_v1 = vpop.f32.mrf.mxu1 }
 0x64b   :  { %3473 = vst [vmem:[#allocation2 + $0x70] sm:$0xff] %v3405_v12  ;;  %v3406_v0 = vmax.f32 %v3321_v57, 0.0  ;;  %v3325_v50 = vadd.f32 %v3324_v1, %v2965_v4  ;;  %v3205_v34 = vpop.f32.mrf.mxu0  ;;  %v2990_v12 = vpop.permute.xlu0 %2989 }
 0x64c   :  { %3472 = vst [vmem:[#allocation2 + $0x68] sm:$0xff] %v3404_v31  ;;  %v3407_v36 = vmax.f32 %v3204_v18, 0.0  ;;  %v3206_v6 = vadd.f32 %v3205_v34, %v2965_v4  ;;  %v3326_v56 = vpop.f32.mrf.mxu1 }
 0x64d   :  { %3474 = vst [vmem:[#allocation2 + $0x78] sm:$0xff] %v3406_v0  ;;  %v3409_v38 = vmax.f32 %v3325_v50, 0.0  ;;  %v3327_v5 = vadd.f32 %v3326_v56, %v2965_v4  ;;  %v3207_v27 = vpop.f32.mrf.mxu0 }
 0x64e   :  { %3475 = vst [vmem:[#allocation2 + $0x80] sm:$0xff] %v3407_v36  ;;  %v3408_v59 = vmax.f32 %v3206_v6, 0.0  ;;  %v3208_v7 = vadd.f32 %v3207_v27, %v2970_v37  ;;  %v3328_v40 = vpop.f32.mrf.mxu1 }
 0x64f   :  { %3477 = vst [vmem:[#allocation2 + $0x90] sm:$0xff] %v3409_v38  ;;  %v3410_v22 = vmax.f32 %v3327_v5, 0.0  ;;  %v3329_v33 = vadd.f32 %v3328_v40, %v2970_v37  ;;  %v3209_v39 = vpop.f32.mrf.mxu0  ;;  %v2995_v38 = vpop.permute.xlu1 %2994 }
 0x650   :  { %3476 = vst [vmem:[#allocation2 + $0x88] sm:$0xff] %v3408_v59  ;;  %v3411_v44 = vmax.f32 %v3208_v7, 0.0  ;;  %v3210_v28 = vadd.f32 %v3209_v39, %v2970_v37  ;;  %v3330_v3 = vpop.f32.mrf.mxu1 }
 0x651   :  { %3478 = vst [vmem:[#allocation2 + $0x98] sm:$0xff] %v3410_v22  ;;  %v3413_v15 = vmax.f32 %v3329_v33, 0.0  ;;  %v3331_v21 = vadd.f32 %v3330_v3, %v2970_v37  ;;  %v3213_v54 = vpop.f32.mrf.mxu0 }
 0x652   :  { %3479 = vst [vmem:[#allocation2 + $0xa0] sm:$0xff] %v3411_v44  ;;  %v3412_v20 = vmax.f32 %v3210_v28, 0.0  ;;  %v3214_v8 = vadd.f32 %v3213_v54, %v2975_v32  ;;  %v3334_v10 = vpop.f32.mrf.mxu1 }
 0x653   :  { %3481 = vst [vmem:[#allocation2 + $0xb0] sm:$0xff] %v3413_v15  ;;  %v3414_v9 = vmax.f32 %v3331_v21, 0.0  ;;  %v3335_v53 = vadd.f32 %v3334_v10, %v2975_v32  ;;  %v3215_v49 = vpop.f32.mrf.mxu0  ;;  %v3000_v15 = vpop.permute.xlu0 %2999 }
 0x654   :  { %3480 = vst [vmem:[#allocation2 + $0xa8] sm:$0xff] %v3412_v20  ;;  %v3415_v62 = vmax.f32 %v3214_v8, 0.0  ;;  %v3216_v17 = vadd.f32 %v3215_v49, %v2975_v32  ;;  %v3336_v23 = vpop.f32.mrf.mxu1 }
 0x655   :  { %3482 = vst [vmem:[#allocation2 + $0xb8] sm:$0xff] %v3414_v9  ;;  %v3417_v41 = vmax.f32 %v3335_v53, 0.0  ;;  %v3337_v42 = vadd.f32 %v3336_v23, %v2975_v32  ;;  %v3217_v60 = vpop.f32.mrf.mxu0 }
 0x656   :  { %3483 = vst [vmem:[#allocation2 + $0xc0] sm:$0xff] %v3415_v62  ;;  %v3416_v25 = vmax.f32 %v3216_v17, 0.0  ;;  %v3218_v35 = vadd.f32 %v3217_v60, %v2980_v29  ;;  %v3338_v43 = vpop.f32.mrf.mxu1 }
 0x657   :  { %3485 = vst [vmem:[#allocation2 + $0xd0] sm:$0xff] %v3417_v41  ;;  %v3418_v58 = vmax.f32 %v3337_v42, 0.0  ;;  %v3339_v55 = vadd.f32 %v3338_v43, %v2980_v29  ;;  %v3219_v2 = vpop.f32.mrf.mxu0  ;;  %v3005_v41 = vpop.permute.xlu1 %3004 }
 0x658   :  { %3484 = vst [vmem:[#allocation2 + $0xc8] sm:$0xff] %v3416_v25  ;;  %v3419_v14 = vmax.f32 %v3218_v35, 0.0  ;;  %v3220_v45 = vadd.f32 %v3219_v2, %v2980_v29  ;;  %v3340_v47 = vpop.f32.mrf.mxu1 }
 0x659   :  { %3486 = vst [vmem:[#allocation2 + $0xd8] sm:$0xff] %v3418_v58  ;;  %v3421_v26 = vmax.f32 %v3339_v55, 0.0  ;;  %v3341_v24 = vadd.f32 %v3340_v47, %v2980_v29  ;;  %v3223_v48 = vpop.f32.mrf.mxu0 }
 0x65a   :  { %3487 = vst [vmem:[#allocation2 + $0xe0] sm:$0xff] %v3419_v14  ;;  %v3420_v30 = vmax.f32 %v3220_v45, 0.0  ;;  %v3224_v51 = vadd.f32 %v3223_v48, %v2985_v16  ;;  %v3344_v19 = vpop.f32.mrf.mxu1 }
 0x65b   :  { %3489 = vst [vmem:[#allocation2 + $0xf0] sm:$0xff] %v3421_v26  ;;  %v3422_v63 = vmax.f32 %v3341_v24, 0.0  ;;  %v3345_v13 = vadd.f32 %v3344_v19, %v2985_v16  ;;  %v3225_v61 = vpop.f32.mrf.mxu0  ;;  %v3010_v26 = vpop.permute.xlu0 %3009 }
 0x65c   :  { %3488 = vst [vmem:[#allocation2 + $0xe8] sm:$0xff] %v3420_v30  ;;  %v3423_v11 = vmax.f32 %v3224_v51, 0.0  ;;  %v3226_v52 = vadd.f32 %v3225_v61, %v2985_v16  ;;  %v3346_v4 = vpop.f32.mrf.mxu1 }
 0x65d   :  { %3490 = vst [vmem:[#allocation2 + $0xf8] sm:$0xff] %v3422_v63  ;;  %v3425_v57 = vmax.f32 %v3345_v13, 0.0  ;;  %v3347_v46 = vadd.f32 %v3346_v4, %v2985_v16  ;;  %v3227_v31 = vpop.f32.mrf.mxu0 }
 0x65e   :  { %3491 = vst [vmem:[#allocation2 + $0x100] sm:$0xff] %v3423_v11  ;;  %v3424_v18 = vmax.f32 %v3226_v52, 0.0  ;;  %v3228_v1 = vadd.f32 %v3227_v31, %v2990_v12  ;;  %v3348_v0 = vpop.f32.mrf.mxu1 }
 0x65f   :  { %3493 = vst [vmem:[#allocation2 + $0x110] sm:$0xff] %v3425_v57  ;;  %v3426_v50 = vmax.f32 %v3347_v46, 0.0  ;;  %v3349_v34 = vadd.f32 %v3348_v0, %v2990_v12  ;;  %v3229_v36 = vpop.f32.mrf.mxu0  ;;  %v3015_v57 = vpop.permute.xlu1 %3014 }
 0x660   :  { %3492 = vst [vmem:[#allocation2 + $0x108] sm:$0xff] %v3424_v18  ;;  %v3427_v6 = vmax.f32 %v3228_v1, 0.0  ;;  %v3230_v56 = vadd.f32 %v3229_v36, %v2990_v12  ;;  %v3350_v37 = vpop.f32.mrf.mxu1 }
 0x661   :  { %3494 = vst [vmem:[#allocation2 + $0x118] sm:$0xff] %v3426_v50  ;;  %v3429_v5 = vmax.f32 %v3349_v34, 0.0  ;;  %v3351_v27 = vadd.f32 %v3350_v37, %v2990_v12  ;;  %v3233_v59 = vpop.f32.mrf.mxu0 }
 0x662   :  { %3495 = vst [vmem:[#allocation2 + $0x120] sm:$0xff] %v3427_v6  ;;  %v3428_v7 = vmax.f32 %v3230_v56, 0.0  ;;  %v3234_v40 = vadd.f32 %v3233_v59, %v2995_v38  ;;  %v3354_v22 = vpop.f32.mrf.mxu1 }
 0x663   :  { %3497 = vst [vmem:[#allocation2 + $0x130] sm:$0xff] %v3429_v5  ;;  %v3430_v33 = vmax.f32 %v3351_v27, 0.0  ;;  %v3355_v39 = vadd.f32 %v3354_v22, %v2995_v38  ;;  %v3235_v44 = vpop.f32.mrf.mxu0  ;;  %v3020_v5 = vpop.permute.xlu0 %3019 }
 0x664   :  { %3496 = vst [vmem:[#allocation2 + $0x128] sm:$0xff] %v3428_v7  ;;  %v3431_v28 = vmax.f32 %v3234_v40, 0.0  ;;  %v3236_v3 = vadd.f32 %v3235_v44, %v2995_v38  ;;  %v3356_v32 = vpop.f32.mrf.mxu1 }
 0x665   :  { %3498 = vst [vmem:[#allocation2 + $0x138] sm:$0xff] %v3430_v33  ;;  %v3433_v21 = vmax.f32 %v3355_v39, 0.0  ;;  %v3357_v54 = vadd.f32 %v3356_v32, %v2995_v38  ;;  %v3237_v20 = vpop.f32.mrf.mxu0 }
 0x666   :  { %3499 = vst [vmem:[#allocation2 + $0x140] sm:$0xff] %v3431_v28  ;;  %v3432_v8 = vmax.f32 %v3236_v3, 0.0  ;;  %v3238_v10 = vadd.f32 %v3237_v20, %v3000_v15  ;;  %v3358_v9 = vpop.f32.mrf.mxu1 }
 0x667   :  { %3501 = vst [vmem:[#allocation2 + $0x150] sm:$0xff] %v3433_v21  ;;  %v3434_v53 = vmax.f32 %v3357_v54, 0.0  ;;  %v3359_v49 = vadd.f32 %v3358_v9, %v3000_v15  ;;  %v3239_v62 = vpop.f32.mrf.mxu0  ;;  %v3025_v21 = vpop.permute.xlu1 %3024 }
 0x668   :  { %3500 = vst [vmem:[#allocation2 + $0x148] sm:$0xff] %v3432_v8  ;;  %v3435_v17 = vmax.f32 %v3238_v10, 0.0  ;;  %v3240_v23 = vadd.f32 %v3239_v62, %v3000_v15  ;;  %v3360_v29 = vpop.f32.mrf.mxu1 }
 0x669   :  { %3502 = vst [vmem:[#allocation2 + $0x158] sm:$0xff] %v3434_v53  ;;  %v3437_v42 = vmax.f32 %v3359_v49, 0.0  ;;  %v3361_v60 = vadd.f32 %v3360_v29, %v3000_v15  ;;  %v3243_v25 = vpop.f32.mrf.mxu0 }
 0x66a   :  { %3503 = vst [vmem:[#allocation2 + $0x160] sm:$0xff] %v3435_v17  ;;  %v3436_v35 = vmax.f32 %v3240_v23, 0.0  ;;  %v3244_v43 = vadd.f32 %v3243_v25, %v3005_v41  ;;  %v3364_v58 = vpop.f32.mrf.mxu1 }
 0x66b   :  { %3505 = vst [vmem:[#allocation2 + $0x170] sm:$0xff] %v3437_v42  ;;  %v3438_v55 = vmax.f32 %v3361_v60, 0.0  ;;  %v3365_v2 = vadd.f32 %v3364_v58, %v3005_v41  ;;  %v3245_v14 = vpop.f32.mrf.mxu0 }
 0x66c   :  { %3504 = vst [vmem:[#allocation2 + $0x168] sm:$0xff] %v3436_v35  ;;  %v3439_v45 = vmax.f32 %v3244_v43, 0.0  ;;  %v3246_v47 = vadd.f32 %v3245_v14, %v3005_v41  ;;  %v3366_v16 = vpop.f32.mrf.mxu1 }
 0x66d   :  { %3506 = vst [vmem:[#allocation2 + $0x178] sm:$0xff] %v3438_v55  ;;  %v3441_v24 = vmax.f32 %v3365_v2, 0.0  ;;  %v3367_v48 = vadd.f32 %v3366_v16, %v3005_v41  ;;  %v3247_v30 = vpop.f32.mrf.mxu0 }
 0x66e   :  { %3507 = vst [vmem:[#allocation2 + $0x180] sm:$0xff] %v3439_v45  ;;  %v3440_v51 = vmax.f32 %v3246_v47, 0.0  ;;  %v3248_v19 = vadd.f32 %v3247_v30, %v3010_v26  ;;  %v3368_v63 = vpop.f32.mrf.mxu1 }
 0x66f   :  { %3509 = vst [vmem:[#allocation2 + $0x190] sm:$0xff] %v3441_v24  ;;  %v3442_v13 = vmax.f32 %v3367_v48, 0.0  ;;  %v3369_v61 = vadd.f32 %v3368_v63, %v3010_v26  ;;  %v3249_v11 = vpop.f32.mrf.mxu0 }
 0x670   :  { %3508 = vst [vmem:[#allocation2 + $0x188] sm:$0xff] %v3440_v51  ;;  %v3443_v52 = vmax.f32 %v3248_v19, 0.0  ;;  %v3250_v4 = vadd.f32 %v3249_v11, %v3010_v26  ;;  %v3370_v12 = vpop.f32.mrf.mxu1 }
 0x671   :  { %3510 = vst [vmem:[#allocation2 + $0x198] sm:$0xff] %v3442_v13  ;;  %v3445_v46 = vmax.f32 %v3369_v61, 0.0  ;;  %v3371_v31 = vadd.f32 %v3370_v12, %v3010_v26  ;;  %v3253_v18 = vpop.f32.mrf.mxu0 }
 0x672   :  { %3511 = vst [vmem:[#allocation2 + $0x1a0] sm:$0xff] %v3443_v52  ;;  %v3444_v1 = vmax.f32 %v3250_v4, 0.0  ;;  %v3254_v0 = vadd.f32 %v3253_v18, %v3015_v57  ;;  %v3374_v50 = vpop.f32.mrf.mxu1 }
 0x673   :  { %3513 = vst [vmem:[#allocation2 + $0x1b0] sm:$0xff] %v3445_v46  ;;  %v3446_v34 = vmax.f32 %v3371_v31, 0.0  ;;  %v3375_v36 = vadd.f32 %v3374_v50, %v3015_v57  ;;  %v3255_v6 = vpop.f32.mrf.mxu0 }
 0x674   :  { %3512 = vst [vmem:[#allocation2 + $0x1a8] sm:$0xff] %v3444_v1  ;;  %v3447_v56 = vmax.f32 %v3254_v0, 0.0  ;;  %v3256_v37 = vadd.f32 %v3255_v6, %v3015_v57  ;;  %v3376_v38 = vpop.f32.mrf.mxu1 }
 0x675   :  { %3514 = vst [vmem:[#allocation2 + $0x1b8] sm:$0xff] %v3446_v34  ;;  %v3449_v27 = vmax.f32 %v3375_v36, 0.0  ;;  %v3377_v59 = vadd.f32 %v3376_v38, %v3015_v57  ;;  %v3257_v7 = vpop.f32.mrf.mxu0 }
 0x676   :  { %3515 = vst [vmem:[#allocation2 + $0x1c0] sm:$0xff] %v3447_v56  ;;  %v3448_v40 = vmax.f32 %v3256_v37, 0.0  ;;  %v3258_v22 = vadd.f32 %v3257_v7, %v3020_v5  ;;  %v3378_v33 = vpop.f32.mrf.mxu1 }
 0x677   :  { %3517 = vst [vmem:[#allocation2 + $0x1d0] sm:$0xff] %v3449_v27  ;;  %v3450_v39 = vmax.f32 %v3377_v59, 0.0  ;;  %v3379_v44 = vadd.f32 %v3378_v33, %v3020_v5  ;;  %v3259_v28 = vpop.f32.mrf.mxu0 }
 0x678   :  { %3516 = vst [vmem:[#allocation2 + $0x1c8] sm:$0xff] %v3448_v40  ;;  %v3451_v3 = vmax.f32 %v3258_v22, 0.0  ;;  %v3260_v32 = vadd.f32 %v3259_v28, %v3020_v5  ;;  %v3380_v15 = vpop.f32.mrf.mxu1 }
 0x679   :  { %3518 = vst [vmem:[#allocation2 + $0x1d8] sm:$0xff] %v3450_v39  ;;  %v3453_v54 = vmax.f32 %v3379_v44, 0.0  ;;  %v3381_v20 = vadd.f32 %v3380_v15, %v3020_v5  ;;  %v3263_v8 = vpop.f32.mrf.mxu0 }
 0x67a   :  { %3519 = vst [vmem:[#allocation2 + $0x1e0] sm:$0xff] %v3451_v3  ;;  %v3452_v10 = vmax.f32 %v3260_v32, 0.0  ;;  %v3264_v9 = vadd.f32 %v3263_v8, %v3025_v21  ;;  %v3384_v53 = vpop.f32.mrf.mxu1 }
 0x67b   :  { %3521 = vst [vmem:[#allocation2 + $0x1f0] sm:$0xff] %v3453_v54  ;;  %v3454_v49 = vmax.f32 %v3381_v20, 0.0  ;;  %v3385_v62 = vadd.f32 %v3384_v53, %v3025_v21  ;;  %v3265_v17 = vpop.f32.mrf.mxu0 }
 0x67c   :  { %3520 = vst [vmem:[#allocation2 + $0x1e8] sm:$0xff] %v3452_v10  ;;  %v3455_v23 = vmax.f32 %v3264_v9, 0.0  ;;  %v3266_v29 = vadd.f32 %v3265_v17, %v3025_v21  ;;  %v3386_v41 = vpop.f32.mrf.mxu1 }
 0x67d   :  { %3522 = vst [vmem:[#allocation2 + $0x1f8] sm:$0xff] %v3454_v49  ;;  %v3457_v42 = vmax.f32 %v3385_v62, 0.0  ;;  %v3387_v60 = vadd.f32 %v3386_v41, %v3025_v21  ;;  %v3267_v25 = vpop.f32.mrf.mxu0 }
 0x67e   :  { %3523 = vst [vmem:[#allocation2 + $0x200] sm:$0x7] %v3455_v23  ;;  %v3456_v35 = vmax.f32 %v3266_v29, 0.0  ;;  %v3388_v43 = vpop.f32.mrf.mxu1 }
 0x67f   :  { %3525 = vst [vmem:[#allocation2 + $0x210] sm:$0x7] %v3457_v42  ;;  %v3458_v58 = vmax.f32 %v3387_v60, 0.0  ;;  %v3268_v55 = vpop.f32.mrf.mxu0 }
 0x680   :  { %3524 = vst [vmem:[#allocation2 + $0x208] sm:$0x7] %v3456_v35  ;;  %v3389_v2 = vpop.f32.mrf.mxu1 }
 0x681   :  { %3526 = vst [vmem:[#allocation2 + $0x218] sm:$0x7] %v3458_v58 }
 0x682   :  { %3871 = shalt.err (!%p3868_p4)
}
 0x683   :  { %s3885_s28 = smov 512   ;;  %s3886_s7 = smov 32  }
 0x684   :  { %3538 = dma.vmem_to_hbm [thread:$0]  %s3533_s27, 8704, %s5822_s17, [#allocation3], %s3885_s28, %s3885_s28, %s3886_s7  }
 0x685   :  { %3880 = dma.done.wait [#allocation3], 8704  }
 0x686   :  { %3881 = vsyncadd [#allocation3], 4294958592 }
 0x687   :  { %3542 = vsyncpa [#allocation3], 1 }

</bundles_post_ra>
